<compile_context>
chip_gen: v7x
topology: tpu7x:2x2x1
jax: 0.10.0
libtpu: 0.0.40
codegen_flags: <defaults>
</compile_context>

<pallas_src>
import functools

import jax
import jax.numpy as jnp
from jax.experimental import pallas as pl
from jax.experimental.pallas import tpu as pltpu


def _round_up(x, m):
    return ((x + m - 1) // m) * m


# --------------------------------------------------------------------------
# Pallas kernel: one batch *tile* per grid step (time-major rows: r = t*Bt + b).
# Refs:
#   x_ref        : (S*Bt, E)    bf16
#   wih_ref      : (E, 8Hp)     bf16   [fwd gates | bwd gates] input-projection weight
#   bih_ref      : (1, 8Hp)     f32    combined input+recurrent bias, same layout
#   whh_f/whh_b  : (Hp, 4Hp)    bf16   recurrent weights per direction
#   attn_w/attn_b: (2Hp, 1)/(1,1) f32  attention head (rows: [fwd | bwd] halves)
#   tag_w/tag_b  : (2Hp, Tp) bf16 / (1, Tp) f32
#   out_ref      : (S*Bt, Tp)   f32
#   xg_ref       : (S*Bt, 8Hp)  f32 scratch (fused fwd|bwd input projections)
#   h_ref        : (S*Bt, 2Hp)  f32 scratch (fwd|bwd hidden states, lane-concatenated)
# --------------------------------------------------------------------------
def ner_kernel(x_ref, wih_ref, bih_ref, whh_f_ref, whh_b_ref,
               attn_w_ref, attn_b_ref, tag_w_ref, tag_b_ref,
               out_ref,
               xg_ref, h_ref,
               *, S, Bt, Hp, unroll):
    G = 4 * Hp

    # ---- fused input projection: ONE big MXU matmul for both directions ----
    xg_ref[...] = (jnp.dot(x_ref[...], wih_ref[...],
                           preferred_element_type=jnp.float32) + bih_ref[...])

    def lstm_cell(xg, h, c, whh_ref):
        # xg already contains x @ W_ih + b; add recurrent term (bf16 MXU, f32 acc).
        gates = xg + jnp.dot(h.astype(jnp.bfloat16), whh_ref[...],
                             preferred_element_type=jnp.float32)     # (Bt, 4Hp)
        # Gate slices are 128-lane aligned (Hp = 128). PyTorch order: i, f, g, o.
        # Gate math stays f32 (v5e has no bf16 VPU/EUP; exactness of padded lanes).
        i_g = jax.nn.sigmoid(gates[:, 0:Hp])
        f_g = jax.nn.sigmoid(gates[:, Hp:2 * Hp])
        g_g = jnp.tanh(gates[:, 2 * Hp:3 * Hp])
        o_g = jax.nn.sigmoid(gates[:, 3 * Hp:4 * Hp])
        c_n = f_g * c + i_g * g_g
        h_n = o_g * jnp.tanh(c_n)
        return h_n, c_n

    # ---- interleaved fwd/bwd recurrence: both directions per iteration -----
    def step(t, carry):
        h_f, c_f, h_b, c_b = carry
        rf = pl.multiple_of(t * Bt, Bt)                # fwd row block (time-major)
        rb = pl.multiple_of((S - 1 - t) * Bt, Bt)      # bwd row block
        xg_f = xg_ref[pl.ds(rf, Bt), pl.ds(0, G)]
        xg_b = xg_ref[pl.ds(rb, Bt), pl.ds(G, G)]
        h_f, c_f = lstm_cell(xg_f, h_f, c_f, whh_f_ref)
        h_b, c_b = lstm_cell(xg_b, h_b, c_b, whh_b_ref)
        h_ref[pl.ds(rf, Bt), pl.ds(0, Hp)] = h_f       # fwd half -> lanes [0, Hp)
        h_ref[pl.ds(rb, Bt), pl.ds(Hp, Hp)] = h_b      # bwd half -> lanes [Hp, 2Hp)
        return h_f, c_f, h_b, c_b

    z = jnp.zeros((Bt, Hp), jnp.float32)
    jax.lax.fori_loop(0, S, step, (z, z, z, z), unroll=unroll)

    h_all = h_ref[...]                                 # (S*Bt, 2Hp), already fwd|bwd

    # ---- attention: tanh(Linear(2H -> 1)), softmax over the sequence axis --
    # Single 256-deep contraction (fills the 2x256 MXU on v6e/v7x). Kept f32:
    # the output is one lane wide, so this matmul is never the bottleneck.
    a = jnp.tanh(jnp.dot(h_all, attn_w_ref[...],
                         preferred_element_type=jnp.float32) + attn_b_ref[...])  # (S*Bt, 1)

    # Rows are time-major (r = t*Bt + b). The (S*Bt,1)->(S,Bt,1) regroup splits the
    # leading axis on a Bt (multiple-of-8) boundary, i.e. whole vreg sublane groups
    # (cost accepted knowingly); the sequence reduction is then cross-vreg max/add.
    a3 = a.reshape(S, Bt, 1)
    m = jnp.max(a3, axis=0, keepdims=True)             # (1, Bt, 1)
    e = jnp.exp(a3 - m)
    denom = jnp.sum(e, axis=0, keepdims=True)          # (1, Bt, 1)
    w = (e * pl.reciprocal(denom, approx=True)).reshape(S * Bt, 1)

    applied = (w * h_all).astype(jnp.bfloat16)         # (S*Bt, 2Hp)

    # ---- tag head (256-deep, bf16 operands, f32 acc) + log_softmax ----------
    tag = (jnp.dot(applied, tag_w_ref[...], preferred_element_type=jnp.float32)
           + tag_b_ref[...])                           # (S*Bt, Tp)
    # Padded tag lanes carry bias -1e30 -> exp()==0, so they don't perturb the
    # log_softmax of the real lanes.
    tag = tag - jnp.max(tag, axis=-1, keepdims=True)
    out_ref[...] = tag - jnp.log(jnp.sum(jnp.exp(tag), axis=-1, keepdims=True))


# --------------------------------------------------------------------------
# Wrapper: embedding gather, layout plumbing (pad/repack), pallas_call, unpack.
# --------------------------------------------------------------------------
def ner_forward(sentences, params):
    emb_table = params["embedding"]                  # (V, E)
    embeds = jnp.take(emb_table, sentences, axis=0)  # (B, S, E) glue gather
    B, S, E = embeds.shape
    H = params["whh_f"].shape[0]
    T = params["tag_w"].shape[1]

    Hp = _round_up(H, 128)                           # lane-aligned hidden
    Tp = _round_up(T, 128)                           # lane-dense output
    G = 4 * Hp
    NEG = -1e30

    # --- batch tile: sublane aligned; >=2 tiles when B is big enough so both
    #     v7x TensorCores get work; capped so S*Bt-scaled VMEM fits v7x (64 MiB).
    def tile_bytes(bt):
        rows = S * bt
        return (rows * (2 * G + 2 * Hp) * 4          # xg + h scratch (f32)
                + 2 * rows * E * 2                   # x tile, double-buffered (bf16)
                + 2 * rows * Tp * 4)                 # out tile, double-buffered (f32)

    Bt = min(128, _round_up(B, 8))
    if B > 8:
        Bt = min(Bt, _round_up(-(-B // 2), 8))       # guarantees nb >= 2
    while Bt > 8 and tile_bytes(Bt) > (24 << 20):
        Bt -= 8
    Bp = _round_up(B, Bt)
    nb = Bp // Bt

    # --- repack LSTM weights so each gate block sits at an Hp-aligned slot ---
    def repack_gate_cols(w):
        out = jnp.zeros((w.shape[0], G), jnp.float32)
        for g in range(4):
            out = out.at[:, g * Hp:g * Hp + H].set(w[:, g * H:(g + 1) * H])
        return out

    def pad_rows(w, rows):
        return jnp.pad(w, ((0, rows - w.shape[0]), (0, 0)))

    # Fused input projection: [fwd gates | bwd gates] along lanes (E, 8Hp).
    wih = jnp.concatenate([repack_gate_cols(params["wih_f"]),
                           repack_gate_cols(params["wih_b"])],
                          axis=1).astype(jnp.bfloat16)
    bih = jnp.concatenate([repack_gate_cols(params["b_f"]),
                           repack_gate_cols(params["b_b"])], axis=1)        # (1, 8Hp) f32

    whh_f = pad_rows(repack_gate_cols(params["whh_f"]), Hp).astype(jnp.bfloat16)
    whh_b = pad_rows(repack_gate_cols(params["whh_b"]), Hp).astype(jnp.bfloat16)

    # Head weights: rows [0:H] = fwd half, rows [Hp:Hp+H] = bwd half (rest zero,
    # matching the exactly-zero padded hidden lanes).
    def stack_rows(w):
        out = jnp.zeros((2 * Hp, w.shape[1]), jnp.float32)
        return out.at[0:H].set(w[:H]).at[Hp:Hp + H].set(w[H:])

    attn_w = stack_rows(params["attn_w"])                                   # (2Hp, 1) f32
    attn_b = params["attn_b"].astype(jnp.float32)                           # (1, 1)
    tag_w = jnp.pad(stack_rows(params["tag_w"]),
                    ((0, 0), (0, Tp - T))).astype(jnp.bfloat16)             # (2Hp, Tp)
    tag_b = jnp.pad(params["tag_b"], ((0, 0), (0, Tp - T)),
                    constant_values=NEG).astype(jnp.float32)                # (1, Tp)

    # --- pack activations: per batch tile, time-major rows (r = t*Bt + b) ---
    x = jnp.pad(embeds, ((0, Bp - B), (0, 0), (0, 0)))                      # (Bp, S, E)
    x = jnp.transpose(x, (1, 0, 2))                                         # (S, Bp, E)
    x = x.reshape(S, nb, Bt, E).transpose(1, 0, 2, 3)
    x = x.reshape(nb, S * Bt, E).astype(jnp.bfloat16)

    # --- explicit VMEM budget (v5e default scoped limit is only 16 MiB) -----
    def nbytes(a):
        return int(a.size) * a.dtype.itemsize
    weight_bytes = 2 * sum(nbytes(a) for a in
                           (wih, bih, whh_f, whh_b, attn_w, attn_b, tag_w, tag_b))
    vmem_limit = int(min((tile_bytes(Bt) + weight_bytes) * 1.5 + (8 << 20), 100 << 20))

    kernel = functools.partial(ner_kernel, S=S, Bt=Bt, Hp=Hp, unroll=min(S, 8))
    fixed = lambda arr: pl.BlockSpec(arr.shape, lambda i: (0,) * arr.ndim)
    # TODO(synk): for realistic E, mark the constant-index weight specs with
    # pipeline_mode=pl.Buffered(1) to drop their redundant second pipeline buffer.

    out = pl.pallas_call(
        kernel,
        grid=(nb,),
        in_specs=[
            pl.BlockSpec((None, S * Bt, E), lambda i: (i, 0, 0)),   # x (one batch tile)
            fixed(wih), fixed(bih), fixed(whh_f), fixed(whh_b),     # LSTM weights
            fixed(attn_w), fixed(attn_b),                           # attention head
            fixed(tag_w), fixed(tag_b),                             # tag head
        ],
        out_specs=pl.BlockSpec((None, S * Bt, Tp), lambda i: (i, 0, 0)),
        out_shape=jax.ShapeDtypeStruct((nb, S * Bt, Tp), jnp.float32),
        scratch_shapes=[
            pltpu.VMEM((S * Bt, 2 * G), jnp.float32),    # fused fwd|bwd input projections
            pltpu.VMEM((S * Bt, 2 * Hp), jnp.float32),   # fwd|bwd hidden states
        ],
        compiler_params=pltpu.CompilerParams(
            dimension_semantics=("parallel",),           # batch tiles shard across TCs
            vmem_limit_bytes=vmem_limit),
    )(x, wih, bih, whh_f, whh_b, attn_w, attn_b, tag_w, tag_b)

    # (nb, S*Bt, Tp) -> (B, S, T)
    out = out.reshape(nb, S, Bt, Tp).transpose(0, 2, 1, 3).reshape(Bp, S, Tp)
    return out[:B, :, :T]


# --------------------------------------------------------------------------
# Pure-JAX reference (for correctness check)
# --------------------------------------------------------------------------
def ner_reference(sentences, p):
    emb = jnp.take(p["embedding"], sentences, axis=0)   # (B, S, E)
    B, S, _ = emb.shape
    H = p["whh_f"].shape[0]

    def run_dir(wih, whh, b, reverse):
        h = jnp.zeros((B, H), jnp.float32)
        c = jnp.zeros((B, H), jnp.float32)
        out = jnp.zeros((B, S, H), jnp.float32)
        ts = range(S - 1, -1, -1) if reverse else range(S)
        for t in ts:
            x = emb[:, t, :]
            g = x @ wih + h @ whh + b
            i_g = jax.nn.sigmoid(g[:, :H])
            f_g = jax.nn.sigmoid(g[:, H:2 * H])
            g_g = jnp.tanh(g[:, 2 * H:3 * H])
            o_g = jax.nn.sigmoid(g[:, 3 * H:])
            c = f_g * c + i_g * g_g
            h = o_g * jnp.tanh(c)
            out = out.at[:, t, :].set(h)
        return out

    hf = run_dir(p["wih_f"], p["whh_f"], p["b_f"], False)
    hb = run_dir(p["wih_b"], p["whh_b"], p["b_b"], True)
    lstm_out = jnp.concatenate([hf, hb], axis=-1)        # (B, S, 2H)
    attn = jnp.tanh(lstm_out @ p["attn_w"] + p["attn_b"])
    attn = jax.nn.softmax(attn, axis=1)
    applied = attn * lstm_out
    tag = applied @ p["tag_w"] + p["tag_b"]
    return jax.nn.log_softmax(tag, axis=2)


# --------------------------------------------------------------------------
def make_params(key, vocab_size, tagset_size, embedding_dim, hidden_dim):
    E, H, T = embedding_dim, hidden_dim, tagset_size
    ks = jax.random.split(key, 12)
    u = lambda k, shape: jax.random.uniform(k, shape, jnp.float32, -0.1, 0.1)
    emb = u(ks[0], (vocab_size, E))
    emb = emb.at[0].set(0.0)                         # padding_idx=0 -> zero row
    return {
        "embedding": emb,
        # LSTM weights stored transposed (in_dim, 4H) for right-multiplication;
        # bias = bias_ih + bias_hh combined, shaped (1, 4H). Gate order i,f,g,o.
        "wih_f": u(ks[1], (E, 4 * H)),
        "whh_f": u(ks[2], (H, 4 * H)),
        "b_f": u(ks[3], (1, 4 * H)),
        "wih_b": u(ks[4], (E, 4 * H)),
        "whh_b": u(ks[5], (H, 4 * H)),
        "b_b": u(ks[6], (1, 4 * H)),
        "attn_w": u(ks[7], (2 * H, 1)),
        "attn_b": u(ks[8], (1, 1)),
        "tag_w": u(ks[9], (2 * H, T)),
        "tag_b": u(ks[10], (1, T)),
    }


if __name__ == "__main__":
    VOCAB, TAGS, EMB, HID = 50, 6, 32, 32
    B, S = 2, 8

    key = jax.random.PRNGKey(0)
    k_param, k_sent = jax.random.split(key)
    params = make_params(k_param, VOCAB, TAGS, EMB, HID)

    sentences = jax.random.randint(k_sent, (B, S), 0, VOCAB, dtype=jnp.int32)
    sentences = sentences.at[:, -2:].set(0)          # some padding tokens

    out = jax.jit(ner_forward)(sentences, params)
    out = jax.block_until_ready(out)

    ref = ner_reference(sentences, params)
    assert out.shape == (B, S, TAGS)
    assert jnp.all(jnp.isfinite(out))
    assert jnp.allclose(out, ref, atol=2e-3, rtol=2e-3), (
        f"max err {jnp.max(jnp.abs(out - ref))}")

    print("KERNEL_OK")
</pallas_src>

<mosaic_0001>
module attributes {stable_mosaic.version = 11 : i64} {
  func.func @ner_kernel(%arg0: i32, %arg1: memref<1x64x32xbf16, #tpu.memory_space<vmem>>, %arg2: memref<32x1024xbf16, #tpu.memory_space<vmem>>, %arg3: memref<1x1024xf32, #tpu.memory_space<vmem>>, %arg4: memref<128x512xbf16, #tpu.memory_space<vmem>>, %arg5: memref<128x512xbf16, #tpu.memory_space<vmem>>, %arg6: memref<256x1xf32, #tpu.memory_space<vmem>>, %arg7: memref<1x1xf32, #tpu.memory_space<vmem>>, %arg8: memref<256x128xbf16, #tpu.memory_space<vmem>>, %arg9: memref<1x128xf32, #tpu.memory_space<vmem>>, %arg10: memref<1x64x128xf32, #tpu.memory_space<vmem>>, %arg11: memref<64x1024xf32, #tpu.memory_space<vmem>>, %arg12: memref<64x256xf32, #tpu.memory_space<vmem>>) attributes {dimension_semantics = [#tpu.dimension_semantics<parallel>], iteration_bounds = array<i64: 1>, scalar_prefetch = 0 : i64, scratch_operands = 2 : i64, tpu.core_type = #tpu.core_type<tc>, window_params = [{transform_indices = @transform_0, window_bounds = array<i64: 1, 64, 32>}, {pipeline_mode = #tpu.pipeline_mode<synchronous>, transform_indices = @transform_1, window_bounds = array<i64: 32, 1024>}, {pipeline_mode = #tpu.pipeline_mode<synchronous>, transform_indices = @transform_2, window_bounds = array<i64: 1, 1024>}, {pipeline_mode = #tpu.pipeline_mode<synchronous>, transform_indices = @transform_3, window_bounds = array<i64: 128, 512>}, {pipeline_mode = #tpu.pipeline_mode<synchronous>, transform_indices = @transform_4, window_bounds = array<i64: 128, 512>}, {pipeline_mode = #tpu.pipeline_mode<synchronous>, transform_indices = @transform_5, window_bounds = array<i64: 256, 1>}, {pipeline_mode = #tpu.pipeline_mode<synchronous>, transform_indices = @transform_6, window_bounds = array<i64: 1, 1>}, {pipeline_mode = #tpu.pipeline_mode<synchronous>, transform_indices = @transform_7, window_bounds = array<i64: 256, 128>}, {pipeline_mode = #tpu.pipeline_mode<synchronous>, transform_indices = @transform_8, window_bounds = array<i64: 1, 128>}, {transform_indices = @transform_9, window_bounds = array<i64: 1, 64, 128>}]} {
    %c0 = arith.constant 0 : index
    %c0_0 = arith.constant 0 : index
    %c0_1 = arith.constant 0 : index
    %0 = vector.load %arg1[%c0, %c0_0, %c0_1] : memref<1x64x32xbf16, #tpu.memory_space<vmem>>, vector<1x64x32xbf16>
    %1 = vector.shape_cast %0 : vector<1x64x32xbf16> to vector<64x32xbf16>
    %c0_2 = arith.constant 0 : index
    %c0_3 = arith.constant 0 : index
    %2 = vector.load %arg2[%c0_2, %c0_3] : memref<32x1024xbf16, #tpu.memory_space<vmem>>, vector<32x1024xbf16>
    %cst = arith.constant dense<0.000000e+00> : vector<64x1024xf32>
    %3 = tpu.matmul %1, %2, %cst {dimension_numbers = #tpu.dot_dimension_numbers<[1], [0], [0], [1], [0, 0, 1, 1], [], []>} : vector<64x32xbf16>, vector<32x1024xbf16>, vector<64x1024xf32> -> vector<64x1024xf32>
    %c0_4 = arith.constant 0 : index
    %c0_5 = arith.constant 0 : index
    %4 = vector.load %arg3[%c0_4, %c0_5] : memref<1x1024xf32, #tpu.memory_space<vmem>>, vector<1x1024xf32>
    %5 = vector.broadcast %4 : vector<1x1024xf32> to vector<64x1024xf32>
    %6 = arith.addf %3, %5 : vector<64x1024xf32>
    %c0_6 = arith.constant 0 : index
    %c0_7 = arith.constant 0 : index
    %7 = vector.load %arg11[%c0_6, %c0_7] : memref<64x1024xf32, #tpu.memory_space<vmem>>, vector<64x1024xf32>
    tpu.vector_store %arg11[%c0_6, %c0_7], %6 {strides = array<i32>} : memref<64x1024xf32, #tpu.memory_space<vmem>>, vector<64x1024xf32>,
    %cst_8 = arith.constant 0.000000e+00 : f32
    %8 = vector.broadcast %cst_8 : f32 to vector<8x128xf32>
    %c0_i32 = arith.constant 0 : i32
    %c8_i32 = arith.constant 8 : i32
    %9 = arith.muli %c0_i32, %c8_i32 : i32
    %10 = tpu.assume_multiple %9, 8 : i32
    %c7_i32 = arith.constant 7 : i32
    %11 = arith.subi %c7_i32, %c0_i32 : i32
    %c8_i32_9 = arith.constant 8 : i32
    %12 = arith.muli %11, %c8_i32_9 : i32
    %13 = tpu.assume_multiple %12, 8 : i32
    %14 = arith.index_cast %10 : i32 to index
    %c0_10 = arith.constant 0 : index
    %15 = vector.load %arg11[%14, %c0_10] : memref<64x1024xf32, #tpu.memory_space<vmem>>, vector<8x512xf32>
    %16 = arith.index_cast %13 : i32 to index
    %c512 = arith.constant 512 : index
    %17 = vector.load %arg11[%16, %c512] : memref<64x1024xf32, #tpu.memory_space<vmem>>, vector<8x512xf32>
    %18 = arith.truncf %8 : vector<8x128xf32> to vector<8x128xbf16>
    %c0_11 = arith.constant 0 : index
    %c0_12 = arith.constant 0 : index
    %19 = vector.load %arg4[%c0_11, %c0_12] : memref<128x512xbf16, #tpu.memory_space<vmem>>, vector<128x512xbf16>
    %cst_13 = arith.constant dense<0.000000e+00> : vector<8x512xf32>
    %20 = tpu.matmul %18, %19, %cst_13 {dimension_numbers = #tpu.dot_dimension_numbers<[1], [0], [0], [1], [0, 0, 1, 1], [], []>} : vector<8x128xbf16>, vector<128x512xbf16>, vector<8x512xf32> -> vector<8x512xf32>
    %21 = arith.addf %15, %20 : vector<8x512xf32>
    %22 = vector.extract_strided_slice %21 {offsets = [0, 0], sizes = [8, 128], strides = [1, 1]} : vector<8x512xf32> to vector<8x128xf32>
    %23 = arith.negf %22 : vector<8x128xf32>
    %24 = math.exp %23 : vector<8x128xf32>
    %cst_14 = arith.constant 1.000000e+00 : f32
    %25 = vector.broadcast %cst_14 : f32 to vector<8x128xf32>
    %26 = arith.addf %25, %24 : vector<8x128xf32>
    %27 = arith.divf %25, %26 : vector<8x128xf32>
    %28 = vector.extract_strided_slice %21 {offsets = [0, 128], sizes = [8, 128], strides = [1, 1]} : vector<8x512xf32> to vector<8x128xf32>
    %29 = arith.negf %28 : vector<8x128xf32>
    %30 = math.exp %29 : vector<8x128xf32>
    %cst_15 = arith.constant 1.000000e+00 : f32
    %31 = vector.broadcast %cst_15 : f32 to vector<8x128xf32>
    %32 = arith.addf %31, %30 : vector<8x128xf32>
    %33 = arith.divf %31, %32 : vector<8x128xf32>
    %34 = vector.extract_strided_slice %21 {offsets = [0, 256], sizes = [8, 128], strides = [1, 1]} : vector<8x512xf32> to vector<8x128xf32>
    %35 = math.tanh %34 : vector<8x128xf32>
    %36 = vector.extract_strided_slice %21 {offsets = [0, 384], sizes = [8, 128], strides = [1, 1]} : vector<8x512xf32> to vector<8x128xf32>
    %37 = arith.negf %36 : vector<8x128xf32>
    %38 = math.exp %37 : vector<8x128xf32>
    %cst_16 = arith.constant 1.000000e+00 : f32
    %39 = vector.broadcast %cst_16 : f32 to vector<8x128xf32>
    %40 = arith.addf %39, %38 : vector<8x128xf32>
    %41 = arith.divf %39, %40 : vector<8x128xf32>
    %42 = arith.mulf %33, %8 : vector<8x128xf32>
    %43 = arith.mulf %27, %35 : vector<8x128xf32>
    %44 = arith.addf %42, %43 : vector<8x128xf32>
    %45 = math.tanh %44 : vector<8x128xf32>
    %46 = arith.mulf %41, %45 : vector<8x128xf32>
    %47 = arith.truncf %8 : vector<8x128xf32> to vector<8x128xbf16>
    %c0_17 = arith.constant 0 : index
    %c0_18 = arith.constant 0 : index
    %48 = vector.load %arg5[%c0_17, %c0_18] : memref<128x512xbf16, #tpu.memory_space<vmem>>, vector<128x512xbf16>
    %cst_19 = arith.constant dense<0.000000e+00> : vector<8x512xf32>
    %49 = tpu.matmul %47, %48, %cst_19 {dimension_numbers = #tpu.dot_dimension_numbers<[1], [0], [0], [1], [0, 0, 1, 1], [], []>} : vector<8x128xbf16>, vector<128x512xbf16>, vector<8x512xf32> -> vector<8x512xf32>
    %50 = arith.addf %17, %49 : vector<8x512xf32>
    %51 = vector.extract_strided_slice %50 {offsets = [0, 0], sizes = [8, 128], strides = [1, 1]} : vector<8x512xf32> to vector<8x128xf32>
    %52 = arith.negf %51 : vector<8x128xf32>
    %53 = math.exp %52 : vector<8x128xf32>
    %cst_20 = arith.constant 1.000000e+00 : f32
    %54 = vector.broadcast %cst_20 : f32 to vector<8x128xf32>
    %55 = arith.addf %54, %53 : vector<8x128xf32>
    %56 = arith.divf %54, %55 : vector<8x128xf32>
    %57 = vector.extract_strided_slice %50 {offsets = [0, 128], sizes = [8, 128], strides = [1, 1]} : vector<8x512xf32> to vector<8x128xf32>
    %58 = arith.negf %57 : vector<8x128xf32>
    %59 = math.exp %58 : vector<8x128xf32>
    %cst_21 = arith.constant 1.000000e+00 : f32
    %60 = vector.broadcast %cst_21 : f32 to vector<8x128xf32>
    %61 = arith.addf %60, %59 : vector<8x128xf32>
    %62 = arith.divf %60, %61 : vector<8x128xf32>
    %63 = vector.extract_strided_slice %50 {offsets = [0, 256], sizes = [8, 128], strides = [1, 1]} : vector<8x512xf32> to vector<8x128xf32>
    %64 = math.tanh %63 : vector<8x128xf32>
    %65 = vector.extract_strided_slice %50 {offsets = [0, 384], sizes = [8, 128], strides = [1, 1]} : vector<8x512xf32> to vector<8x128xf32>
    %66 = arith.negf %65 : vector<8x128xf32>
    %67 = math.exp %66 : vector<8x128xf32>
    %cst_22 = arith.constant 1.000000e+00 : f32
    %68 = vector.broadcast %cst_22 : f32 to vector<8x128xf32>
    %69 = arith.addf %68, %67 : vector<8x128xf32>
    %70 = arith.divf %68, %69 : vector<8x128xf32>
    %71 = arith.mulf %62, %8 : vector<8x128xf32>
    %72 = arith.mulf %56, %64 : vector<8x128xf32>
    %73 = arith.addf %71, %72 : vector<8x128xf32>
    %74 = math.tanh %73 : vector<8x128xf32>
    %75 = arith.mulf %70, %74 : vector<8x128xf32>
    %76 = arith.index_cast %10 : i32 to index
    %c0_23 = arith.constant 0 : index
    %77 = vector.load %arg12[%76, %c0_23] : memref<64x256xf32, #tpu.memory_space<vmem>>, vector<8x128xf32>
    tpu.vector_store %arg12[%76, %c0_23], %46 {strides = array<i32>} : memref<64x256xf32, #tpu.memory_space<vmem>>, vector<8x128xf32>,
    %78 = arith.index_cast %13 : i32 to index
    %c128 = arith.constant 128 : index
    %79 = vector.load %arg12[%78, %c128] : memref<64x256xf32, #tpu.memory_space<vmem>>, vector<8x128xf32>
    tpu.vector_store %arg12[%78, %c128], %75 {strides = array<i32>} : memref<64x256xf32, #tpu.memory_space<vmem>>, vector<8x128xf32>,
    %c1_i32 = arith.constant 1 : i32
    %c8_i32_24 = arith.constant 8 : i32
    %80 = arith.muli %c1_i32, %c8_i32_24 : i32
    %81 = tpu.assume_multiple %80, 8 : i32
    %c7_i32_25 = arith.constant 7 : i32
    %82 = arith.subi %c7_i32_25, %c1_i32 : i32
    %c8_i32_26 = arith.constant 8 : i32
    %83 = arith.muli %82, %c8_i32_26 : i32
    %84 = tpu.assume_multiple %83, 8 : i32
    %85 = arith.index_cast %81 : i32 to index
    %c0_27 = arith.constant 0 : index
    %86 = vector.load %arg11[%85, %c0_27] : memref<64x1024xf32, #tpu.memory_space<vmem>>, vector<8x512xf32>
    %87 = arith.index_cast %84 : i32 to index
    %c512_28 = arith.constant 512 : index
    %88 = vector.load %arg11[%87, %c512_28] : memref<64x1024xf32, #tpu.memory_space<vmem>>, vector<8x512xf32>
    %89 = arith.truncf %46 : vector<8x128xf32> to vector<8x128xbf16>
    %c0_29 = arith.constant 0 : index
    %c0_30 = arith.constant 0 : index
    %90 = vector.load %arg4[%c0_29, %c0_30] : memref<128x512xbf16, #tpu.memory_space<vmem>>, vector<128x512xbf16>
    %cst_31 = arith.constant dense<0.000000e+00> : vector<8x512xf32>
    %91 = tpu.matmul %89, %90, %cst_31 {dimension_numbers = #tpu.dot_dimension_numbers<[1], [0], [0], [1], [0, 0, 1, 1], [], []>} : vector<8x128xbf16>, vector<128x512xbf16>, vector<8x512xf32> -> vector<8x512xf32>
    %92 = arith.addf %86, %91 : vector<8x512xf32>
    %93 = vector.extract_strided_slice %92 {offsets = [0, 0], sizes = [8, 128], strides = [1, 1]} : vector<8x512xf32> to vector<8x128xf32>
    %94 = arith.negf %93 : vector<8x128xf32>
    %95 = math.exp %94 : vector<8x128xf32>
    %cst_32 = arith.constant 1.000000e+00 : f32
    %96 = vector.broadcast %cst_32 : f32 to vector<8x128xf32>
    %97 = arith.addf %96, %95 : vector<8x128xf32>
    %98 = arith.divf %96, %97 : vector<8x128xf32>
    %99 = vector.extract_strided_slice %92 {offsets = [0, 128], sizes = [8, 128], strides = [1, 1]} : vector<8x512xf32> to vector<8x128xf32>
    %100 = arith.negf %99 : vector<8x128xf32>
    %101 = math.exp %100 : vector<8x128xf32>
    %cst_33 = arith.constant 1.000000e+00 : f32
    %102 = vector.broadcast %cst_33 : f32 to vector<8x128xf32>
    %103 = arith.addf %102, %101 : vector<8x128xf32>
    %104 = arith.divf %102, %103 : vector<8x128xf32>
    %105 = vector.extract_strided_slice %92 {offsets = [0, 256], sizes = [8, 128], strides = [1, 1]} : vector<8x512xf32> to vector<8x128xf32>
    %106 = math.tanh %105 : vector<8x128xf32>
    %107 = vector.extract_strided_slice %92 {offsets = [0, 384], sizes = [8, 128], strides = [1, 1]} : vector<8x512xf32> to vector<8x128xf32>
    %108 = arith.negf %107 : vector<8x128xf32>
    %109 = math.exp %108 : vector<8x128xf32>
    %cst_34 = arith.constant 1.000000e+00 : f32
    %110 = vector.broadcast %cst_34 : f32 to vector<8x128xf32>
    %111 = arith.addf %110, %109 : vector<8x128xf32>
    %112 = arith.divf %110, %111 : vector<8x128xf32>
    %113 = arith.mulf %104, %44 : vector<8x128xf32>
    %114 = arith.mulf %98, %106 : vector<8x128xf32>
    %115 = arith.addf %113, %114 : vector<8x128xf32>
    %116 = math.tanh %115 : vector<8x128xf32>
    %117 = arith.mulf %112, %116 : vector<8x128xf32>
    %118 = arith.truncf %75 : vector<8x128xf32> to vector<8x128xbf16>
    %c0_35 = arith.constant 0 : index
    %c0_36 = arith.constant 0 : index
    %119 = vector.load %arg5[%c0_35, %c0_36] : memref<128x512xbf16, #tpu.memory_space<vmem>>, vector<128x512xbf16>
    %cst_37 = arith.constant dense<0.000000e+00> : vector<8x512xf32>
    %120 = tpu.matmul %118, %119, %cst_37 {dimension_numbers = #tpu.dot_dimension_numbers<[1], [0], [0], [1], [0, 0, 1, 1], [], []>} : vector<8x128xbf16>, vector<128x512xbf16>, vector<8x512xf32> -> vector<8x512xf32>
    %121 = arith.addf %88, %120 : vector<8x512xf32>
    %122 = vector.extract_strided_slice %121 {offsets = [0, 0], sizes = [8, 128], strides = [1, 1]} : vector<8x512xf32> to vector<8x128xf32>
    %123 = arith.negf %122 : vector<8x128xf32>
    %124 = math.exp %123 : vector<8x128xf32>
    %cst_38 = arith.constant 1.000000e+00 : f32
    %125 = vector.broadcast %cst_38 : f32 to vector<8x128xf32>
    %126 = arith.addf %125, %124 : vector<8x128xf32>
    %127 = arith.divf %125, %126 : vector<8x128xf32>
    %128 = vector.extract_strided_slice %121 {offsets = [0, 128], sizes = [8, 128], strides = [1, 1]} : vector<8x512xf32> to vector<8x128xf32>
    %129 = arith.negf %128 : vector<8x128xf32>
    %130 = math.exp %129 : vector<8x128xf32>
    %cst_39 = arith.constant 1.000000e+00 : f32
    %131 = vector.broadcast %cst_39 : f32 to vector<8x128xf32>
    %132 = arith.addf %131, %130 : vector<8x128xf32>
    %133 = arith.divf %131, %132 : vector<8x128xf32>
    %134 = vector.extract_strided_slice %121 {offsets = [0, 256], sizes = [8, 128], strides = [1, 1]} : vector<8x512xf32> to vector<8x128xf32>
    %135 = math.tanh %134 : vector<8x128xf32>
    %136 = vector.extract_strided_slice %121 {offsets = [0, 384], sizes = [8, 128], strides = [1, 1]} : vector<8x512xf32> to vector<8x128xf32>
    %137 = arith.negf %136 : vector<8x128xf32>
    %138 = math.exp %137 : vector<8x128xf32>
    %cst_40 = arith.constant 1.000000e+00 : f32
    %139 = vector.broadcast %cst_40 : f32 to vector<8x128xf32>
    %140 = arith.addf %139, %138 : vector<8x128xf32>
    %141 = arith.divf %139, %140 : vector<8x128xf32>
    %142 = arith.mulf %133, %73 : vector<8x128xf32>
    %143 = arith.mulf %127, %135 : vector<8x128xf32>
    %144 = arith.addf %142, %143 : vector<8x128xf32>
    %145 = math.tanh %144 : vector<8x128xf32>
    %146 = arith.mulf %141, %145 : vector<8x128xf32>
    %147 = arith.index_cast %81 : i32 to index
    %c0_41 = arith.constant 0 : index
    %148 = vector.load %arg12[%147, %c0_41] : memref<64x256xf32, #tpu.memory_space<vmem>>, vector<8x128xf32>
    tpu.vector_store %arg12[%147, %c0_41], %117 {strides = array<i32>} : memref<64x256xf32, #tpu.memory_space<vmem>>, vector<8x128xf32>,
    %149 = arith.index_cast %84 : i32 to index
    %c128_42 = arith.constant 128 : index
    %150 = vector.load %arg12[%149, %c128_42] : memref<64x256xf32, #tpu.memory_space<vmem>>, vector<8x128xf32>
    tpu.vector_store %arg12[%149, %c128_42], %146 {strides = array<i32>} : memref<64x256xf32, #tpu.memory_space<vmem>>, vector<8x128xf32>,
    %c2_i32 = arith.constant 2 : i32
    %c8_i32_43 = arith.constant 8 : i32
    %151 = arith.muli %c2_i32, %c8_i32_43 : i32
    %152 = tpu.assume_multiple %151, 8 : i32
    %c7_i32_44 = arith.constant 7 : i32
    %153 = arith.subi %c7_i32_44, %c2_i32 : i32
    %c8_i32_45 = arith.constant 8 : i32
    %154 = arith.muli %153, %c8_i32_45 : i32
    %155 = tpu.assume_multiple %154, 8 : i32
    %156 = arith.index_cast %152 : i32 to index
    %c0_46 = arith.constant 0 : index
    %157 = vector.load %arg11[%156, %c0_46] : memref<64x1024xf32, #tpu.memory_space<vmem>>, vector<8x512xf32>
    %158 = arith.index_cast %155 : i32 to index
    %c512_47 = arith.constant 512 : index
    %159 = vector.load %arg11[%158, %c512_47] : memref<64x1024xf32, #tpu.memory_space<vmem>>, vector<8x512xf32>
    %160 = arith.truncf %117 : vector<8x128xf32> to vector<8x128xbf16>
    %c0_48 = arith.constant 0 : index
    %c0_49 = arith.constant 0 : index
    %161 = vector.load %arg4[%c0_48, %c0_49] : memref<128x512xbf16, #tpu.memory_space<vmem>>, vector<128x512xbf16>
    %cst_50 = arith.constant dense<0.000000e+00> : vector<8x512xf32>
    %162 = tpu.matmul %160, %161, %cst_50 {dimension_numbers = #tpu.dot_dimension_numbers<[1], [0], [0], [1], [0, 0, 1, 1], [], []>} : vector<8x128xbf16>, vector<128x512xbf16>, vector<8x512xf32> -> vector<8x512xf32>
    %163 = arith.addf %157, %162 : vector<8x512xf32>
    %164 = vector.extract_strided_slice %163 {offsets = [0, 0], sizes = [8, 128], strides = [1, 1]} : vector<8x512xf32> to vector<8x128xf32>
    %165 = arith.negf %164 : vector<8x128xf32>
    %166 = math.exp %165 : vector<8x128xf32>
    %cst_51 = arith.constant 1.000000e+00 : f32
    %167 = vector.broadcast %cst_51 : f32 to vector<8x128xf32>
    %168 = arith.addf %167, %166 : vector<8x128xf32>
    %169 = arith.divf %167, %168 : vector<8x128xf32>
    %170 = vector.extract_strided_slice %163 {offsets = [0, 128], sizes = [8, 128], strides = [1, 1]} : vector<8x512xf32> to vector<8x128xf32>
    %171 = arith.negf %170 : vector<8x128xf32>
    %172 = math.exp %171 : vector<8x128xf32>
    %cst_52 = arith.constant 1.000000e+00 : f32
    %173 = vector.broadcast %cst_52 : f32 to vector<8x128xf32>
    %174 = arith.addf %173, %172 : vector<8x128xf32>
    %175 = arith.divf %173, %174 : vector<8x128xf32>
    %176 = vector.extract_strided_slice %163 {offsets = [0, 256], sizes = [8, 128], strides = [1, 1]} : vector<8x512xf32> to vector<8x128xf32>
    %177 = math.tanh %176 : vector<8x128xf32>
    %178 = vector.extract_strided_slice %163 {offsets = [0, 384], sizes = [8, 128], strides = [1, 1]} : vector<8x512xf32> to vector<8x128xf32>
    %179 = arith.negf %178 : vector<8x128xf32>
    %180 = math.exp %179 : vector<8x128xf32>
    %cst_53 = arith.constant 1.000000e+00 : f32
    %181 = vector.broadcast %cst_53 : f32 to vector<8x128xf32>
    %182 = arith.addf %181, %180 : vector<8x128xf32>
    %183 = arith.divf %181, %182 : vector<8x128xf32>
    %184 = arith.mulf %175, %115 : vector<8x128xf32>
    %185 = arith.mulf %169, %177 : vector<8x128xf32>
    %186 = arith.addf %184, %185 : vector<8x128xf32>
    %187 = math.tanh %186 : vector<8x128xf32>
    %188 = arith.mulf %183, %187 : vector<8x128xf32>
    %189 = arith.truncf %146 : vector<8x128xf32> to vector<8x128xbf16>
    %c0_54 = arith.constant 0 : index
    %c0_55 = arith.constant 0 : index
    %190 = vector.load %arg5[%c0_54, %c0_55] : memref<128x512xbf16, #tpu.memory_space<vmem>>, vector<128x512xbf16>
    %cst_56 = arith.constant dense<0.000000e+00> : vector<8x512xf32>
    %191 = tpu.matmul %189, %190, %cst_56 {dimension_numbers = #tpu.dot_dimension_numbers<[1], [0], [0], [1], [0, 0, 1, 1], [], []>} : vector<8x128xbf16>, vector<128x512xbf16>, vector<8x512xf32> -> vector<8x512xf32>
    %192 = arith.addf %159, %191 : vector<8x512xf32>
    %193 = vector.extract_strided_slice %192 {offsets = [0, 0], sizes = [8, 128], strides = [1, 1]} : vector<8x512xf32> to vector<8x128xf32>
    %194 = arith.negf %193 : vector<8x128xf32>
    %195 = math.exp %194 : vector<8x128xf32>
    %cst_57 = arith.constant 1.000000e+00 : f32
    %196 = vector.broadcast %cst_57 : f32 to vector<8x128xf32>
    %197 = arith.addf %196, %195 : vector<8x128xf32>
    %198 = arith.divf %196, %197 : vector<8x128xf32>
    %199 = vector.extract_strided_slice %192 {offsets = [0, 128], sizes = [8, 128], strides = [1, 1]} : vector<8x512xf32> to vector<8x128xf32>
    %200 = arith.negf %199 : vector<8x128xf32>
    %201 = math.exp %200 : vector<8x128xf32>
    %cst_58 = arith.constant 1.000000e+00 : f32
    %202 = vector.broadcast %cst_58 : f32 to vector<8x128xf32>
    %203 = arith.addf %202, %201 : vector<8x128xf32>
    %204 = arith.divf %202, %203 : vector<8x128xf32>
    %205 = vector.extract_strided_slice %192 {offsets = [0, 256], sizes = [8, 128], strides = [1, 1]} : vector<8x512xf32> to vector<8x128xf32>
    %206 = math.tanh %205 : vector<8x128xf32>
    %207 = vector.extract_strided_slice %192 {offsets = [0, 384], sizes = [8, 128], strides = [1, 1]} : vector<8x512xf32> to vector<8x128xf32>
    %208 = arith.negf %207 : vector<8x128xf32>
    %209 = math.exp %208 : vector<8x128xf32>
    %cst_59 = arith.constant 1.000000e+00 : f32
    %210 = vector.broadcast %cst_59 : f32 to vector<8x128xf32>
    %211 = arith.addf %210, %209 : vector<8x128xf32>
    %212 = arith.divf %210, %211 : vector<8x128xf32>
    %213 = arith.mulf %204, %144 : vector<8x128xf32>
    %214 = arith.mulf %198, %206 : vector<8x128xf32>
    %215 = arith.addf %213, %214 : vector<8x128xf32>
    %216 = math.tanh %215 : vector<8x128xf32>
    %217 = arith.mulf %212, %216 : vector<8x128xf32>
    %218 = arith.index_cast %152 : i32 to index
    %c0_60 = arith.constant 0 : index
    %219 = vector.load %arg12[%218, %c0_60] : memref<64x256xf32, #tpu.memory_space<vmem>>, vector<8x128xf32>
    tpu.vector_store %arg12[%218, %c0_60], %188 {strides = array<i32>} : memref<64x256xf32, #tpu.memory_space<vmem>>, vector<8x128xf32>,
    %220 = arith.index_cast %155 : i32 to index
    %c128_61 = arith.constant 128 : index
    %221 = vector.load %arg12[%220, %c128_61] : memref<64x256xf32, #tpu.memory_space<vmem>>, vector<8x128xf32>
    tpu.vector_store %arg12[%220, %c128_61], %217 {strides = array<i32>} : memref<64x256xf32, #tpu.memory_space<vmem>>, vector<8x128xf32>,
    %c3_i32 = arith.constant 3 : i32
    %c8_i32_62 = arith.constant 8 : i32
    %222 = arith.muli %c3_i32, %c8_i32_62 : i32
    %223 = tpu.assume_multiple %222, 8 : i32
    %c7_i32_63 = arith.constant 7 : i32
    %224 = arith.subi %c7_i32_63, %c3_i32 : i32
    %c8_i32_64 = arith.constant 8 : i32
    %225 = arith.muli %224, %c8_i32_64 : i32
    %226 = tpu.assume_multiple %225, 8 : i32
    %227 = arith.index_cast %223 : i32 to index
    %c0_65 = arith.constant 0 : index
    %228 = vector.load %arg11[%227, %c0_65] : memref<64x1024xf32, #tpu.memory_space<vmem>>, vector<8x512xf32>
    %229 = arith.index_cast %226 : i32 to index
    %c512_66 = arith.constant 512 : index
    %230 = vector.load %arg11[%229, %c512_66] : memref<64x1024xf32, #tpu.memory_space<vmem>>, vector<8x512xf32>
    %231 = arith.truncf %188 : vector<8x128xf32> to vector<8x128xbf16>
    %c0_67 = arith.constant 0 : index
    %c0_68 = arith.constant 0 : index
    %232 = vector.load %arg4[%c0_67, %c0_68] : memref<128x512xbf16, #tpu.memory_space<vmem>>, vector<128x512xbf16>
    %cst_69 = arith.constant dense<0.000000e+00> : vector<8x512xf32>
    %233 = tpu.matmul %231, %232, %cst_69 {dimension_numbers = #tpu.dot_dimension_numbers<[1], [0], [0], [1], [0, 0, 1, 1], [], []>} : vector<8x128xbf16>, vector<128x512xbf16>, vector<8x512xf32> -> vector<8x512xf32>
    %234 = arith.addf %228, %233 : vector<8x512xf32>
    %235 = vector.extract_strided_slice %234 {offsets = [0, 0], sizes = [8, 128], strides = [1, 1]} : vector<8x512xf32> to vector<8x128xf32>
    %236 = arith.negf %235 : vector<8x128xf32>
    %237 = math.exp %236 : vector<8x128xf32>
    %cst_70 = arith.constant 1.000000e+00 : f32
    %238 = vector.broadcast %cst_70 : f32 to vector<8x128xf32>
    %239 = arith.addf %238, %237 : vector<8x128xf32>
    %240 = arith.divf %238, %239 : vector<8x128xf32>
    %241 = vector.extract_strided_slice %234 {offsets = [0, 128], sizes = [8, 128], strides = [1, 1]} : vector<8x512xf32> to vector<8x128xf32>
    %242 = arith.negf %241 : vector<8x128xf32>
    %243 = math.exp %242 : vector<8x128xf32>
    %cst_71 = arith.constant 1.000000e+00 : f32
    %244 = vector.broadcast %cst_71 : f32 to vector<8x128xf32>
    %245 = arith.addf %244, %243 : vector<8x128xf32>
    %246 = arith.divf %244, %245 : vector<8x128xf32>
    %247 = vector.extract_strided_slice %234 {offsets = [0, 256], sizes = [8, 128], strides = [1, 1]} : vector<8x512xf32> to vector<8x128xf32>
    %248 = math.tanh %247 : vector<8x128xf32>
    %249 = vector.extract_strided_slice %234 {offsets = [0, 384], sizes = [8, 128], strides = [1, 1]} : vector<8x512xf32> to vector<8x128xf32>
    %250 = arith.negf %249 : vector<8x128xf32>
    %251 = math.exp %250 : vector<8x128xf32>
    %cst_72 = arith.constant 1.000000e+00 : f32
    %252 = vector.broadcast %cst_72 : f32 to vector<8x128xf32>
    %253 = arith.addf %252, %251 : vector<8x128xf32>
    %254 = arith.divf %252, %253 : vector<8x128xf32>
    %255 = arith.mulf %246, %186 : vector<8x128xf32>
    %256 = arith.mulf %240, %248 : vector<8x128xf32>
    %257 = arith.addf %255, %256 : vector<8x128xf32>
    %258 = math.tanh %257 : vector<8x128xf32>
    %259 = arith.mulf %254, %258 : vector<8x128xf32>
    %260 = arith.truncf %217 : vector<8x128xf32> to vector<8x128xbf16>
    %c0_73 = arith.constant 0 : index
    %c0_74 = arith.constant 0 : index
    %261 = vector.load %arg5[%c0_73, %c0_74] : memref<128x512xbf16, #tpu.memory_space<vmem>>, vector<128x512xbf16>
    %cst_75 = arith.constant dense<0.000000e+00> : vector<8x512xf32>
    %262 = tpu.matmul %260, %261, %cst_75 {dimension_numbers = #tpu.dot_dimension_numbers<[1], [0], [0], [1], [0, 0, 1, 1], [], []>} : vector<8x128xbf16>, vector<128x512xbf16>, vector<8x512xf32> -> vector<8x512xf32>
    %263 = arith.addf %230, %262 : vector<8x512xf32>
    %264 = vector.extract_strided_slice %263 {offsets = [0, 0], sizes = [8, 128], strides = [1, 1]} : vector<8x512xf32> to vector<8x128xf32>
    %265 = arith.negf %264 : vector<8x128xf32>
    %266 = math.exp %265 : vector<8x128xf32>
    %cst_76 = arith.constant 1.000000e+00 : f32
    %267 = vector.broadcast %cst_76 : f32 to vector<8x128xf32>
    %268 = arith.addf %267, %266 : vector<8x128xf32>
    %269 = arith.divf %267, %268 : vector<8x128xf32>
    %270 = vector.extract_strided_slice %263 {offsets = [0, 128], sizes = [8, 128], strides = [1, 1]} : vector<8x512xf32> to vector<8x128xf32>
    %271 = arith.negf %270 : vector<8x128xf32>
    %272 = math.exp %271 : vector<8x128xf32>
    %cst_77 = arith.constant 1.000000e+00 : f32
    %273 = vector.broadcast %cst_77 : f32 to vector<8x128xf32>
    %274 = arith.addf %273, %272 : vector<8x128xf32>
    %275 = arith.divf %273, %274 : vector<8x128xf32>
    %276 = vector.extract_strided_slice %263 {offsets = [0, 256], sizes = [8, 128], strides = [1, 1]} : vector<8x512xf32> to vector<8x128xf32>
    %277 = math.tanh %276 : vector<8x128xf32>
    %278 = vector.extract_strided_slice %263 {offsets = [0, 384], sizes = [8, 128], strides = [1, 1]} : vector<8x512xf32> to vector<8x128xf32>
    %279 = arith.negf %278 : vector<8x128xf32>
    %280 = math.exp %279 : vector<8x128xf32>
    %cst_78 = arith.constant 1.000000e+00 : f32
    %281 = vector.broadcast %cst_78 : f32 to vector<8x128xf32>
    %282 = arith.addf %281, %280 : vector<8x128xf32>
    %283 = arith.divf %281, %282 : vector<8x128xf32>
    %284 = arith.mulf %275, %215 : vector<8x128xf32>
    %285 = arith.mulf %269, %277 : vector<8x128xf32>
    %286 = arith.addf %284, %285 : vector<8x128xf32>
    %287 = math.tanh %286 : vector<8x128xf32>
    %288 = arith.mulf %283, %287 : vector<8x128xf32>
    %289 = arith.index_cast %223 : i32 to index
    %c0_79 = arith.constant 0 : index
    %290 = vector.load %arg12[%289, %c0_79] : memref<64x256xf32, #tpu.memory_space<vmem>>, vector<8x128xf32>
    tpu.vector_store %arg12[%289, %c0_79], %259 {strides = array<i32>} : memref<64x256xf32, #tpu.memory_space<vmem>>, vector<8x128xf32>,
    %291 = arith.index_cast %226 : i32 to index
    %c128_80 = arith.constant 128 : index
    %292 = vector.load %arg12[%291, %c128_80] : memref<64x256xf32, #tpu.memory_space<vmem>>, vector<8x128xf32>
    tpu.vector_store %arg12[%291, %c128_80], %288 {strides = array<i32>} : memref<64x256xf32, #tpu.memory_space<vmem>>, vector<8x128xf32>,
    %c4_i32 = arith.constant 4 : i32
    %c8_i32_81 = arith.constant 8 : i32
    %293 = arith.muli %c4_i32, %c8_i32_81 : i32
    %294 = tpu.assume_multiple %293, 8 : i32
    %c7_i32_82 = arith.constant 7 : i32
    %295 = arith.subi %c7_i32_82, %c4_i32 : i32
    %c8_i32_83 = arith.constant 8 : i32
    %296 = arith.muli %295, %c8_i32_83 : i32
    %297 = tpu.assume_multiple %296, 8 : i32
    %298 = arith.index_cast %294 : i32 to index
    %c0_84 = arith.constant 0 : index
    %299 = vector.load %arg11[%298, %c0_84] : memref<64x1024xf32, #tpu.memory_space<vmem>>, vector<8x512xf32>
    %300 = arith.index_cast %297 : i32 to index
    %c512_85 = arith.constant 512 : index
    %301 = vector.load %arg11[%300, %c512_85] : memref<64x1024xf32, #tpu.memory_space<vmem>>, vector<8x512xf32>
    %302 = arith.truncf %259 : vector<8x128xf32> to vector<8x128xbf16>
    %c0_86 = arith.constant 0 : index
    %c0_87 = arith.constant 0 : index
    %303 = vector.load %arg4[%c0_86, %c0_87] : memref<128x512xbf16, #tpu.memory_space<vmem>>, vector<128x512xbf16>
    %cst_88 = arith.constant dense<0.000000e+00> : vector<8x512xf32>
    %304 = tpu.matmul %302, %303, %cst_88 {dimension_numbers = #tpu.dot_dimension_numbers<[1], [0], [0], [1], [0, 0, 1, 1], [], []>} : vector<8x128xbf16>, vector<128x512xbf16>, vector<8x512xf32> -> vector<8x512xf32>
    %305 = arith.addf %299, %304 : vector<8x512xf32>
    %306 = vector.extract_strided_slice %305 {offsets = [0, 0], sizes = [8, 128], strides = [1, 1]} : vector<8x512xf32> to vector<8x128xf32>
    %307 = arith.negf %306 : vector<8x128xf32>
    %308 = math.exp %307 : vector<8x128xf32>
    %cst_89 = arith.constant 1.000000e+00 : f32
    %309 = vector.broadcast %cst_89 : f32 to vector<8x128xf32>
    %310 = arith.addf %309, %308 : vector<8x128xf32>
    %311 = arith.divf %309, %310 : vector<8x128xf32>
    %312 = vector.extract_strided_slice %305 {offsets = [0, 128], sizes = [8, 128], strides = [1, 1]} : vector<8x512xf32> to vector<8x128xf32>
    %313 = arith.negf %312 : vector<8x128xf32>
    %314 = math.exp %313 : vector<8x128xf32>
    %cst_90 = arith.constant 1.000000e+00 : f32
    %315 = vector.broadcast %cst_90 : f32 to vector<8x128xf32>
    %316 = arith.addf %315, %314 : vector<8x128xf32>
    %317 = arith.divf %315, %316 : vector<8x128xf32>
    %318 = vector.extract_strided_slice %305 {offsets = [0, 256], sizes = [8, 128], strides = [1, 1]} : vector<8x512xf32> to vector<8x128xf32>
    %319 = math.tanh %318 : vector<8x128xf32>
    %320 = vector.extract_strided_slice %305 {offsets = [0, 384], sizes = [8, 128], strides = [1, 1]} : vector<8x512xf32> to vector<8x128xf32>
    %321 = arith.negf %320 : vector<8x128xf32>
    %322 = math.exp %321 : vector<8x128xf32>
    %cst_91 = arith.constant 1.000000e+00 : f32
    %323 = vector.broadcast %cst_91 : f32 to vector<8x128xf32>
    %324 = arith.addf %323, %322 : vector<8x128xf32>
    %325 = arith.divf %323, %324 : vector<8x128xf32>
    %326 = arith.mulf %317, %257 : vector<8x128xf32>
    %327 = arith.mulf %311, %319 : vector<8x128xf32>
    %328 = arith.addf %326, %327 : vector<8x128xf32>
    %329 = math.tanh %328 : vector<8x128xf32>
    %330 = arith.mulf %325, %329 : vector<8x128xf32>
    %331 = arith.truncf %288 : vector<8x128xf32> to vector<8x128xbf16>
    %c0_92 = arith.constant 0 : index
    %c0_93 = arith.constant 0 : index
    %332 = vector.load %arg5[%c0_92, %c0_93] : memref<128x512xbf16, #tpu.memory_space<vmem>>, vector<128x512xbf16>
    %cst_94 = arith.constant dense<0.000000e+00> : vector<8x512xf32>
    %333 = tpu.matmul %331, %332, %cst_94 {dimension_numbers = #tpu.dot_dimension_numbers<[1], [0], [0], [1], [0, 0, 1, 1], [], []>} : vector<8x128xbf16>, vector<128x512xbf16>, vector<8x512xf32> -> vector<8x512xf32>
    %334 = arith.addf %301, %333 : vector<8x512xf32>
    %335 = vector.extract_strided_slice %334 {offsets = [0, 0], sizes = [8, 128], strides = [1, 1]} : vector<8x512xf32> to vector<8x128xf32>
    %336 = arith.negf %335 : vector<8x128xf32>
    %337 = math.exp %336 : vector<8x128xf32>
    %cst_95 = arith.constant 1.000000e+00 : f32
    %338 = vector.broadcast %cst_95 : f32 to vector<8x128xf32>
    %339 = arith.addf %338, %337 : vector<8x128xf32>
    %340 = arith.divf %338, %339 : vector<8x128xf32>
    %341 = vector.extract_strided_slice %334 {offsets = [0, 128], sizes = [8, 128], strides = [1, 1]} : vector<8x512xf32> to vector<8x128xf32>
    %342 = arith.negf %341 : vector<8x128xf32>
    %343 = math.exp %342 : vector<8x128xf32>
    %cst_96 = arith.constant 1.000000e+00 : f32
    %344 = vector.broadcast %cst_96 : f32 to vector<8x128xf32>
    %345 = arith.addf %344, %343 : vector<8x128xf32>
    %346 = arith.divf %344, %345 : vector<8x128xf32>
    %347 = vector.extract_strided_slice %334 {offsets = [0, 256], sizes = [8, 128], strides = [1, 1]} : vector<8x512xf32> to vector<8x128xf32>
    %348 = math.tanh %347 : vector<8x128xf32>
    %349 = vector.extract_strided_slice %334 {offsets = [0, 384], sizes = [8, 128], strides = [1, 1]} : vector<8x512xf32> to vector<8x128xf32>
    %350 = arith.negf %349 : vector<8x128xf32>
    %351 = math.exp %350 : vector<8x128xf32>
    %cst_97 = arith.constant 1.000000e+00 : f32
    %352 = vector.broadcast %cst_97 : f32 to vector<8x128xf32>
    %353 = arith.addf %352, %351 : vector<8x128xf32>
    %354 = arith.divf %352, %353 : vector<8x128xf32>
    %355 = arith.mulf %346, %286 : vector<8x128xf32>
    %356 = arith.mulf %340, %348 : vector<8x128xf32>
    %357 = arith.addf %355, %356 : vector<8x128xf32>
    %358 = math.tanh %357 : vector<8x128xf32>
    %359 = arith.mulf %354, %358 : vector<8x128xf32>
    %360 = arith.index_cast %294 : i32 to index
    %c0_98 = arith.constant 0 : index
    %361 = vector.load %arg12[%360, %c0_98] : memref<64x256xf32, #tpu.memory_space<vmem>>, vector<8x128xf32>
    tpu.vector_store %arg12[%360, %c0_98], %330 {strides = array<i32>} : memref<64x256xf32, #tpu.memory_space<vmem>>, vector<8x128xf32>,
    %362 = arith.index_cast %297 : i32 to index
    %c128_99 = arith.constant 128 : index
    %363 = vector.load %arg12[%362, %c128_99] : memref<64x256xf32, #tpu.memory_space<vmem>>, vector<8x128xf32>
    tpu.vector_store %arg12[%362, %c128_99], %359 {strides = array<i32>} : memref<64x256xf32, #tpu.memory_space<vmem>>, vector<8x128xf32>,
    %c5_i32 = arith.constant 5 : i32
    %c8_i32_100 = arith.constant 8 : i32
    %364 = arith.muli %c5_i32, %c8_i32_100 : i32
    %365 = tpu.assume_multiple %364, 8 : i32
    %c7_i32_101 = arith.constant 7 : i32
    %366 = arith.subi %c7_i32_101, %c5_i32 : i32
    %c8_i32_102 = arith.constant 8 : i32
    %367 = arith.muli %366, %c8_i32_102 : i32
    %368 = tpu.assume_multiple %367, 8 : i32
    %369 = arith.index_cast %365 : i32 to index
    %c0_103 = arith.constant 0 : index
    %370 = vector.load %arg11[%369, %c0_103] : memref<64x1024xf32, #tpu.memory_space<vmem>>, vector<8x512xf32>
    %371 = arith.index_cast %368 : i32 to index
    %c512_104 = arith.constant 512 : index
    %372 = vector.load %arg11[%371, %c512_104] : memref<64x1024xf32, #tpu.memory_space<vmem>>, vector<8x512xf32>
    %373 = arith.truncf %330 : vector<8x128xf32> to vector<8x128xbf16>
    %c0_105 = arith.constant 0 : index
    %c0_106 = arith.constant 0 : index
    %374 = vector.load %arg4[%c0_105, %c0_106] : memref<128x512xbf16, #tpu.memory_space<vmem>>, vector<128x512xbf16>
    %cst_107 = arith.constant dense<0.000000e+00> : vector<8x512xf32>
    %375 = tpu.matmul %373, %374, %cst_107 {dimension_numbers = #tpu.dot_dimension_numbers<[1], [0], [0], [1], [0, 0, 1, 1], [], []>} : vector<8x128xbf16>, vector<128x512xbf16>, vector<8x512xf32> -> vector<8x512xf32>
    %376 = arith.addf %370, %375 : vector<8x512xf32>
    %377 = vector.extract_strided_slice %376 {offsets = [0, 0], sizes = [8, 128], strides = [1, 1]} : vector<8x512xf32> to vector<8x128xf32>
    %378 = arith.negf %377 : vector<8x128xf32>
    %379 = math.exp %378 : vector<8x128xf32>
    %cst_108 = arith.constant 1.000000e+00 : f32
    %380 = vector.broadcast %cst_108 : f32 to vector<8x128xf32>
    %381 = arith.addf %380, %379 : vector<8x128xf32>
    %382 = arith.divf %380, %381 : vector<8x128xf32>
    %383 = vector.extract_strided_slice %376 {offsets = [0, 128], sizes = [8, 128], strides = [1, 1]} : vector<8x512xf32> to vector<8x128xf32>
    %384 = arith.negf %383 : vector<8x128xf32>
    %385 = math.exp %384 : vector<8x128xf32>
    %cst_109 = arith.constant 1.000000e+00 : f32
    %386 = vector.broadcast %cst_109 : f32 to vector<8x128xf32>
    %387 = arith.addf %386, %385 : vector<8x128xf32>
    %388 = arith.divf %386, %387 : vector<8x128xf32>
    %389 = vector.extract_strided_slice %376 {offsets = [0, 256], sizes = [8, 128], strides = [1, 1]} : vector<8x512xf32> to vector<8x128xf32>
    %390 = math.tanh %389 : vector<8x128xf32>
    %391 = vector.extract_strided_slice %376 {offsets = [0, 384], sizes = [8, 128], strides = [1, 1]} : vector<8x512xf32> to vector<8x128xf32>
    %392 = arith.negf %391 : vector<8x128xf32>
    %393 = math.exp %392 : vector<8x128xf32>
    %cst_110 = arith.constant 1.000000e+00 : f32
    %394 = vector.broadcast %cst_110 : f32 to vector<8x128xf32>
    %395 = arith.addf %394, %393 : vector<8x128xf32>
    %396 = arith.divf %394, %395 : vector<8x128xf32>
    %397 = arith.mulf %388, %328 : vector<8x128xf32>
    %398 = arith.mulf %382, %390 : vector<8x128xf32>
    %399 = arith.addf %397, %398 : vector<8x128xf32>
    %400 = math.tanh %399 : vector<8x128xf32>
    %401 = arith.mulf %396, %400 : vector<8x128xf32>
    %402 = arith.truncf %359 : vector<8x128xf32> to vector<8x128xbf16>
    %c0_111 = arith.constant 0 : index
    %c0_112 = arith.constant 0 : index
    %403 = vector.load %arg5[%c0_111, %c0_112] : memref<128x512xbf16, #tpu.memory_space<vmem>>, vector<128x512xbf16>
    %cst_113 = arith.constant dense<0.000000e+00> : vector<8x512xf32>
    %404 = tpu.matmul %402, %403, %cst_113 {dimension_numbers = #tpu.dot_dimension_numbers<[1], [0], [0], [1], [0, 0, 1, 1], [], []>} : vector<8x128xbf16>, vector<128x512xbf16>, vector<8x512xf32> -> vector<8x512xf32>
    %405 = arith.addf %372, %404 : vector<8x512xf32>
    %406 = vector.extract_strided_slice %405 {offsets = [0, 0], sizes = [8, 128], strides = [1, 1]} : vector<8x512xf32> to vector<8x128xf32>
    %407 = arith.negf %406 : vector<8x128xf32>
    %408 = math.exp %407 : vector<8x128xf32>
    %cst_114 = arith.constant 1.000000e+00 : f32
    %409 = vector.broadcast %cst_114 : f32 to vector<8x128xf32>
    %410 = arith.addf %409, %408 : vector<8x128xf32>
    %411 = arith.divf %409, %410 : vector<8x128xf32>
    %412 = vector.extract_strided_slice %405 {offsets = [0, 128], sizes = [8, 128], strides = [1, 1]} : vector<8x512xf32> to vector<8x128xf32>
    %413 = arith.negf %412 : vector<8x128xf32>
    %414 = math.exp %413 : vector<8x128xf32>
    %cst_115 = arith.constant 1.000000e+00 : f32
    %415 = vector.broadcast %cst_115 : f32 to vector<8x128xf32>
    %416 = arith.addf %415, %414 : vector<8x128xf32>
    %417 = arith.divf %415, %416 : vector<8x128xf32>
    %418 = vector.extract_strided_slice %405 {offsets = [0, 256], sizes = [8, 128], strides = [1, 1]} : vector<8x512xf32> to vector<8x128xf32>
    %419 = math.tanh %418 : vector<8x128xf32>
    %420 = vector.extract_strided_slice %405 {offsets = [0, 384], sizes = [8, 128], strides = [1, 1]} : vector<8x512xf32> to vector<8x128xf32>
    %421 = arith.negf %420 : vector<8x128xf32>
    %422 = math.exp %421 : vector<8x128xf32>
    %cst_116 = arith.constant 1.000000e+00 : f32
    %423 = vector.broadcast %cst_116 : f32 to vector<8x128xf32>
    %424 = arith.addf %423, %422 : vector<8x128xf32>
    %425 = arith.divf %423, %424 : vector<8x128xf32>
    %426 = arith.mulf %417, %357 : vector<8x128xf32>
    %427 = arith.mulf %411, %419 : vector<8x128xf32>
    %428 = arith.addf %426, %427 : vector<8x128xf32>
    %429 = math.tanh %428 : vector<8x128xf32>
    %430 = arith.mulf %425, %429 : vector<8x128xf32>
    %431 = arith.index_cast %365 : i32 to index
    %c0_117 = arith.constant 0 : index
    %432 = vector.load %arg12[%431, %c0_117] : memref<64x256xf32, #tpu.memory_space<vmem>>, vector<8x128xf32>
    tpu.vector_store %arg12[%431, %c0_117], %401 {strides = array<i32>} : memref<64x256xf32, #tpu.memory_space<vmem>>, vector<8x128xf32>,
    %433 = arith.index_cast %368 : i32 to index
    %c128_118 = arith.constant 128 : index
    %434 = vector.load %arg12[%433, %c128_118] : memref<64x256xf32, #tpu.memory_space<vmem>>, vector<8x128xf32>
    tpu.vector_store %arg12[%433, %c128_118], %430 {strides = array<i32>} : memref<64x256xf32, #tpu.memory_space<vmem>>, vector<8x128xf32>,
    %c6_i32 = arith.constant 6 : i32
    %c8_i32_119 = arith.constant 8 : i32
    %435 = arith.muli %c6_i32, %c8_i32_119 : i32
    %436 = tpu.assume_multiple %435, 8 : i32
    %c7_i32_120 = arith.constant 7 : i32
    %437 = arith.subi %c7_i32_120, %c6_i32 : i32
    %c8_i32_121 = arith.constant 8 : i32
    %438 = arith.muli %437, %c8_i32_121 : i32
    %439 = tpu.assume_multiple %438, 8 : i32
    %440 = arith.index_cast %436 : i32 to index
    %c0_122 = arith.constant 0 : index
    %441 = vector.load %arg11[%440, %c0_122] : memref<64x1024xf32, #tpu.memory_space<vmem>>, vector<8x512xf32>
    %442 = arith.index_cast %439 : i32 to index
    %c512_123 = arith.constant 512 : index
    %443 = vector.load %arg11[%442, %c512_123] : memref<64x1024xf32, #tpu.memory_space<vmem>>, vector<8x512xf32>
    %444 = arith.truncf %401 : vector<8x128xf32> to vector<8x128xbf16>
    %c0_124 = arith.constant 0 : index
    %c0_125 = arith.constant 0 : index
    %445 = vector.load %arg4[%c0_124, %c0_125] : memref<128x512xbf16, #tpu.memory_space<vmem>>, vector<128x512xbf16>
    %cst_126 = arith.constant dense<0.000000e+00> : vector<8x512xf32>
    %446 = tpu.matmul %444, %445, %cst_126 {dimension_numbers = #tpu.dot_dimension_numbers<[1], [0], [0], [1], [0, 0, 1, 1], [], []>} : vector<8x128xbf16>, vector<128x512xbf16>, vector<8x512xf32> -> vector<8x512xf32>
    %447 = arith.addf %441, %446 : vector<8x512xf32>
    %448 = vector.extract_strided_slice %447 {offsets = [0, 0], sizes = [8, 128], strides = [1, 1]} : vector<8x512xf32> to vector<8x128xf32>
    %449 = arith.negf %448 : vector<8x128xf32>
    %450 = math.exp %449 : vector<8x128xf32>
    %cst_127 = arith.constant 1.000000e+00 : f32
    %451 = vector.broadcast %cst_127 : f32 to vector<8x128xf32>
    %452 = arith.addf %451, %450 : vector<8x128xf32>
    %453 = arith.divf %451, %452 : vector<8x128xf32>
    %454 = vector.extract_strided_slice %447 {offsets = [0, 128], sizes = [8, 128], strides = [1, 1]} : vector<8x512xf32> to vector<8x128xf32>
    %455 = arith.negf %454 : vector<8x128xf32>
    %456 = math.exp %455 : vector<8x128xf32>
    %cst_128 = arith.constant 1.000000e+00 : f32
    %457 = vector.broadcast %cst_128 : f32 to vector<8x128xf32>
    %458 = arith.addf %457, %456 : vector<8x128xf32>
    %459 = arith.divf %457, %458 : vector<8x128xf32>
    %460 = vector.extract_strided_slice %447 {offsets = [0, 256], sizes = [8, 128], strides = [1, 1]} : vector<8x512xf32> to vector<8x128xf32>
    %461 = math.tanh %460 : vector<8x128xf32>
    %462 = vector.extract_strided_slice %447 {offsets = [0, 384], sizes = [8, 128], strides = [1, 1]} : vector<8x512xf32> to vector<8x128xf32>
    %463 = arith.negf %462 : vector<8x128xf32>
    %464 = math.exp %463 : vector<8x128xf32>
    %cst_129 = arith.constant 1.000000e+00 : f32
    %465 = vector.broadcast %cst_129 : f32 to vector<8x128xf32>
    %466 = arith.addf %465, %464 : vector<8x128xf32>
    %467 = arith.divf %465, %466 : vector<8x128xf32>
    %468 = arith.mulf %459, %399 : vector<8x128xf32>
    %469 = arith.mulf %453, %461 : vector<8x128xf32>
    %470 = arith.addf %468, %469 : vector<8x128xf32>
    %471 = math.tanh %470 : vector<8x128xf32>
    %472 = arith.mulf %467, %471 : vector<8x128xf32>
    %473 = arith.truncf %430 : vector<8x128xf32> to vector<8x128xbf16>
    %c0_130 = arith.constant 0 : index
    %c0_131 = arith.constant 0 : index
    %474 = vector.load %arg5[%c0_130, %c0_131] : memref<128x512xbf16, #tpu.memory_space<vmem>>, vector<128x512xbf16>
    %cst_132 = arith.constant dense<0.000000e+00> : vector<8x512xf32>
    %475 = tpu.matmul %473, %474, %cst_132 {dimension_numbers = #tpu.dot_dimension_numbers<[1], [0], [0], [1], [0, 0, 1, 1], [], []>} : vector<8x128xbf16>, vector<128x512xbf16>, vector<8x512xf32> -> vector<8x512xf32>
    %476 = arith.addf %443, %475 : vector<8x512xf32>
    %477 = vector.extract_strided_slice %476 {offsets = [0, 0], sizes = [8, 128], strides = [1, 1]} : vector<8x512xf32> to vector<8x128xf32>
    %478 = arith.negf %477 : vector<8x128xf32>
    %479 = math.exp %478 : vector<8x128xf32>
    %cst_133 = arith.constant 1.000000e+00 : f32
    %480 = vector.broadcast %cst_133 : f32 to vector<8x128xf32>
    %481 = arith.addf %480, %479 : vector<8x128xf32>
    %482 = arith.divf %480, %481 : vector<8x128xf32>
    %483 = vector.extract_strided_slice %476 {offsets = [0, 128], sizes = [8, 128], strides = [1, 1]} : vector<8x512xf32> to vector<8x128xf32>
    %484 = arith.negf %483 : vector<8x128xf32>
    %485 = math.exp %484 : vector<8x128xf32>
    %cst_134 = arith.constant 1.000000e+00 : f32
    %486 = vector.broadcast %cst_134 : f32 to vector<8x128xf32>
    %487 = arith.addf %486, %485 : vector<8x128xf32>
    %488 = arith.divf %486, %487 : vector<8x128xf32>
    %489 = vector.extract_strided_slice %476 {offsets = [0, 256], sizes = [8, 128], strides = [1, 1]} : vector<8x512xf32> to vector<8x128xf32>
    %490 = math.tanh %489 : vector<8x128xf32>
    %491 = vector.extract_strided_slice %476 {offsets = [0, 384], sizes = [8, 128], strides = [1, 1]} : vector<8x512xf32> to vector<8x128xf32>
    %492 = arith.negf %491 : vector<8x128xf32>
    %493 = math.exp %492 : vector<8x128xf32>
    %cst_135 = arith.constant 1.000000e+00 : f32
    %494 = vector.broadcast %cst_135 : f32 to vector<8x128xf32>
    %495 = arith.addf %494, %493 : vector<8x128xf32>
    %496 = arith.divf %494, %495 : vector<8x128xf32>
    %497 = arith.mulf %488, %428 : vector<8x128xf32>
    %498 = arith.mulf %482, %490 : vector<8x128xf32>
    %499 = arith.addf %497, %498 : vector<8x128xf32>
    %500 = math.tanh %499 : vector<8x128xf32>
    %501 = arith.mulf %496, %500 : vector<8x128xf32>
    %502 = arith.index_cast %436 : i32 to index
    %c0_136 = arith.constant 0 : index
    %503 = vector.load %arg12[%502, %c0_136] : memref<64x256xf32, #tpu.memory_space<vmem>>, vector<8x128xf32>
    tpu.vector_store %arg12[%502, %c0_136], %472 {strides = array<i32>} : memref<64x256xf32, #tpu.memory_space<vmem>>, vector<8x128xf32>,
    %504 = arith.index_cast %439 : i32 to index
    %c128_137 = arith.constant 128 : index
    %505 = vector.load %arg12[%504, %c128_137] : memref<64x256xf32, #tpu.memory_space<vmem>>, vector<8x128xf32>
    tpu.vector_store %arg12[%504, %c128_137], %501 {strides = array<i32>} : memref<64x256xf32, #tpu.memory_space<vmem>>, vector<8x128xf32>,
    %c7_i32_138 = arith.constant 7 : i32
    %c8_i32_139 = arith.constant 8 : i32
    %506 = arith.muli %c7_i32_138, %c8_i32_139 : i32
    %507 = tpu.assume_multiple %506, 8 : i32
    %c7_i32_140 = arith.constant 7 : i32
    %508 = arith.subi %c7_i32_140, %c7_i32_138 : i32
    %c8_i32_141 = arith.constant 8 : i32
    %509 = arith.muli %508, %c8_i32_141 : i32
    %510 = tpu.assume_multiple %509, 8 : i32
    %511 = arith.index_cast %507 : i32 to index
    %c0_142 = arith.constant 0 : index
    %512 = vector.load %arg11[%511, %c0_142] : memref<64x1024xf32, #tpu.memory_space<vmem>>, vector<8x512xf32>
    %513 = arith.index_cast %510 : i32 to index
    %c512_143 = arith.constant 512 : index
    %514 = vector.load %arg11[%513, %c512_143] : memref<64x1024xf32, #tpu.memory_space<vmem>>, vector<8x512xf32>
    %515 = arith.truncf %472 : vector<8x128xf32> to vector<8x128xbf16>
    %c0_144 = arith.constant 0 : index
    %c0_145 = arith.constant 0 : index
    %516 = vector.load %arg4[%c0_144, %c0_145] : memref<128x512xbf16, #tpu.memory_space<vmem>>, vector<128x512xbf16>
    %cst_146 = arith.constant dense<0.000000e+00> : vector<8x512xf32>
    %517 = tpu.matmul %515, %516, %cst_146 {dimension_numbers = #tpu.dot_dimension_numbers<[1], [0], [0], [1], [0, 0, 1, 1], [], []>} : vector<8x128xbf16>, vector<128x512xbf16>, vector<8x512xf32> -> vector<8x512xf32>
    %518 = arith.addf %512, %517 : vector<8x512xf32>
    %519 = vector.extract_strided_slice %518 {offsets = [0, 0], sizes = [8, 128], strides = [1, 1]} : vector<8x512xf32> to vector<8x128xf32>
    %520 = arith.negf %519 : vector<8x128xf32>
    %521 = math.exp %520 : vector<8x128xf32>
    %cst_147 = arith.constant 1.000000e+00 : f32
    %522 = vector.broadcast %cst_147 : f32 to vector<8x128xf32>
    %523 = arith.addf %522, %521 : vector<8x128xf32>
    %524 = arith.divf %522, %523 : vector<8x128xf32>
    %525 = vector.extract_strided_slice %518 {offsets = [0, 128], sizes = [8, 128], strides = [1, 1]} : vector<8x512xf32> to vector<8x128xf32>
    %526 = arith.negf %525 : vector<8x128xf32>
    %527 = math.exp %526 : vector<8x128xf32>
    %cst_148 = arith.constant 1.000000e+00 : f32
    %528 = vector.broadcast %cst_148 : f32 to vector<8x128xf32>
    %529 = arith.addf %528, %527 : vector<8x128xf32>
    %530 = arith.divf %528, %529 : vector<8x128xf32>
    %531 = vector.extract_strided_slice %518 {offsets = [0, 256], sizes = [8, 128], strides = [1, 1]} : vector<8x512xf32> to vector<8x128xf32>
    %532 = math.tanh %531 : vector<8x128xf32>
    %533 = vector.extract_strided_slice %518 {offsets = [0, 384], sizes = [8, 128], strides = [1, 1]} : vector<8x512xf32> to vector<8x128xf32>
    %534 = arith.negf %533 : vector<8x128xf32>
    %535 = math.exp %534 : vector<8x128xf32>
    %cst_149 = arith.constant 1.000000e+00 : f32
    %536 = vector.broadcast %cst_149 : f32 to vector<8x128xf32>
    %537 = arith.addf %536, %535 : vector<8x128xf32>
    %538 = arith.divf %536, %537 : vector<8x128xf32>
    %539 = arith.mulf %530, %470 : vector<8x128xf32>
    %540 = arith.mulf %524, %532 : vector<8x128xf32>
    %541 = arith.addf %539, %540 : vector<8x128xf32>
    %542 = math.tanh %541 : vector<8x128xf32>
    %543 = arith.mulf %538, %542 : vector<8x128xf32>
    %544 = arith.truncf %501 : vector<8x128xf32> to vector<8x128xbf16>
    %c0_150 = arith.constant 0 : index
    %c0_151 = arith.constant 0 : index
    %545 = vector.load %arg5[%c0_150, %c0_151] : memref<128x512xbf16, #tpu.memory_space<vmem>>, vector<128x512xbf16>
    %cst_152 = arith.constant dense<0.000000e+00> : vector<8x512xf32>
    %546 = tpu.matmul %544, %545, %cst_152 {dimension_numbers = #tpu.dot_dimension_numbers<[1], [0], [0], [1], [0, 0, 1, 1], [], []>} : vector<8x128xbf16>, vector<128x512xbf16>, vector<8x512xf32> -> vector<8x512xf32>
    %547 = arith.addf %514, %546 : vector<8x512xf32>
    %548 = vector.extract_strided_slice %547 {offsets = [0, 0], sizes = [8, 128], strides = [1, 1]} : vector<8x512xf32> to vector<8x128xf32>
    %549 = arith.negf %548 : vector<8x128xf32>
    %550 = math.exp %549 : vector<8x128xf32>
    %cst_153 = arith.constant 1.000000e+00 : f32
    %551 = vector.broadcast %cst_153 : f32 to vector<8x128xf32>
    %552 = arith.addf %551, %550 : vector<8x128xf32>
    %553 = arith.divf %551, %552 : vector<8x128xf32>
    %554 = vector.extract_strided_slice %547 {offsets = [0, 128], sizes = [8, 128], strides = [1, 1]} : vector<8x512xf32> to vector<8x128xf32>
    %555 = arith.negf %554 : vector<8x128xf32>
    %556 = math.exp %555 : vector<8x128xf32>
    %cst_154 = arith.constant 1.000000e+00 : f32
    %557 = vector.broadcast %cst_154 : f32 to vector<8x128xf32>
    %558 = arith.addf %557, %556 : vector<8x128xf32>
    %559 = arith.divf %557, %558 : vector<8x128xf32>
    %560 = vector.extract_strided_slice %547 {offsets = [0, 256], sizes = [8, 128], strides = [1, 1]} : vector<8x512xf32> to vector<8x128xf32>
    %561 = math.tanh %560 : vector<8x128xf32>
    %562 = vector.extract_strided_slice %547 {offsets = [0, 384], sizes = [8, 128], strides = [1, 1]} : vector<8x512xf32> to vector<8x128xf32>
    %563 = arith.negf %562 : vector<8x128xf32>
    %564 = math.exp %563 : vector<8x128xf32>
    %cst_155 = arith.constant 1.000000e+00 : f32
    %565 = vector.broadcast %cst_155 : f32 to vector<8x128xf32>
    %566 = arith.addf %565, %564 : vector<8x128xf32>
    %567 = arith.divf %565, %566 : vector<8x128xf32>
    %568 = arith.mulf %559, %499 : vector<8x128xf32>
    %569 = arith.mulf %553, %561 : vector<8x128xf32>
    %570 = arith.addf %568, %569 : vector<8x128xf32>
    %571 = math.tanh %570 : vector<8x128xf32>
    %572 = arith.mulf %567, %571 : vector<8x128xf32>
    %573 = arith.index_cast %507 : i32 to index
    %c0_156 = arith.constant 0 : index
    %574 = vector.load %arg12[%573, %c0_156] : memref<64x256xf32, #tpu.memory_space<vmem>>, vector<8x128xf32>
    tpu.vector_store %arg12[%573, %c0_156], %543 {strides = array<i32>} : memref<64x256xf32, #tpu.memory_space<vmem>>, vector<8x128xf32>,
    %575 = arith.index_cast %510 : i32 to index
    %c128_157 = arith.constant 128 : index
    %576 = vector.load %arg12[%575, %c128_157] : memref<64x256xf32, #tpu.memory_space<vmem>>, vector<8x128xf32>
    tpu.vector_store %arg12[%575, %c128_157], %572 {strides = array<i32>} : memref<64x256xf32, #tpu.memory_space<vmem>>, vector<8x128xf32>,
    %c8_i32_158 = arith.constant 8 : i32
    %c0_159 = arith.constant 0 : index
    %c0_160 = arith.constant 0 : index
    %577 = vector.load %arg12[%c0_159, %c0_160] : memref<64x256xf32, #tpu.memory_space<vmem>>, vector<64x256xf32>
    %c0_161 = arith.constant 0 : index
    %c0_162 = arith.constant 0 : index
    %578 = vector.load %arg6[%c0_161, %c0_162] : memref<256x1xf32, #tpu.memory_space<vmem>>, vector<256x1xf32>
    %cst_163 = arith.constant dense<0.000000e+00> : vector<64x1xf32>
    %579 = tpu.matmul %577, %578, %cst_163 {dimension_numbers = #tpu.dot_dimension_numbers<[1], [0], [0], [1], [0, 0, 1, 1], [], []>} : vector<64x256xf32>, vector<256x1xf32>, vector<64x1xf32> -> vector<64x1xf32>
    %c0_164 = arith.constant 0 : index
    %c0_165 = arith.constant 0 : index
    %580 = vector.load %arg7[%c0_164, %c0_165] : memref<1x1xf32, #tpu.memory_space<vmem>>, vector<1x1xf32>
    %581 = vector.broadcast %580 : vector<1x1xf32> to vector<64x1xf32>
    %582 = arith.addf %579, %581 : vector<64x1xf32>
    %583 = math.tanh %582 : vector<64x1xf32>
    %584 = vector.shape_cast %583 : vector<64x1xf32> to vector<8x8x1xf32>
    %cst_166 = arith.constant dense<0xFF800000> : vector<8x1xf32>
    %585 = vector.multi_reduction <maximumf>, %584, %cst_166 [0] : vector<8x8x1xf32> to vector<8x1xf32>
    %586 = vector.shape_cast %585 : vector<8x1xf32> to vector<1x8x1xf32>
    %587 = vector.broadcast %586 : vector<1x8x1xf32> to vector<8x8x1xf32>
    %588 = arith.subf %584, %587 : vector<8x8x1xf32>
    %589 = math.exp %588 : vector<8x8x1xf32>
    %cst_167 = arith.constant dense<0.000000e+00> : vector<8x1xf32>
    %590 = vector.multi_reduction <add>, %589, %cst_167 [0] : vector<8x8x1xf32> to vector<8x1xf32>
    %591 = vector.shape_cast %590 : vector<8x1xf32> to vector<1x8x1xf32>
    %592 = tpu.reciprocal %591 {approx = true} : vector<1x8x1xf32> -> vector<1x8x1xf32>
    %593 = vector.broadcast %592 : vector<1x8x1xf32> to vector<8x8x1xf32>
    %594 = arith.mulf %589, %593 : vector<8x8x1xf32>
    %595 = vector.shape_cast %594 : vector<8x8x1xf32> to vector<64x1xf32>
    %596 = vector.broadcast %595 : vector<64x1xf32> to vector<64x256xf32>
    %597 = arith.mulf %596, %577 : vector<64x256xf32>
    %598 = arith.truncf %597 : vector<64x256xf32> to vector<64x256xbf16>
    %c0_168 = arith.constant 0 : index
    %c0_169 = arith.constant 0 : index
    %599 = vector.load %arg8[%c0_168, %c0_169] : memref<256x128xbf16, #tpu.memory_space<vmem>>, vector<256x128xbf16>
    %cst_170 = arith.constant dense<0.000000e+00> : vector<64x128xf32>
    %600 = tpu.matmul %598, %599, %cst_170 {dimension_numbers = #tpu.dot_dimension_numbers<[1], [0], [0], [1], [0, 0, 1, 1], [], []>} : vector<64x256xbf16>, vector<256x128xbf16>, vector<64x128xf32> -> vector<64x128xf32>
    %c0_171 = arith.constant 0 : index
    %c0_172 = arith.constant 0 : index
    %601 = vector.load %arg9[%c0_171, %c0_172] : memref<1x128xf32, #tpu.memory_space<vmem>>, vector<1x128xf32>
    %602 = vector.broadcast %601 : vector<1x128xf32> to vector<64x128xf32>
    %603 = arith.addf %600, %602 : vector<64x128xf32>
    %cst_173 = arith.constant dense<0xFF800000> : vector<64xf32>
    %604 = vector.multi_reduction <maximumf>, %603, %cst_173 [1] : vector<64x128xf32> to vector<64xf32>
    %605 = vector.shape_cast %604 : vector<64xf32> to vector<64x1xf32>
    %606 = vector.broadcast %605 : vector<64x1xf32> to vector<64x128xf32>
    %607 = arith.subf %603, %606 : vector<64x128xf32>
    %608 = math.exp %607 : vector<64x128xf32>
    %cst_174 = arith.constant dense<0.000000e+00> : vector<64xf32>
    %609 = vector.multi_reduction <add>, %608, %cst_174 [1] : vector<64x128xf32> to vector<64xf32>
    %610 = vector.shape_cast %609 : vector<64xf32> to vector<64x1xf32>
    %611 = math.log %610 : vector<64x1xf32>
    %612 = vector.broadcast %611 : vector<64x1xf32> to vector<64x128xf32>
    %613 = arith.subf %607, %612 : vector<64x128xf32>
    %c0_175 = arith.constant 0 : index
    %c0_176 = arith.constant 0 : index
    %c0_177 = arith.constant 0 : index
    %614 = vector.load %arg10[%c0_175, %c0_176, %c0_177] : memref<1x64x128xf32, #tpu.memory_space<vmem>>, vector<1x64x128xf32>
    %615 = vector.shape_cast %614 : vector<1x64x128xf32> to vector<64x128xf32>
    %616 = vector.shape_cast %613 : vector<64x128xf32> to vector<1x64x128xf32>
    tpu.vector_store %arg10[%c0_175, %c0_176, %c0_177], %616 {strides = array<i32>} : memref<1x64x128xf32, #tpu.memory_space<vmem>>, vector<1x64x128xf32>,
    return
  }
  func.func @transform_0(%arg0: i32) -> (i32, i32, i32) {
    %c0_i32 = arith.constant 0 : i32
    %c0_i32_0 = arith.constant 0 : i32
    %c0_i32_1 = arith.constant 0 : i32
    return %arg0, %c0_i32, %c0_i32_0 : i32, i32, i32
  }
  func.func @transform_1(%arg0: i32) -> (i32, i32) {
    %c0_i32 = arith.constant 0 : i32
    %c0_i32_0 = arith.constant 0 : i32
    %c0_i32_1 = arith.constant 0 : i32
    return %c0_i32, %c0_i32_0 : i32, i32
  }
  func.func @transform_2(%arg0: i32) -> (i32, i32) {
    %c0_i32 = arith.constant 0 : i32
    %c0_i32_0 = arith.constant 0 : i32
    %c0_i32_1 = arith.constant 0 : i32
    return %c0_i32, %c0_i32_0 : i32, i32
  }
  func.func @transform_3(%arg0: i32) -> (i32, i32) {
    %c0_i32 = arith.constant 0 : i32
    %c0_i32_0 = arith.constant 0 : i32
    %c0_i32_1 = arith.constant 0 : i32
    return %c0_i32, %c0_i32_0 : i32, i32
  }
  func.func @transform_4(%arg0: i32) -> (i32, i32) {
    %c0_i32 = arith.constant 0 : i32
    %c0_i32_0 = arith.constant 0 : i32
    %c0_i32_1 = arith.constant 0 : i32
    return %c0_i32, %c0_i32_0 : i32, i32
  }
  func.func @transform_5(%arg0: i32) -> (i32, i32) {
    %c0_i32 = arith.constant 0 : i32
    %c0_i32_0 = arith.constant 0 : i32
    %c0_i32_1 = arith.constant 0 : i32
    return %c0_i32, %c0_i32_0 : i32, i32
  }
  func.func @transform_6(%arg0: i32) -> (i32, i32) {
    %c0_i32 = arith.constant 0 : i32
    %c0_i32_0 = arith.constant 0 : i32
    %c0_i32_1 = arith.constant 0 : i32
    return %c0_i32, %c0_i32_0 : i32, i32
  }
  func.func @transform_7(%arg0: i32) -> (i32, i32) {
    %c0_i32 = arith.constant 0 : i32
    %c0_i32_0 = arith.constant 0 : i32
    %c0_i32_1 = arith.constant 0 : i32
    return %c0_i32, %c0_i32_0 : i32, i32
  }
  func.func @transform_8(%arg0: i32) -> (i32, i32) {
    %c0_i32 = arith.constant 0 : i32
    %c0_i32_0 = arith.constant 0 : i32
    %c0_i32_1 = arith.constant 0 : i32
    return %c0_i32, %c0_i32_0 : i32, i32
  }
  func.func @transform_9(%arg0: i32) -> (i32, i32, i32) {
    %c0_i32 = arith.constant 0 : i32
    %c0_i32_0 = arith.constant 0 : i32
    %c0_i32_1 = arith.constant 0 : i32
    return %arg0, %c0_i32, %c0_i32_0 : i32, i32, i32
  }
}

</mosaic_0001>

<bundles_post_ra>
// kernel: ner_forward.1
= control target key start
LH: loop header
LB: loop body
LE: loop exit
PB: predicated region body
PF: predicated region fallthrough
CT: control target
= control target key end

     0   :  { %v10247_v3 = vmov 0   ;;  %vm201_vm0 = vcmask 261120   ;;  %vm5712_vm1 = vcmask 7168   ;;  %s10237_s1 = inlined_call_operand.vmem [shape: bf16[32,1024], index: 1, kind: input, shape index: {}]   ;;  %s10238_s0 = inlined_call_operand.vmem [shape: bf16[1,64,32], index: 0, kind: input, shape index: {}]   ;;  %s10239_s3 = inlined_call_operand.vmem [shape: bf16[128,512], index: 3, kind: input, shape index: {}]   ;;  %s10240_s4 = inlined_call_operand.vmem [shape: bf16[128,512], index: 4, kind: input, shape index: {}]   ;;  %s10241_s2 = inlined_call_operand.vmem [shape: f32[1,1024], index: 2, kind: input, shape index: {}]   ;;  %s10242_s5 = inlined_call_operand.vmem [shape: f32[256,1], index: 5, kind: input, shape index: {}]   ;;  %s10243_s6 = inlined_call_operand.<no memory space> [shape: f32[1,1], index: 6, kind: input, shape index: {}]   ;;  %s10244_s7 = inlined_call_operand.vmem [shape: bf16[256,128], index: 7, kind: input, shape index: {}]   ;;  %s10245_s8 = inlined_call_operand.vmem [shape: f32[1,128], index: 8, kind: input, shape index: {}]   ;;  %s10246_s9 = inlined_call_operand.vmem [shape: f32[1,64,128], index: 9, kind: output, shape index: {}]  }
   0x1   :  { %v43_v0 = vld [vmem:[%s10237_s1] sm:$0xff]  ;;  %v44_v2 = vld [vmem:[%s10237_s1 + $0x8] sm:$0xff]  ;;  %246 = vmatprep.mubr.bf16.mxu0 %v10247_v3  ;;  %319 = vmatprep.mubr.bf16.mxu1 %v10247_v3  ;;  %v45_v15 = vld [vmem:[%s10237_s1 + $0x10] sm:$0xff] }
   0x2   :  { %v47_v1 = vld [vmem:[%s10237_s1 + $0x20] sm:$0xff]  ;;  %v48_v5 = vld [vmem:[%s10237_s1 + $0x28] sm:$0xff]  ;;  %6890 = vset.pattern.permute.xlu1 %v10247_v3  ;;  %6889 = vset.pattern.permute.xlu0 %v10247_v3  ;;  %v49_v17 = vld [vmem:[%s10237_s1 + $0x30] sm:$0xff] }
   0x3   :  { %v6151_v4 = vcombine.high %v43_v0, %v47_v1  ;;  %v6150_v6 = vcombine.low %v43_v0, %v47_v1  ;;  %v51_v7 = vld [vmem:[%s10237_s1 + $0x40] sm:$0xff]  ;;  %v6153_v9 = vcombine.high %v44_v2, %v48_v5  ;;  %v6152_v10 = vcombine.low %v44_v2, %v48_v5  ;;  %v52_v12 = vld [vmem:[%s10237_s1 + $0x48] sm:$0xff]  ;;  %v46_v20 = vld [vmem:[%s10237_s1 + $0x18] sm:$0xff] }
   0x4   :  { %v55_v8 = vld [vmem:[%s10237_s1 + $0x60] sm:$0xff]  ;;  %v56_v13 = vld [vmem:[%s10237_s1 + $0x68] sm:$0xff]  ;;  %v6155_v19 = vcombine.high %v45_v15, %v49_v17  ;;  %v50_v21 = vld [vmem:[%s10237_s1 + $0x38] sm:$0xff]  ;;  %v6154_v26 = vcombine.low %v45_v15, %v49_v17 }
   0x5   :  { %v6159_v11 = vcombine.high %v51_v7, %v55_v8  ;;  %214 = vmatprep.subr.bf16.mxu0 %v6151_v4  ;;  %v6161_v14 = vcombine.high %v52_v12, %v56_v13  ;;  %287 = vmatprep.subr.bf16.mxu1 %v6153_v9  ;;  %v6158_v16 = vcombine.low %v51_v7, %v55_v8  ;;  %v6891_v22 = vld [vmem:[%s10238_s0] sm:$0xff]   ;;  %v53_v24 = vld [vmem:[%s10237_s1 + $0x50] sm:$0xff]  ;;  %v54_v27 = vld [vmem:[%s10237_s1 + $0x58] sm:$0xff] }
   0x6   :  { %215 = vmatpush1.bf16.msra.mxu0 %v6150_v6  ;;  %288 = vmatpush1.bf16.msra.mxu1 %v6152_v10  ;;  %v6160_v18 = vcombine.low %v52_v12, %v56_v13  ;;  %v6157_v23 = vcombine.high %v46_v20, %v50_v21  ;;  %v57_v25 = vld [vmem:[%s10237_s1 + $0x70] sm:$0xff]  ;;  %v58_v28 = vld [vmem:[%s10237_s1 + $0x78] sm:$0xff]  ;;  %v6156_v29 = vcombine.low %v46_v20, %v50_v21  ;;  %v6892_v35 = vld [vmem:[%s10238_s0 + $0x8] sm:$0xff]  }
   0x7   :  { %216 = vmatprep.subr.bf16.mxu0 %v6159_v11  ;;  %289 = vmatprep.subr.bf16.mxu1 %v6161_v14  ;;  %v6163_v30 = vcombine.high %v53_v24, %v57_v25  ;;  %v6165_v31 = vcombine.high %v54_v27, %v58_v28  ;;  %v6162_v32 = vcombine.low %v53_v24, %v57_v25  ;;  %v7730_v33 = vld [vmem:[%s10239_s3 + $0x4] ss:$16 sps:$4 sm:$0xff]   ;;  %v7738_v36 = vld [vmem:[%s10239_s3 + $0xc] ss:$16 sps:$4 sm:$0xff]   ;;  %v7767_v39 = vld [vmem:[%s10239_s3] ss:$16 sps:$4 sm:$0xff]  }
   0x8   :  { %v6164_v34 = vcombine.low %v54_v27, %v58_v28  ;;  %v6893_v37 = vld [vmem:[%s10238_s0 + $0x10] sm:$0xff]   ;;  %v7756_v38 = vld [vmem:[%s10238_s0 + $0x18] sm:$0xff]  }
   0x9   :  { %v7772_v40 = vld [vmem:[%s10239_s3 + $0x8] ss:$16 sps:$4 sm:$0xff]   ;;  %v7777_v41 = vld [vmem:[%s10239_s3 + $0x24] ss:$16 sps:$4 sm:$0xff]   ;;  %v7782_v42 = vld [vmem:[%s10239_s3 + $0x2c] ss:$16 sps:$4 sm:$0xff]  }
   0xa   :  { %217 = vmatpush1.bf16.msra.mxu0 %v6158_v16  ;;  %290 = vmatpush1.bf16.msra.mxu1 %v6160_v18  ;;  %v7788_v43 = vld [vmem:[%s10239_s3 + $0x20] ss:$16 sps:$4 sm:$0xff]   ;;  %v7795_v44 = vld [vmem:[%s10239_s3 + $0x28] ss:$16 sps:$4 sm:$0xff]   ;;  %v7802_v45 = vld [vmem:[%s10239_s3 + $0x44] ss:$16 sps:$4 sm:$0xff]  }
   0xb   :  { %360 = vmatprep.subr.bf16.mxu0 %v6155_v19  ;;  %433 = vmatprep.subr.bf16.mxu1 %v6157_v23  ;;  %v7809_v46 = vld [vmem:[%s10239_s3 + $0x4c] ss:$16 sps:$4 sm:$0xff]   ;;  %v7815_v47 = vld [vmem:[%s10239_s3 + $0x40] ss:$16 sps:$4 sm:$0xff]   ;;  %v7821_v48 = vld [vmem:[%s10239_s3 + $0x48] ss:$16 sps:$4 sm:$0xff]  }
   0xc   :  { %v7828_v49 = vld [vmem:[%s10239_s3 + $0x64] ss:$16 sps:$4 sm:$0xff]   ;;  %v7834_v50 = vld [vmem:[%s10239_s3 + $0x60] ss:$16 sps:$4 sm:$0xff]   ;;  %v7839_v51 = vld [vmem:[%s10239_s3 + $0x6c] ss:$16 sps:$4 sm:$0xff]  }
   0xd   :  { %6166 = vmatmul.mubr.msk.bf16.vlgmr.msra.gmra.mrb[0].mxu0 %vm201_vm0, %v6891_v22  ;;  %6170 = vmatmul.mubr.msk.bf16.vlgmr.msra.gmra.mrb[0].mxu1 %vm201_vm0, %v6891_v22  ;;  %v7845_v52 = vld [vmem:[%s10239_s3 + $0x68] ss:$16 sps:$4 sm:$0xff]   ;;  %v7850_v53 = vld [vmem:[%s10239_s3 + $0x84] ss:$16 sps:$4 sm:$0xff]   ;;  %v7857_v54 = vld [vmem:[%s10239_s3 + $0x8c] ss:$16 sps:$4 sm:$0xff]  }
   0xe   :  { %361 = vmatpush1.bf16.msra.mxu0 %v6154_v26  ;;  %256 = vmatprep.mubr.bf16.mxu0 %v10247_v3  ;;  %v7866_v55 = vld [vmem:[%s10239_s3 + $0x80] ss:$16 sps:$4 sm:$0xff]   ;;  %v7872_v56 = vld [vmem:[%s10239_s3 + $0x88] ss:$16 sps:$4 sm:$0xff]   ;;  %v7877_v57 = vld [vmem:[%s10239_s3 + $0xa4] ss:$16 sps:$4 sm:$0xff]  }
   0xf   :  { %329 = vmatprep.mubr.bf16.mxu1 %v10247_v3  ;;  %362 = vmatprep.subr.bf16.mxu0 %v6163_v30  ;;  %v7883_v58 = vld [vmem:[%s10239_s3 + $0xac] ss:$16 sps:$4 sm:$0xff]   ;;  %v7891_v59 = vld [vmem:[%s10239_s3 + $0xa0] ss:$16 sps:$4 sm:$0xff]   ;;  %v7897_v60 = vld [vmem:[%s10239_s3 + $0xa8] ss:$16 sps:$4 sm:$0xff]  }
  0x10   :  { %434 = vmatpush1.bf16.msra.mxu1 %v6156_v29  ;;  %v7902_v61 = vld [vmem:[%s10239_s3 + $0xc4] ss:$16 sps:$4 sm:$0xff]   ;;  %v7909_v62 = vld [vmem:[%s10239_s3 + $0xcc] ss:$16 sps:$4 sm:$0xff]   ;;  %v7918_v63 = vld [vmem:[%s10239_s3 + $0xc0] ss:$16 sps:$4 sm:$0xff]  }
  0x11   :  { %435 = vmatprep.subr.bf16.mxu1 %v6165_v31  ;;  %v7924_v0 = vld [vmem:[%s10239_s3 + $0xc8] ss:$16 sps:$4 sm:$0xff]   ;;  %v7929_v1 = vld [vmem:[%s10239_s3 + $0xe4] ss:$16 sps:$4 sm:$0xff]   ;;  %v7935_v2 = vld [vmem:[%s10239_s3 + $0xec] ss:$16 sps:$4 sm:$0xff]  }
  0x12   :  { %363 = vmatpush1.bf16.msra.mxu0 %v6162_v32  ;;  %v7943_v4 = vld [vmem:[%s10239_s3 + $0xe0] ss:$16 sps:$4 sm:$0xff]   ;;  %v7950_v5 = vld [vmem:[%s10239_s3 + $0xe8] ss:$16 sps:$4 sm:$0xff]   ;;  %v7955_v6 = vld [vmem:[%s10240_s4 + $0x4] ss:$16 sps:$4 sm:$0xff]  }
  0x13   :  { %776 = vmatprep.subr.bf16.mxu0 %v7730_v33  ;;  %v7963_v7 = vld [vmem:[%s10240_s4 + $0xc] ss:$16 sps:$4 sm:$0xff]   ;;  %v7972_v8 = vld [vmem:[%s10240_s4] ss:$16 sps:$4 sm:$0xff]   ;;  %v7978_v9 = vld [vmem:[%s10240_s4 + $0x8] ss:$16 sps:$4 sm:$0xff]  }
  0x14   :  { %436 = vmatpush1.bf16.msra.mxu1 %v6164_v34  ;;  %v7983_v10 = vld [vmem:[%s10240_s4 + $0x24] ss:$16 sps:$4 sm:$0xff]   ;;  %v7989_v11 = vld [vmem:[%s10240_s4 + $0x2c] ss:$16 sps:$4 sm:$0xff]   ;;  %v7997_v12 = vld [vmem:[%s10240_s4 + $0x20] ss:$16 sps:$4 sm:$0xff]  }
  0x15   :  { %6167 = vmatmul.mubr.msk.bf16.gmra.mrb[4].mxu0 %vm201_vm0, %v6892_v35  ;;  %817 = vmatprep.subr.bf16.mxu1 %v7738_v36  ;;  %v8003_v13 = vld [vmem:[%s10240_s4 + $0x28] ss:$16 sps:$4 sm:$0xff]   ;;  %v8008_v14 = vld [vmem:[%s10240_s4 + $0x44] ss:$16 sps:$4 sm:$0xff]   ;;  %v8015_v15 = vld [vmem:[%s10240_s4 + $0x4c] ss:$16 sps:$4 sm:$0xff]  }
  0x16   :  { %6171 = vmatmul.mubr.msk.bf16.gmra.mrb[4].mxu1 %vm201_vm0, %v6892_v35  ;;  %266 = vmatprep.mubr.bf16.mxu0 %v10247_v3  ;;  %v8023_v16 = vld [vmem:[%s10240_s4 + $0x40] ss:$16 sps:$4 sm:$0xff]   ;;  %v8029_v17 = vld [vmem:[%s10240_s4 + $0x48] ss:$16 sps:$4 sm:$0xff]   ;;  %v8034_v18 = vld [vmem:[%s10240_s4 + $0x64] ss:$16 sps:$4 sm:$0xff]  }
  0x17   :  { %339 = vmatprep.mubr.bf16.mxu1 %v10247_v3  ;;  %v8041_v19 = vld [vmem:[%s10240_s4 + $0x6c] ss:$16 sps:$4 sm:$0xff]   ;;  %v8049_v20 = vld [vmem:[%s10240_s4 + $0x60] ss:$16 sps:$4 sm:$0xff]   ;;  %v8054_v21 = vld [vmem:[%s10240_s4 + $0x68] ss:$16 sps:$4 sm:$0xff]  }
  0x18   :  { %v8065_v23 = vld [vmem:[%s10240_s4 + $0x8c] ss:$16 sps:$4 sm:$0xff]   ;;  %v8073_v24 = vld [vmem:[%s10240_s4 + $0x80] ss:$16 sps:$4 sm:$0xff]   ;;  %v8078_v25 = vld [vmem:[%s10240_s4 + $0x88] ss:$16 sps:$4 sm:$0xff]  }
  0x19   :  { %v8083_v26 = vld [vmem:[%s10240_s4 + $0xa4] ss:$16 sps:$4 sm:$0xff]   ;;  %v8089_v27 = vld [vmem:[%s10240_s4 + $0xac] ss:$16 sps:$4 sm:$0xff]   ;;  %v8097_v28 = vld [vmem:[%s10240_s4 + $0xa0] ss:$16 sps:$4 sm:$0xff]  }
  0x1a   :  { %v8102_v29 = vld [vmem:[%s10240_s4 + $0xa8] ss:$16 sps:$4 sm:$0xff]   ;;  %v8107_v30 = vld [vmem:[%s10240_s4 + $0xc4] ss:$16 sps:$4 sm:$0xff]   ;;  %v8113_v31 = vld [vmem:[%s10240_s4 + $0xcc] ss:$16 sps:$4 sm:$0xff]  }
  0x1b   :  { %10293 = vst [vmem:[#allocation5_spill] sm:$0xff] %v8113_v31  ;;  %v8121_v32 = vld [vmem:[%s10240_s4 + $0xc0] ss:$16 sps:$4 sm:$0xff]   ;;  %v8126_v34 = vld [vmem:[%s10240_s4 + $0xc8] ss:$16 sps:$4 sm:$0xff]  }
  0x1d   :  { %6168 = vmatmul.mubr.msk.bf16.gmra.mrb[8].mxu0 %vm201_vm0, %v6893_v37 }
  0x1e   :  { %6172 = vmatmul.mubr.msk.bf16.gmra.mrb[8].mxu1 %vm201_vm0, %v6893_v37  ;;  %276 = vmatprep.mubr.bf16.mxu0 %v10247_v3 }
  0x1f   :  { %349 = vmatprep.mubr.bf16.mxu1 %v10247_v3 }
  0x25   :  { %6169 = vmatmul.mubr.msk.bf16.gmra.mrb[12].mxu0 %vm201_vm0, %v7756_v38 }
  0x26   :  { %6173 = vmatmul.mubr.msk.bf16.gmra.mrb[12].mxu1 %vm201_vm0, %v7756_v38  ;;  %392 = vmatprep.mubr.bf16.mxu0 %v10247_v3 }
  0x27   :  { %465 = vmatprep.mubr.bf16.mxu1 %v10247_v3 }
  0x2d   :  { %6174 = vmatmul.mubr.msk.bf16.vlgmr.msra.gmra.mrb[16].mxu0 %vm201_vm0, %v6891_v22 }
  0x2e   :  { %6178 = vmatmul.mubr.msk.bf16.vlgmr.msra.gmra.mrb[16].mxu1 %vm201_vm0, %v6891_v22  ;;  %777 = vmatpush1.bf16.msra.mxu0 %v7767_v39  ;;  %v8059_v22 = vld [vmem:[%s10240_s4 + $0x84] ss:$16 sps:$4 sm:$0xff]  }
  0x2f   :  { %818 = vmatpush1.bf16.msra.mxu1 %v7772_v40  ;;  %778 = vmatprep.subr.bf16.mxu0 %v7777_v41 }
  0x30   :  { %819 = vmatprep.subr.bf16.mxu1 %v7782_v42  ;;  %402 = vmatprep.mubr.bf16.mxu0 %v10247_v3 }
  0x31   :  { %475 = vmatprep.mubr.bf16.mxu1 %v10247_v3 }
  0x32   :  { %779 = vmatpush1.bf16.msra.mxu0 %v7788_v43 }
  0x33   :  { %820 = vmatpush1.bf16.msra.mxu1 %v7795_v44  ;;  %780 = vmatprep.subr.bf16.mxu0 %v7802_v45 }
  0x34   :  { %821 = vmatprep.subr.bf16.mxu1 %v7809_v46 }
  0x35   :  { %6175 = vmatmul.mubr.msk.bf16.gmra.mrb[20].mxu0 %vm201_vm0, %v6892_v35 }
  0x36   :  { %6179 = vmatmul.mubr.msk.bf16.gmra.mrb[20].mxu1 %vm201_vm0, %v6892_v35  ;;  %781 = vmatpush1.bf16.msra.mxu0 %v7815_v47  ;;  %v8131_v35 = vld [vmem:[%s10240_s4 + $0xe4] ss:$16 sps:$4 sm:$0xff]  }
  0x37   :  { %822 = vmatpush1.bf16.msra.mxu1 %v7821_v48  ;;  %782 = vmatprep.subr.bf16.mxu0 %v7828_v49 }
  0x38   :  { %823 = vmatprep.subr.bf16.mxu1 %v7839_v51  ;;  %412 = vmatprep.mubr.bf16.mxu0 %v10247_v3 }
  0x39   :  { %485 = vmatprep.mubr.bf16.mxu1 %v10247_v3 }
  0x3a   :  { %783 = vmatpush1.bf16.msra.mxu0 %v7834_v50 }
  0x3b   :  { %824 = vmatpush1.bf16.msra.mxu1 %v7845_v52  ;;  %784 = vmatprep.subr.bf16.mxu0 %v7850_v53 }
  0x3c   :  { %825 = vmatprep.subr.bf16.mxu1 %v7857_v54 }
  0x3d   :  { %6176 = vmatmul.mubr.msk.bf16.gmra.mrb[24].mxu0 %vm201_vm0, %v6893_v37 }
  0x3e   :  { %6180 = vmatmul.mubr.msk.bf16.gmra.mrb[24].mxu1 %vm201_vm0, %v6893_v37  ;;  %785 = vmatpush1.bf16.msra.mxu0 %v7866_v55  ;;  %v8137_v37 = vld [vmem:[%s10240_s4 + $0xec] ss:$16 sps:$4 sm:$0xff]  }
  0x3f   :  { %826 = vmatpush1.bf16.msra.mxu1 %v7872_v56  ;;  %786 = vmatprep.subr.bf16.mxu0 %v7877_v57 }
  0x40   :  { %827 = vmatprep.subr.bf16.mxu1 %v7883_v58  ;;  %422 = vmatprep.mubr.bf16.mxu0 %v10247_v3 }
  0x41   :  { %495 = vmatprep.mubr.bf16.mxu1 %v10247_v3 }
  0x42   :  { %787 = vmatpush1.bf16.msra.mxu0 %v7891_v59 }
  0x43   :  { %828 = vmatpush1.bf16.msra.mxu1 %v7897_v60  ;;  %788 = vmatprep.subr.bf16.mxu0 %v7902_v61 }
  0x44   :  { %829 = vmatprep.subr.bf16.mxu1 %v7909_v62 }
  0x45   :  { %6177 = vmatmul.mubr.msk.bf16.gmra.mrb[28].mxu0 %vm201_vm0, %v7756_v38 }
  0x46   :  { %6181 = vmatmul.mubr.msk.bf16.gmra.mrb[28].mxu1 %vm201_vm0, %v7756_v38  ;;  %789 = vmatpush1.bf16.msra.mxu0 %v7918_v63  ;;  %v8145_v38 = vld [vmem:[%s10240_s4 + $0xe0] ss:$16 sps:$4 sm:$0xff]  }
  0x47   :  { %830 = vmatpush1.bf16.msra.mxu1 %v7924_v0  ;;  %790 = vmatprep.subr.bf16.mxu0 %v7929_v1 }
  0x48   :  { %831 = vmatprep.subr.bf16.mxu1 %v7935_v2  ;;  %808 = vmatprep.mubr.bf16.mxu0 %v10247_v3 }
  0x49   :  { %849 = vmatprep.mubr.bf16.mxu1 %v10247_v3 }
  0x4a   :  { %791 = vmatpush1.bf16.msra.mxu0 %v7943_v4 }
  0x4b   :  { %832 = vmatpush1.bf16.msra.mxu1 %v7950_v5  ;;  %1078 = vmatprep.subr.bf16.mxu0 %v7955_v6 }
  0x4c   :  { %1119 = vmatprep.subr.bf16.mxu1 %v7963_v7 }
  0x4d   :  { %809 = vmatmul.mubr.bf16.vlgmr.msra.gmra.mrb[32].mxu0 %v10247_v3 }
  0x4e   :  { %850 = vmatmul.mubr.bf16.vlgmr.msra.gmra.mrb[32].mxu1 %v10247_v3  ;;  %1079 = vmatpush1.bf16.msra.mxu0 %v7972_v8 }
  0x4f   :  { %1120 = vmatpush1.bf16.msra.mxu1 %v7978_v9  ;;  %1080 = vmatprep.subr.bf16.mxu0 %v7983_v10 }
  0x50   :  { %1121 = vmatprep.subr.bf16.mxu1 %v7989_v11  ;;  %1110 = vmatprep.mubr.bf16.mxu0 %v10247_v3 }
  0x51   :  { %1151 = vmatprep.mubr.bf16.mxu1 %v10247_v3  ;;  %v8150_v3 = vld [vmem:[%s10240_s4 + $0xe8] ss:$16 sps:$4 sm:$0xff]  }
  0x52   :  { %1081 = vmatpush1.bf16.msra.mxu0 %v7997_v12 }
  0x53   :  { %1122 = vmatpush1.bf16.msra.mxu1 %v8003_v13  ;;  %1082 = vmatprep.subr.bf16.mxu0 %v8008_v14 }
  0x54   :  { %1123 = vmatprep.subr.bf16.mxu1 %v8015_v15 }
  0x56   :  { %1083 = vmatpush1.bf16.msra.mxu0 %v8023_v16 }
  0x57   :  { %1124 = vmatpush1.bf16.msra.mxu1 %v8029_v17  ;;  %1084 = vmatprep.subr.bf16.mxu0 %v8034_v18 }
  0x58   :  { %1125 = vmatprep.subr.bf16.mxu1 %v8041_v19 }
  0x5a   :  { %1085 = vmatpush1.bf16.msra.mxu0 %v8049_v20 }
  0x5b   :  { %1126 = vmatpush1.bf16.msra.mxu1 %v8054_v21  ;;  %1086 = vmatprep.subr.bf16.mxu0 %v8059_v22 }
  0x5c   :  { %1127 = vmatprep.subr.bf16.mxu1 %v8065_v23 }
  0x5e   :  { %1087 = vmatpush1.bf16.msra.mxu0 %v8073_v24 }
  0x5f   :  { %1128 = vmatpush1.bf16.msra.mxu1 %v8078_v25  ;;  %1088 = vmatprep.subr.bf16.mxu0 %v8083_v26 }
  0x60   :  { %1129 = vmatprep.subr.bf16.mxu1 %v8089_v27 }
  0x62   :  { %1089 = vmatpush1.bf16.msra.mxu0 %v8097_v28 }
  0x63   :  { %1130 = vmatpush1.bf16.msra.mxu1 %v8102_v29  ;;  %1090 = vmatprep.subr.bf16.mxu0 %v8107_v30 }
  0x64   :  { %1131 = vmatprep.subr.bf16.mxu1 %v8113_v31  ;;  %v10294_v31 = vmov 0  }
  0x66   :  { %1091 = vmatpush1.bf16.msra.mxu0 %v8121_v32 }
  0x67   :  { %1132 = vmatpush1.bf16.msra.mxu1 %v8126_v34  ;;  %1092 = vmatprep.subr.bf16.mxu0 %v8131_v35 }
  0x68   :  { %1133 = vmatprep.subr.bf16.mxu1 %v8137_v37 }
  0x6a   :  { %1093 = vmatpush1.bf16.msra.mxu0 %v8145_v38 }
  0x6b   :  { %1134 = vmatpush1.bf16.msra.mxu1 %v8150_v3  ;;  %1403 = vmatprep.subr.bf16.mxu0 %v7730_v33  ;;  %v61_v33 = vlaneseq }
  0x6c   :  { %1444 = vmatprep.subr.bf16.mxu1 %v7738_v36 }
  0x6d   :  { %1111 = vmatmul.mubr.bf16.vlgmr.msra.gmra.mrb[36].mxu0 %v10294_v31  ;;  %v8196_v36 = vshrl.u32 %v61_v33, 7 }
  0x6e   :  { %1152 = vmatmul.mubr.bf16.vlgmr.msra.gmra.mrb[36].mxu1 %v10294_v31  ;;  %1404 = vmatpush1.bf16.msra.mxu0 %v7767_v39 }
  0x6f   :  { %1445 = vmatpush1.bf16.msra.mxu1 %v7772_v40  ;;  %1405 = vmatprep.subr.bf16.mxu0 %v7777_v41  ;;  %v71_v39 = vsub.s32 2, %v8196_v36  ;;  %v63_v40 = vsub.s32 0, %v8196_v36  ;;  %v75_v41 = vsub.s32 3, %v8196_v36 }
  0x70   :  { %1446 = vmatprep.subr.bf16.mxu1 %v7782_v42  ;;  %1435 = vmatprep.mubr.bf16.mxu0 %v10294_v31  ;;  %v8204_v42 = vld [vmem:[%s10241_s2] sm:$0xff] }
  0x71   :  { %1476 = vmatprep.mubr.bf16.mxu1 %v10294_v31 }
  0x72   :  { %1406 = vmatpush1.bf16.msra.mxu0 %v7788_v43  ;;  %v67_v43 = vsub.s32 1, %v8196_v36 }
  0x73   :  { %1447 = vmatpush1.bf16.msra.mxu1 %v7795_v44  ;;  %1407 = vmatprep.subr.bf16.mxu0 %v7802_v45  ;;  %v8210_v45 = vrot.slane %v8204_v42, %v71_v39 }
  0x74   :  { %1448 = vmatprep.subr.bf16.mxu1 %v7809_v46  ;;  %v8213_v46 = vrot.slane %v8204_v42, %v63_v40 }
  0x76   :  { %1408 = vmatpush1.bf16.msra.mxu0 %v7815_v47 }
  0x77   :  { %1449 = vmatpush1.bf16.msra.mxu1 %v7821_v48  ;;  %1409 = vmatprep.subr.bf16.mxu0 %v7828_v49  ;;  %v8220_v49 = vrot.slane %v8204_v42, %v75_v41 }
  0x78   :  { %1450 = vmatprep.subr.bf16.mxu1 %v7839_v51 }
  0x7a   :  { %1410 = vmatpush1.bf16.msra.mxu0 %v7834_v50  ;;  %v8223_v50 = vrot.slane %v8204_v42, %v67_v43 }
  0x7b   :  { %1451 = vmatpush1.bf16.msra.mxu1 %v7845_v52  ;;  %1411 = vmatprep.subr.bf16.mxu0 %v7850_v53 }
  0x7c   :  { %1452 = vmatprep.subr.bf16.mxu1 %v7857_v54 }
  0x7e   :  { %1412 = vmatpush1.bf16.msra.mxu0 %v7866_v55 }
  0x7f   :  { %1453 = vmatpush1.bf16.msra.mxu1 %v7872_v56  ;;  %1413 = vmatprep.subr.bf16.mxu0 %v7877_v57 }
  0x80   :  { %1454 = vmatprep.subr.bf16.mxu1 %v7883_v58 }
  0x82   :  { %1414 = vmatpush1.bf16.msra.mxu0 %v7891_v59 }
  0x83   :  { %1455 = vmatpush1.bf16.msra.mxu1 %v7897_v60  ;;  %1415 = vmatprep.subr.bf16.mxu0 %v7902_v61 }
  0x84   :  { %1456 = vmatprep.subr.bf16.mxu1 %v7909_v62 }
  0x86   :  { %1416 = vmatpush1.bf16.msra.mxu0 %v7918_v63 }
  0x87   :  { %1457 = vmatpush1.bf16.msra.mxu1 %v7924_v0  ;;  %1417 = vmatprep.subr.bf16.mxu0 %v7929_v1 }
  0x88   :  { %1458 = vmatprep.subr.bf16.mxu1 %v7935_v2 }
  0x8a   :  { %1418 = vmatpush1.bf16.msra.mxu0 %v7943_v4 }
  0x8b   :  { %1459 = vmatpush1.bf16.msra.mxu1 %v7950_v5  ;;  %1706 = vmatprep.subr.bf16.mxu0 %v7955_v6 }
  0x8c   :  { %1747 = vmatprep.subr.bf16.mxu1 %v7963_v7 }
  0xe0   :  { %v8207_v44 = vpop.f32.mrb[0].mxu0  ;;  %v8217_v48 = vpop.f32.mrb[0].mxu1 }
  0xe1   :  { %v8215_v47 = vpop.f32.mrb[1].mxu0  ;;  %v8225_v52 = vpop.f32.mrb[1].mxu1 }
  0xe2   :  { %v252_v51 = vpop.f32.mrb[2].mxu0  ;;  %v325_v55 = vpop.f32.mrb[2].mxu1 }
  0xe3   :  { %v8228_v53 = vadd.f32 %v252_v51, %v8213_v46  ;;  %v254_v54 = vpop.f32.mrb[3].mxu0  ;;  %v8234_v57 = vadd.f32 %v325_v55, %v8210_v45  ;;  %v327_v58 = vpop.f32.mrb[3].mxu1 }
  0xe4   :  { %v8231_v56 = vadd.f32 %v254_v54, %v8223_v50  ;;  %v8237_v59 = vadd.f32 %v327_v58, %v8220_v49 }
  0xe6   :  { %10295 = vst [vmem:[#allocation6_spill] sm:$0xff] %v8231_v56  ;;  %10296 = vst [vmem:[#allocation7_spill] sm:$0xff] %v8237_v59 }
  0xe8   :  { %v258_v60 = vpop.f32.mrb[4].mxu0 }
  0xe9   :  { %v8240_v61 = vadd.f32 %v258_v60, %v8213_v46  ;;  %v260_v62 = vpop.f32.mrb[5].mxu0  ;;  %v331_v63 = vpop.f32.mrb[4].mxu1 }
  0xea   :  { %v8243_v0 = vadd.f32 %v260_v62, %v8223_v50  ;;  %v262_v1 = vpop.f32.mrb[6].mxu0  ;;  %v8246_v2 = vadd.f32 %v331_v63, %v8210_v45  ;;  %v333_v4 = vpop.f32.mrb[5].mxu1 }
  0xeb   :  { %10297 = vst [vmem:[#allocation8_spill] sm:$0xff] %v8240_v61  ;;  %v8249_v5 = vadd.f32 %v262_v1, %v8213_v46  ;;  %v264_v6 = vpop.f32.mrb[7].mxu0  ;;  %v8252_v7 = vadd.f32 %v333_v4, %v8220_v49  ;;  %v335_v33 = vpop.f32.mrb[6].mxu1 }
  0xec   :  { %10298 = vst [vmem:[#allocation9_spill] sm:$0xff] %v8243_v0  ;;  %10299 = vst [vmem:[#allocation10_spill] sm:$0xff] %v8246_v2  ;;  %v8255_v39 = vadd.f32 %v264_v6, %v8223_v50  ;;  %v8258_v40 = vadd.f32 %v335_v33, %v8210_v45  ;;  %v337_v41 = vpop.f32.mrb[7].mxu1 }
  0xed   :  { %10300 = vst [vmem:[#allocation11_spill] sm:$0xff] %v8249_v5  ;;  %10301 = vst [vmem:[#allocation12_spill] sm:$0xff] %v8252_v7  ;;  %v8261_v43 = vadd.f32 %v337_v41, %v8220_v49 }
  0xee   :  { %10302 = vst [vmem:[#allocation13_spill] sm:$0xff] %v8255_v39  ;;  %10303 = vst [vmem:[#allocation14_spill] sm:$0xff] %v8258_v40 }
  0xef   :  { %10304 = vst [vmem:[#allocation15_spill] sm:$0xff] %v8261_v43 }
  0xf0   :  { %v268_v51 = vpop.f32.mrb[8].mxu0 }
  0xf1   :  { %v8264_v54 = vadd.f32 %v268_v51, %v8213_v46  ;;  %v270_v55 = vpop.f32.mrb[9].mxu0  ;;  %v341_v58 = vpop.f32.mrb[8].mxu1 }
  0xf2   :  { %v8267_v60 = vadd.f32 %v270_v55, %v8223_v50  ;;  %v272_v62 = vpop.f32.mrb[10].mxu0  ;;  %v8270_v63 = vadd.f32 %v341_v58, %v8210_v45  ;;  %v343_v1 = vpop.f32.mrb[9].mxu1 }
  0xf3   :  { %10305 = vst [vmem:[#allocation16_spill] sm:$0xff] %v8264_v54  ;;  %v8273_v4 = vadd.f32 %v272_v62, %v8213_v46  ;;  %v274_v6 = vpop.f32.mrb[11].mxu0  ;;  %v8276_v33 = vadd.f32 %v343_v1, %v8220_v49  ;;  %v345_v41 = vpop.f32.mrb[10].mxu1 }
  0xf4   :  { %10306 = vst [vmem:[#allocation17_spill] sm:$0xff] %v8267_v60  ;;  %10307 = vst [vmem:[#allocation18_spill] sm:$0xff] %v8270_v63  ;;  %v8279_v51 = vadd.f32 %v274_v6, %v8223_v50  ;;  %v8282_v54 = vadd.f32 %v345_v41, %v8210_v45  ;;  %v347_v55 = vpop.f32.mrb[11].mxu1 }
  0xf5   :  { %10308 = vst [vmem:[#allocation19_spill] sm:$0xff] %v8273_v4  ;;  %10309 = vst [vmem:[#allocation20_spill] sm:$0xff] %v8276_v33  ;;  %v8285_v60 = vadd.f32 %v347_v55, %v8220_v49  ;;  %v79_v4 = vsub.s32 4, %v8196_v36  ;;  %v87_v55 = vsub.s32 6, %v8196_v36 }
  0xf6   :  { %10310 = vst [vmem:[#allocation21_spill] sm:$0xff] %v8279_v51  ;;  %10311 = vst [vmem:[#allocation22_spill] sm:$0xff] %v8282_v54  ;;  %v83_v51 = vsub.s32 5, %v8196_v36 }
  0xf7   :  { %10312 = vst [vmem:[#allocation23_spill] sm:$0xff] %v8285_v60 }
  0xf8   :  { %v278_v58 = vpop.f32.mrb[12].mxu0 }
  0xf9   :  { %v8288_v63 = vadd.f32 %v278_v58, %v8213_v46  ;;  %v280_v62 = vpop.f32.mrb[13].mxu0  ;;  %v351_v1 = vpop.f32.mrb[12].mxu1 }
  0xfa   :  { %v8292_v33 = vadd.f32 %v280_v62, %v8223_v50  ;;  %v282_v6 = vpop.f32.mrb[14].mxu0  ;;  %v8296_v41 = vadd.f32 %v351_v1, %v8210_v45  ;;  %v353_v54 = vpop.f32.mrb[13].mxu1  ;;  %v91_v62 = vsub.s32 7, %v8196_v36 }
  0xfb   :  { %10313 = vst [vmem:[#allocation24_spill] sm:$0xff] %v8288_v63  ;;  %v8300_v60 = vadd.f32 %v282_v6, %v8213_v46  ;;  %v284_v58 = vpop.f32.mrb[15].mxu0  ;;  %v8303_v63 = vadd.f32 %v353_v54, %v8220_v49  ;;  %v355_v43 = vpop.f32.mrb[14].mxu1  ;;  %v8322_v54 = vrot.slane %v8204_v42, %v87_v55 }
  0xfc   :  { %10314 = vst [vmem:[#allocation25_spill] sm:$0xff] %v8292_v33  ;;  %10315 = vst [vmem:[#allocation26_spill] sm:$0xff] %v8296_v41  ;;  %v8307_v33 = vadd.f32 %v284_v58, %v8223_v50  ;;  %v8310_v39 = vadd.f32 %v355_v43, %v8210_v45  ;;  %v357_v1 = vpop.f32.mrb[15].mxu1  ;;  %v8313_v41 = vrot.slane %v8204_v42, %v79_v4 }
  0xfd   :  { %10316 = vst [vmem:[#allocation27_spill] sm:$0xff] %v8300_v60  ;;  %10317 = vst [vmem:[#allocation28_spill] sm:$0xff] %v8303_v63  ;;  %v8316_v6 = vadd.f32 %v357_v1, %v8220_v49  ;;  %v8319_v60 = vrot.slane %v8204_v42, %v83_v51  ;;  %v8325_v36 = vrot.slane %v8204_v42, %v91_v62 }
  0xfe   :  { %10318 = vst [vmem:[#allocation29_spill] sm:$0xff] %v8307_v33  ;;  %10319 = vst [vmem:[#allocation30_spill] sm:$0xff] %v8310_v39 }
  0xff   :  { %10320 = vst [vmem:[#allocation31_spill] sm:$0xff] %v8316_v6 }
 0x100   :  { %v394_v58 = vpop.f32.mrb[16].mxu0 }
 0x101   :  { %v8328_v43 = vadd.f32 %v394_v58, %v8313_v41  ;;  %v396_v33 = vpop.f32.mrb[17].mxu0  ;;  %v467_v39 = vpop.f32.mrb[16].mxu1 }
 0x102   :  { %v8331_v4 = vadd.f32 %v396_v33, %v8319_v60  ;;  %v398_v1 = vpop.f32.mrb[18].mxu0  ;;  %v8334_v6 = vadd.f32 %v467_v39, %v8322_v54  ;;  %v469_v51 = vpop.f32.mrb[17].mxu1 }
 0x103   :  { %10321 = vst [vmem:[#allocation32_spill] sm:$0xff] %v8328_v43  ;;  %v8337_v55 = vadd.f32 %v398_v1, %v8313_v41  ;;  %v400_v63 = vpop.f32.mrb[19].mxu0  ;;  %v8340_v42 = vadd.f32 %v469_v51, %v8325_v36  ;;  %v471_v62 = vpop.f32.mrb[18].mxu1 }
 0x104   :  { %10322 = vst [vmem:[#allocation33_spill] sm:$0xff] %v8331_v4  ;;  %10323 = vst [vmem:[#allocation34_spill] sm:$0xff] %v8334_v6  ;;  %v8343_v58 = vadd.f32 %v400_v63, %v8319_v60  ;;  %v8346_v43 = vadd.f32 %v471_v62, %v8322_v54  ;;  %v473_v33 = vpop.f32.mrb[19].mxu1 }
 0x105   :  { %10324 = vst [vmem:[#allocation35_spill] sm:$0xff] %v8337_v55  ;;  %10325 = vst [vmem:[#allocation36_spill] sm:$0xff] %v8340_v42  ;;  %v8349_v4 = vadd.f32 %v473_v33, %v8325_v36 }
 0x106   :  { %10326 = vst [vmem:[#allocation37_spill] sm:$0xff] %v8343_v58  ;;  %10327 = vst [vmem:[#allocation38_spill] sm:$0xff] %v8346_v43 }
 0x107   :  { %10328 = vst [vmem:[#allocation39_spill] sm:$0xff] %v8349_v4 }
 0x108   :  { %v404_v39 = vpop.f32.mrb[20].mxu0 }
 0x109   :  { %v8352_v6 = vadd.f32 %v404_v39, %v8313_v41  ;;  %v406_v1 = vpop.f32.mrb[21].mxu0  ;;  %v477_v55 = vpop.f32.mrb[20].mxu1 }
 0x10a   :  { %v8355_v51 = vadd.f32 %v406_v1, %v8319_v60  ;;  %v408_v42 = vpop.f32.mrb[22].mxu0  ;;  %v8358_v63 = vadd.f32 %v477_v55, %v8322_v54  ;;  %v479_v58 = vpop.f32.mrb[21].mxu1 }
 0x10b   :  { %10329 = vst [vmem:[#allocation40_spill] sm:$0xff] %v8352_v6  ;;  %v8361_v62 = vadd.f32 %v408_v42, %v8313_v41  ;;  %v410_v43 = vpop.f32.mrb[23].mxu0  ;;  %v8364_v33 = vadd.f32 %v479_v58, %v8325_v36  ;;  %v481_v4 = vpop.f32.mrb[22].mxu1 }
 0x10c   :  { %10330 = vst [vmem:[#allocation41_spill] sm:$0xff] %v8355_v51  ;;  %10331 = vst [vmem:[#allocation42_spill] sm:$0xff] %v8358_v63  ;;  %v8367_v39 = vadd.f32 %v410_v43, %v8319_v60  ;;  %v8370_v6 = vadd.f32 %v481_v4, %v8322_v54  ;;  %v483_v1 = vpop.f32.mrb[23].mxu1 }
 0x10d   :  { %10332 = vst [vmem:[#allocation43_spill] sm:$0xff] %v8361_v62  ;;  %10333 = vst [vmem:[#allocation44_spill] sm:$0xff] %v8364_v33  ;;  %v8373_v51 = vadd.f32 %v483_v1, %v8325_v36 }
 0x10e   :  { %10334 = vst [vmem:[#allocation45_spill] sm:$0xff] %v8367_v39  ;;  %10335 = vst [vmem:[#allocation46_spill] sm:$0xff] %v8370_v6 }
 0x10f   :  { %10336 = vst [vmem:[#allocation47_spill] sm:$0xff] %v8373_v51 }
 0x110   :  { %v414_v55 = vpop.f32.mrb[24].mxu0 }
 0x111   :  { %v8376_v63 = vadd.f32 %v414_v55, %v8313_v41  ;;  %v416_v42 = vpop.f32.mrb[25].mxu0  ;;  %v487_v62 = vpop.f32.mrb[24].mxu1 }
 0x112   :  { %v8379_v58 = vadd.f32 %v416_v42, %v8319_v60  ;;  %v418_v33 = vpop.f32.mrb[26].mxu0  ;;  %v8382_v43 = vadd.f32 %v487_v62, %v8322_v54  ;;  %v489_v39 = vpop.f32.mrb[25].mxu1 }
 0x113   :  { %10337 = vst [vmem:[#allocation48_spill] sm:$0xff] %v8376_v63  ;;  %v8385_v4 = vadd.f32 %v418_v33, %v8313_v41  ;;  %v420_v6 = vpop.f32.mrb[27].mxu0  ;;  %v8388_v1 = vadd.f32 %v489_v39, %v8325_v36  ;;  %v491_v51 = vpop.f32.mrb[26].mxu1 }
 0x114   :  { %10338 = vst [vmem:[#allocation49_spill] sm:$0xff] %v8379_v58  ;;  %10339 = vst [vmem:[#allocation50_spill] sm:$0xff] %v8382_v43  ;;  %v8391_v55 = vadd.f32 %v420_v6, %v8319_v60  ;;  %v8394_v63 = vadd.f32 %v491_v51, %v8322_v54  ;;  %v493_v42 = vpop.f32.mrb[27].mxu1 }
 0x115   :  { %10340 = vst [vmem:[#allocation51_spill] sm:$0xff] %v8385_v4  ;;  %10341 = vst [vmem:[#allocation52_spill] sm:$0xff] %v8388_v1  ;;  %v8397_v58 = vadd.f32 %v493_v42, %v8325_v36 }
 0x116   :  { %10342 = vst [vmem:[#allocation53_spill] sm:$0xff] %v8391_v55  ;;  %10343 = vst [vmem:[#allocation54_spill] sm:$0xff] %v8394_v63  ;;  %v251_v63 = vadd.f32 %v8215_v47, %v8223_v50 }
 0x117   :  { %10344 = vst [vmem:[#allocation55_spill] sm:$0xff] %v8397_v58 }
 0x118   :  { %v424_v62 = vpop.f32.mrb[28].mxu0 }
 0x119   :  { %v8400_v43 = vadd.f32 %v424_v62, %v8313_v41  ;;  %v426_v33 = vpop.f32.mrb[29].mxu0  ;;  %v497_v40 = vpop.f32.mrb[28].mxu1  ;;  %v249_v62 = vadd.f32 %v8207_v44, %v8213_v46 }
 0x11a   :  { %v8403_v39 = vadd.f32 %v426_v33, %v8319_v60  ;;  %v428_v1 = vpop.f32.mrb[30].mxu0  ;;  %v8406_v6 = vadd.f32 %v497_v40, %v8322_v54  ;;  %v499_v5 = vpop.f32.mrb[29].mxu1  ;;  %v322_v33 = vadd.f32 %v8217_v48, %v8210_v45  ;;  %v324_v40 = vadd.f32 %v8225_v52, %v8220_v49 }
 0x11b   :  { %10345 = vst [vmem:[#allocation56_spill] sm:$0xff] %v8400_v43  ;;  %v430_v51 = vpop.f32.mrb[31].mxu0  ;;  %v8409_v55 = vadd.f32 %v499_v5, %v8325_v36  ;;  %v501_v42 = vpop.f32.mrb[30].mxu1 }
 0x11c   :  { %10346 = vst [vmem:[#allocation57_spill] sm:$0xff] %v8403_v39  ;;  %10347 = vst [vmem:[#allocation58_spill] sm:$0xff] %v8406_v6  ;;  %v503_v58 = vpop.f32.mrb[31].mxu1 }
 0x11d   :  { %10348 = vst [vmem:[#allocation59_spill] sm:$0xff] %v8409_v55 }
 0x120   :  { %v810_v4 = vpop.f32.mrb[32].mxu0 }
 0x121   :  { %v858_v7 = vadd.f32 %v810_v4, %v249_v62  ;;  %v851_v0 = vpop.f32.mrb[32].mxu1  ;;  %v812_v2 = vpop.f32.mrb[33].mxu0  ;;  %v504_v62 = vadd.f32 %v503_v58, %v8325_v36 }
 0x122   :  { %v860_v5 = vadd.f32 %v851_v0, %v322_v33  ;;  %v859_v61 = vadd.f32 %v812_v2, %v251_v63  ;;  %v853_v55 = vpop.f32.mrb[33].mxu1  ;;  %v814_v39 = vpop.f32.mrb[34].mxu0 }
 0x123   :  { %v6214_v6 = vmul.f32 -1.442695, %v858_v7  ;;  %v861_v43 = vadd.f32 %v853_v55, %v324_v40  ;;  %v815_v44 = vpop.f32.mrb[35].mxu0  ;;  %v855_v46 = vpop.f32.mrb[34].mxu1 }
 0x124   :  { %v6215_v59 = vmul.f32 -1.442695, %v859_v61  ;;  %v856_v47 = vpop.f32.mrb[35].mxu1  ;;  %v429_v61 = vadd.f32 %v428_v1, %v8313_v41 }
 0x125   :  { %7295 = vpow2.f32 %v6214_v6  ;;  %v6216_v45 = vmul.f32 -1.442695, %v861_v43  ;;  %v502_v43 = vadd.f32 %v501_v42, %v8322_v54 }
 0x126   :  { %7297 = vpow2.f32 %v6215_v59  ;;  %v431_v59 = vadd.f32 %v430_v51, %v8319_v60 }
 0x127   :  { %7299 = vpow2.f32 %v6216_v45 }
 0x128   :  { %7301 = vtanh.f32 %v860_v5 }
 0x12f   :  { %v7296_v48 = vpop.eup %7295 }
 0x130   :  { %v7298_v50 = vpop.eup %7297  ;;  %v865_v56 = vadd.f32 1.0, %v7296_v48 }
 0x131   :  { %v871_v49 = vadd.f32 1.0, %v7298_v50  ;;  %v7300_v52 = vpop.eup %7299 }
 0x132   :  { %7303 = vrcp.f32 %v865_v56  ;;  %v7302_v0 = vpop.eup %7301  ;;  %v878_v4 = vadd.f32 1.0, %v7300_v52 }
 0x133   :  { %7305 = vrcp.f32 %v871_v49 }
 0x134   :  { %7307 = vrcp.f32 %v878_v4  ;;  %v8580_v4 = vld [vmem:[%s10239_s3 + $0x80] ss:$16 sps:$4 sm:$0xff]  }
 0x13c   :  { %v7304_v2 = vpop.eup %7303 }
 0x13d   :  { %v7306_v7 = vpop.eup %7305  ;;  %v882_v63 = vmul.f32 %v7304_v2, %v7302_v0 }
 0x13e   :  { %v881_v55 = vmul.f32 0.0, %v7306_v7  ;;  %v7308_v45 = vpop.eup %7307 }
 0x140   :  { %v8422_v39 = vadd.f32 %v882_v63, %v881_v55  ;;  %v1112_v6 = vpop.f32.mrb[36].mxu0  ;;  %v8585_v55 = vld [vmem:[%s10239_s3 + $0x88] ss:$16 sps:$4 sm:$0xff]  }
 0x141   :  { %v1160_v56 = vadd.f32 %v1112_v6, %v429_v61  ;;  %v1153_v33 = vpop.f32.mrb[36].mxu1  ;;  %v1114_v40 = vpop.f32.mrb[37].mxu0  ;;  %v8594_v61 = vld [vmem:[%s10239_s3 + $0xa4] ss:$16 sps:$4 sm:$0xff]   ;;  %v8609_v6 = vld [vmem:[%s10239_s3 + $0xa8] ss:$16 sps:$4 sm:$0xff]  }
 0x142   :  { %7309 = vtanh.f32 %v8422_v39  ;;  %v1162_v5 = vadd.f32 %v1153_v33, %v502_v43  ;;  %v1161_v44 = vadd.f32 %v1114_v40, %v431_v59  ;;  %v1155_v46 = vpop.f32.mrb[37].mxu1  ;;  %v1116_v47 = vpop.f32.mrb[38].mxu0  ;;  %v8599_v59 = vld [vmem:[%s10239_s3 + $0xac] ss:$16 sps:$4 sm:$0xff]   ;;  %v8604_v43 = vld [vmem:[%s10239_s3 + $0xa0] ss:$16 sps:$4 sm:$0xff]  }
 0x143   :  { %v6249_v41 = vmul.f32 -1.442695, %v1160_v56  ;;  %v1163_v1 = vadd.f32 %v1155_v46, %v504_v62  ;;  %v1117_v60 = vpop.f32.mrb[39].mxu0  ;;  %v1157_v51 = vpop.f32.mrb[38].mxu1  ;;  %v8618_v62 = vld [vmem:[%s10239_s3 + $0xc4] ss:$16 sps:$4 sm:$0xff]  }
 0x144   :  { %v6250_v54 = vmul.f32 -1.442695, %v1161_v44  ;;  %v1158_v42 = vpop.f32.mrb[39].mxu1  ;;  %v8623_v56 = vld [vmem:[%s10239_s3 + $0xcc] ss:$16 sps:$4 sm:$0xff]  }
 0x145   :  { %7311 = vpow2.f32 %v6249_v41  ;;  %v6251_v58 = vmul.f32 -1.442695, %v1163_v1  ;;  %v8628_v33 = vld [vmem:[%s10239_s3 + $0xc0] ss:$16 sps:$4 sm:$0xff]   ;;  %v8633_v40 = vld [vmem:[%s10239_s3 + $0xc8] ss:$16 sps:$4 sm:$0xff]  }
 0x146   :  { %7313 = vpow2.f32 %v6250_v54  ;;  %v8647_v44 = vld [vmem:[%s10239_s3 + $0xec] ss:$16 sps:$4 sm:$0xff]   ;;  %v8652_v46 = vld [vmem:[%s10239_s3 + $0xe0] ss:$16 sps:$4 sm:$0xff]   ;;  %v8657_v47 = vld [vmem:[%s10239_s3 + $0xe8] ss:$16 sps:$4 sm:$0xff]  }
 0x147   :  { %7315 = vpow2.f32 %v6251_v58  ;;  %v8666_v41 = vld [vmem:[%s10240_s4 + $0x4] ss:$16 sps:$4 sm:$0xff]   ;;  %v8671_v1 = vld [vmem:[%s10240_s4 + $0xc] ss:$16 sps:$4 sm:$0xff]  }
 0x148   :  { %7317 = vtanh.f32 %v1162_v5  ;;  %v8642_v5 = vld [vmem:[%s10239_s3 + $0xe4] ss:$16 sps:$4 sm:$0xff]   ;;  %v10352_v58 = vld [vmem:[#allocation6_spill] sm:$0xff] }
 0x14c   :  { %v7310_v36 = vpop.eup %7309 }
 0x14d   :  { %v8426_v48 = vmul.f32 %v7310_v36, %v7308_v45 }
 0x14f   :  { %10349 = vst [vmem:[#allocation60_spill] sm:$0xff] %v8426_v48  ;;  %v7312_v50 = vpop.eup %7311  ;;  %v1210_v49 = vpack.c.bf16 %v8426_v48, %v8426_v48  ;;  %v8854_v48 = vld [vmem:[%s10240_s4 + $0xe4] ss:$16 sps:$4 sm:$0xff]  }
 0x150   :  { %v7314_v52 = vpop.eup %7313  ;;  %v1167_v0 = vadd.f32 1.0, %v7312_v50 }
 0x151   :  { %v1173_v2 = vadd.f32 1.0, %v7314_v52  ;;  %1436 = vmatmul.mubr.bf16.vlgmr.msra.gmra.mrb[40].mxu0 %v1210_v49  ;;  %1477 = vmatmul.mubr.bf16.vlgmr.msra.gmra.mrb[40].mxu1 %v1210_v49  ;;  %v10353_v49 = vld [vmem:[#allocation7_spill] sm:$0xff] }
 0x152   :  { %7319 = vrcp.f32 %v1167_v0  ;;  %1707 = vmatpush1.bf16.msra.mxu0 %v7972_v8  ;;  %1748 = vmatpush1.bf16.msra.mxu1 %v7978_v9  ;;  %v7316_v8 = vpop.eup %7315 }
 0x153   :  { %7321 = vrcp.f32 %v1173_v2  ;;  %1708 = vmatprep.subr.bf16.mxu0 %v7983_v10  ;;  %1749 = vmatprep.subr.bf16.mxu1 %v7989_v11  ;;  %v7318_v9 = vpop.eup %7317 }
 0x154   :  { %1738 = vmatprep.mubr.bf16.mxu0 %v10294_v31  ;;  %1779 = vmatprep.mubr.bf16.mxu1 %v10294_v31 }
 0x156   :  { %1709 = vmatpush1.bf16.msra.mxu0 %v7997_v12  ;;  %1750 = vmatpush1.bf16.msra.mxu1 %v8003_v13  ;;  %v1180_v12 = vadd.f32 1.0, %v7316_v8 }
 0x157   :  { %1710 = vmatprep.subr.bf16.mxu0 %v8008_v14  ;;  %1751 = vmatprep.subr.bf16.mxu1 %v8015_v15  ;;  %v10350_v14 = vld [vmem:[#allocation5_spill] sm:$0xff] }
 0x158   :  { %7323 = vrcp.f32 %v1180_v12 }
 0x15a   :  { %1711 = vmatpush1.bf16.msra.mxu0 %v8023_v16  ;;  %1752 = vmatpush1.bf16.msra.mxu1 %v8029_v17 }
 0x15b   :  { %1712 = vmatprep.subr.bf16.mxu0 %v8034_v18  ;;  %1753 = vmatprep.subr.bf16.mxu1 %v8041_v19  ;;  %v8474_v19 = vld [vmem:[%s10239_s3 + $0x4] ss:$16 sps:$4 sm:$0xff]  }
 0x15c   :  { %v7320_v10 = vpop.eup %7319 }
 0x15d   :  { %v7322_v11 = vpop.eup %7321  ;;  %v1184_v7 = vmul.f32 %v7320_v10, %v7318_v9 }
 0x15e   :  { %v1183_v63 = vmul.f32 0.0, %v7322_v11  ;;  %1713 = vmatpush1.bf16.msra.mxu0 %v8049_v20  ;;  %1754 = vmatpush1.bf16.msra.mxu1 %v8054_v21  ;;  %v8479_v20 = vld [vmem:[%s10239_s3 + $0xc] ss:$16 sps:$4 sm:$0xff]   ;;  %v8489_v21 = vld [vmem:[%s10239_s3 + $0x8] ss:$16 sps:$4 sm:$0xff]  }
 0x15f   :  { %1714 = vmatprep.subr.bf16.mxu0 %v8059_v22  ;;  %1755 = vmatprep.subr.bf16.mxu1 %v8065_v23  ;;  %v8498_v22 = vld [vmem:[%s10239_s3 + $0x24] ss:$16 sps:$4 sm:$0xff]   ;;  %v8503_v23 = vld [vmem:[%s10239_s3 + $0x2c] ss:$16 sps:$4 sm:$0xff]  }
 0x160   :  { %v8448_v13 = vadd.f32 %v1184_v7, %v1183_v63 }
 0x162   :  { %7325 = vtanh.f32 %v8448_v13  ;;  %1715 = vmatpush1.bf16.msra.mxu0 %v8073_v24  ;;  %1756 = vmatpush1.bf16.msra.mxu1 %v8078_v25  ;;  %v7324_v15 = vpop.eup %7323  ;;  %v8508_v24 = vld [vmem:[%s10239_s3 + $0x20] ss:$16 sps:$4 sm:$0xff]   ;;  %v8513_v25 = vld [vmem:[%s10239_s3 + $0x28] ss:$16 sps:$4 sm:$0xff]  }
 0x163   :  { %1716 = vmatprep.subr.bf16.mxu0 %v8083_v26  ;;  %1757 = vmatprep.subr.bf16.mxu1 %v8089_v27  ;;  %v8522_v26 = vld [vmem:[%s10239_s3 + $0x44] ss:$16 sps:$4 sm:$0xff]   ;;  %v8527_v27 = vld [vmem:[%s10239_s3 + $0x4c] ss:$16 sps:$4 sm:$0xff]  }
 0x166   :  { %1717 = vmatpush1.bf16.msra.mxu0 %v8097_v28  ;;  %1758 = vmatpush1.bf16.msra.mxu1 %v8102_v29  ;;  %v8532_v28 = vld [vmem:[%s10239_s3 + $0x40] ss:$16 sps:$4 sm:$0xff]   ;;  %v8537_v29 = vld [vmem:[%s10239_s3 + $0x48] ss:$16 sps:$4 sm:$0xff]  }
 0x167   :  { %1718 = vmatprep.subr.bf16.mxu0 %v8107_v30  ;;  %1759 = vmatprep.subr.bf16.mxu1 %v10350_v14  ;;  %v8546_v30 = vld [vmem:[%s10239_s3 + $0x64] ss:$16 sps:$4 sm:$0xff]  }
 0x16a   :  { %1719 = vmatpush1.bf16.msra.mxu0 %v8121_v32  ;;  %1760 = vmatpush1.bf16.msra.mxu1 %v8126_v34  ;;  %v8551_v32 = vld [vmem:[%s10239_s3 + $0x6c] ss:$16 sps:$4 sm:$0xff]   ;;  %v8556_v34 = vld [vmem:[%s10239_s3 + $0x60] ss:$16 sps:$4 sm:$0xff]  }
 0x16b   :  { %1720 = vmatprep.subr.bf16.mxu0 %v8131_v35  ;;  %1761 = vmatprep.subr.bf16.mxu1 %v8137_v37  ;;  %v8561_v35 = vld [vmem:[%s10239_s3 + $0x68] ss:$16 sps:$4 sm:$0xff]   ;;  %v8570_v37 = vld [vmem:[%s10239_s3 + $0x84] ss:$16 sps:$4 sm:$0xff]  }
 0x16c   :  { %v7326_v16 = vpop.eup %7325 }
 0x16d   :  { %v8463_v17 = vmul.f32 %v7326_v16, %v7324_v15 }
 0x16e   :  { %1721 = vmatpush1.bf16.msra.mxu0 %v8145_v38  ;;  %1762 = vmatpush1.bf16.msra.mxu1 %v8150_v3  ;;  %v8484_v3 = vld [vmem:[%s10239_s3] ss:$16 sps:$4 sm:$0xff]   ;;  %v8575_v38 = vld [vmem:[%s10239_s3 + $0x8c] ss:$16 sps:$4 sm:$0xff]  }
 0x16f   :  { %10351 = vst [vmem:[#allocation5_spill] sm:$0xff] %v8463_v17  ;;  %v1513_v18 = vpack.c.bf16 %v8463_v17, %v8463_v17  ;;  %2031 = vmatprep.subr.bf16.mxu0 %v8474_v19  ;;  %2072 = vmatprep.subr.bf16.mxu1 %v8479_v20  ;;  %v8796_v17 = vld [vmem:[%s10240_s4 + $0x88] ss:$16 sps:$4 sm:$0xff]  }
 0x171   :  { %1739 = vmatmul.mubr.bf16.vlgmr.msra.gmra.mrb[44].mxu0 %v1513_v18  ;;  %1780 = vmatmul.mubr.bf16.vlgmr.msra.gmra.mrb[44].mxu1 %v1513_v18 }
 0x172   :  { %2063 = vmatprep.mubr.bf16.mxu0 %v10294_v31  ;;  %2104 = vmatprep.mubr.bf16.mxu1 %v10294_v31 }
 0x173   :  { %2032 = vmatpush1.bf16.msra.mxu0 %v8484_v3  ;;  %2073 = vmatpush1.bf16.msra.mxu1 %v8489_v21 }
 0x174   :  { %2033 = vmatprep.subr.bf16.mxu0 %v8498_v22  ;;  %2074 = vmatprep.subr.bf16.mxu1 %v8503_v23 }
 0x177   :  { %2034 = vmatpush1.bf16.msra.mxu0 %v8508_v24  ;;  %2075 = vmatpush1.bf16.msra.mxu1 %v8513_v25 }
 0x178   :  { %2035 = vmatprep.subr.bf16.mxu0 %v8522_v26  ;;  %2076 = vmatprep.subr.bf16.mxu1 %v8527_v27 }
 0x17b   :  { %2036 = vmatpush1.bf16.msra.mxu0 %v8532_v28  ;;  %2077 = vmatpush1.bf16.msra.mxu1 %v8537_v29 }
 0x17c   :  { %2037 = vmatprep.subr.bf16.mxu0 %v8546_v30  ;;  %2078 = vmatprep.subr.bf16.mxu1 %v8551_v32 }
 0x17f   :  { %2038 = vmatpush1.bf16.msra.mxu0 %v8556_v34  ;;  %2079 = vmatpush1.bf16.msra.mxu1 %v8561_v35 }
 0x180   :  { %2039 = vmatprep.subr.bf16.mxu0 %v8570_v37  ;;  %2080 = vmatprep.subr.bf16.mxu1 %v8575_v38 }
 0x183   :  { %2040 = vmatpush1.bf16.msra.mxu0 %v8580_v4  ;;  %2081 = vmatpush1.bf16.msra.mxu1 %v8585_v55 }
 0x184   :  { %2041 = vmatprep.subr.bf16.mxu0 %v8594_v61  ;;  %2082 = vmatprep.subr.bf16.mxu1 %v8599_v59 }
 0x187   :  { %2042 = vmatpush1.bf16.msra.mxu0 %v8604_v43  ;;  %2083 = vmatpush1.bf16.msra.mxu1 %v8609_v6 }
 0x188   :  { %2043 = vmatprep.subr.bf16.mxu0 %v8618_v62  ;;  %2084 = vmatprep.subr.bf16.mxu1 %v8623_v56 }
 0x18b   :  { %2044 = vmatpush1.bf16.msra.mxu0 %v8628_v33  ;;  %2085 = vmatpush1.bf16.msra.mxu1 %v8633_v40 }
 0x18c   :  { %2045 = vmatprep.subr.bf16.mxu0 %v8642_v5  ;;  %2086 = vmatprep.subr.bf16.mxu1 %v8647_v44 }
 0x18f   :  { %2046 = vmatpush1.bf16.msra.mxu0 %v8652_v46  ;;  %2087 = vmatpush1.bf16.msra.mxu1 %v8657_v47 }
 0x190   :  { %2334 = vmatprep.subr.bf16.mxu0 %v8666_v41  ;;  %2375 = vmatprep.subr.bf16.mxu1 %v8671_v1 }
 0x224   :  { %v1437_v60 = vpop.f32.mrb[40].mxu0  ;;  %v1478_v51 = vpop.f32.mrb[40].mxu1 }
 0x225   :  { %v1485_v54 = vadd.f32 %v1437_v60, %v8228_v53  ;;  %v1487_v42 = vadd.f32 %v1478_v51, %v8234_v57  ;;  %v1439_v45 = vpop.f32.mrb[41].mxu0  ;;  %v1480_v36 = vpop.f32.mrb[41].mxu1 }
 0x226   :  { %v1486_v50 = vadd.f32 %v1439_v45, %v10352_v58  ;;  %v1488_v52 = vadd.f32 %v1480_v36, %v10353_v49  ;;  %v1441_v0 = vpop.f32.mrb[42].mxu0  ;;  %v1482_v2 = vpop.f32.mrb[42].mxu1 }
 0x227   :  { %v6284_v8 = vmul.f32 -1.442695, %v1485_v54  ;;  %v1442_v9 = vpop.f32.mrb[43].mxu0  ;;  %v1483_v10 = vpop.f32.mrb[43].mxu1 }
 0x228   :  { %v6285_v11 = vmul.f32 -1.442695, %v1486_v50  ;;  %v6286_v7 = vmul.f32 -1.442695, %v1488_v52  ;;  %v10354_v50 = vld [vmem:[#allocation56_spill] sm:$0xff]  ;;  %v10355_v52 = vld [vmem:[#allocation58_spill] sm:$0xff] }
 0x229   :  { %7327 = vpow2.f32 %v6284_v8  ;;  %v10356_v8 = vld [vmem:[#allocation57_spill] sm:$0xff]  ;;  %v10357_v10 = vld [vmem:[#allocation59_spill] sm:$0xff] }
 0x22a   :  { %7329 = vpow2.f32 %v6285_v11 }
 0x22b   :  { %7331 = vpow2.f32 %v6286_v7 }
 0x22c   :  { %7333 = vtanh.f32 %v1487_v42 }
 0x233   :  { %v7328_v12 = vpop.eup %7327 }
 0x234   :  { %v7330_v63 = vpop.eup %7329  ;;  %v1492_v53 = vadd.f32 1.0, %v7328_v12 }
 0x235   :  { %v1498_v57 = vadd.f32 1.0, %v7330_v63  ;;  %v7332_v14 = vpop.eup %7331 }
 0x236   :  { %7335 = vrcp.f32 %v1492_v53  ;;  %v7334_v15 = vpop.eup %7333  ;;  %v1505_v51 = vadd.f32 1.0, %v7332_v14 }
 0x237   :  { %7337 = vrcp.f32 %v1498_v57 }
 0x238   :  { %7339 = vrcp.f32 %v1505_v51  ;;  %v8697_v51 = vld [vmem:[%s10240_s4 + $0x8] ss:$16 sps:$4 sm:$0xff]  }
 0x240   :  { %v7336_v16 = vpop.eup %7335 }
 0x241   :  { %v7338_v18 = vpop.eup %7337  ;;  %v1509_v60 = vmul.f32 %v7336_v16, %v7334_v15 }
 0x242   :  { %v1508_v54 = vmul.f32 %v7338_v18, %v8422_v39  ;;  %v7340_v14 = vpop.eup %7339 }
 0x244   :  { %v8680_v45 = vadd.f32 %v1509_v60, %v1508_v54  ;;  %v1740_v36 = vpop.f32.mrb[44].mxu0  ;;  %v1781_v58 = vpop.f32.mrb[44].mxu1  ;;  %v8692_v60 = vld [vmem:[%s10240_s4] ss:$16 sps:$4 sm:$0xff]  }
 0x245   :  { %v1788_v49 = vadd.f32 %v1740_v36, %v10354_v50  ;;  %v1790_v42 = vadd.f32 %v1781_v58, %v10355_v52  ;;  %v1742_v0 = vpop.f32.mrb[45].mxu0  ;;  %v1783_v2 = vpop.f32.mrb[45].mxu1  ;;  %v8704_v58 = vld [vmem:[%s10240_s4 + $0x24] ss:$16 sps:$4 sm:$0xff]   ;;  %v8709_v50 = vld [vmem:[%s10240_s4 + $0x2c] ss:$16 sps:$4 sm:$0xff]  }
 0x246   :  { %7341 = vtanh.f32 %v8680_v45  ;;  %v1789_v9 = vadd.f32 %v1742_v0, %v10356_v8  ;;  %v1791_v11 = vadd.f32 %v1783_v2, %v10357_v10  ;;  %v1744_v7 = vpop.f32.mrb[46].mxu0  ;;  %v1785_v12 = vpop.f32.mrb[46].mxu1  ;;  %v8716_v2 = vld [vmem:[%s10240_s4 + $0x20] ss:$16 sps:$4 sm:$0xff]   ;;  %v8721_v8 = vld [vmem:[%s10240_s4 + $0x28] ss:$16 sps:$4 sm:$0xff]  }
 0x247   :  { %v6319_v39 = vmul.f32 -1.442695, %v1788_v49  ;;  %v1745_v63 = vpop.f32.mrb[47].mxu0  ;;  %v1786_v53 = vpop.f32.mrb[47].mxu1  ;;  %v8742_v10 = vld [vmem:[%s10240_s4 + $0x40] ss:$16 sps:$4 sm:$0xff]  }
 0x248   :  { %v6320_v57 = vmul.f32 -1.442695, %v1789_v9  ;;  %v6321_v16 = vmul.f32 -1.442695, %v1791_v11  ;;  %v8733_v9 = vld [vmem:[%s10240_s4 + $0x4c] ss:$16 sps:$4 sm:$0xff]  }
 0x249   :  { %7343 = vpow2.f32 %v6319_v39  ;;  %v8747_v11 = vld [vmem:[%s10240_s4 + $0x48] ss:$16 sps:$4 sm:$0xff]   ;;  %v8754_v7 = vld [vmem:[%s10240_s4 + $0x64] ss:$16 sps:$4 sm:$0xff]   ;;  %v8759_v12 = vld [vmem:[%s10240_s4 + $0x6c] ss:$16 sps:$4 sm:$0xff]  }
 0x24a   :  { %7345 = vpow2.f32 %v6320_v57  ;;  %v8766_v63 = vld [vmem:[%s10240_s4 + $0x60] ss:$16 sps:$4 sm:$0xff]   ;;  %v8771_v53 = vld [vmem:[%s10240_s4 + $0x68] ss:$16 sps:$4 sm:$0xff]  }
 0x24b   :  { %7347 = vpow2.f32 %v6321_v16 }
 0x24c   :  { %7349 = vtanh.f32 %v1790_v42  ;;  %v8728_v42 = vld [vmem:[%s10240_s4 + $0x44] ss:$16 sps:$4 sm:$0xff]  }
 0x250   :  { %v7342_v15 = vpop.eup %7341 }
 0x251   :  { %v8687_v18 = vmul.f32 %v7342_v15, %v7340_v14  ;;  %v8778_v14 = vld [vmem:[%s10240_s4 + $0x84] ss:$16 sps:$4 sm:$0xff]   ;;  %v8783_v15 = vld [vmem:[%s10240_s4 + $0x8c] ss:$16 sps:$4 sm:$0xff]  }
 0x253   :  { %10358 = vst [vmem:[#allocation6_spill] sm:$0xff] %v8687_v18  ;;  %v7344_v54 = vpop.eup %7343  ;;  %v1838_v36 = vpack.c.bf16 %v8687_v18, %v8687_v18  ;;  %v8847_v18 = vld [vmem:[%s10240_s4 + $0xc8] ss:$16 sps:$4 sm:$0xff]  }
 0x254   :  { %v7346_v49 = vpop.eup %7345  ;;  %v1795_v52 = vadd.f32 1.0, %v7344_v54  ;;  %10365 = vst [vmem:[#allocation62_spill] sm:$0xff] %v8847_v18 }
 0x255   :  { %v1801_v0 = vadd.f32 1.0, %v7346_v49  ;;  %2064 = vmatmul.mubr.bf16.vlgmr.msra.gmra.mrb[48].mxu0 %v1838_v36  ;;  %2105 = vmatmul.mubr.bf16.vlgmr.msra.gmra.mrb[48].mxu1 %v1838_v36  ;;  %v7348_v39 = vpop.eup %7347 }
 0x256   :  { %7351 = vrcp.f32 %v1795_v52  ;;  %2335 = vmatpush1.bf16.msra.mxu0 %v8692_v60  ;;  %2376 = vmatpush1.bf16.msra.mxu1 %v8697_v51  ;;  %v7350_v57 = vpop.eup %7349  ;;  %v1808_v49 = vadd.f32 1.0, %v7348_v39  ;;  %v8808_v39 = vld [vmem:[%s10240_s4 + $0xac] ss:$16 sps:$4 sm:$0xff]  }
 0x257   :  { %7353 = vrcp.f32 %v1801_v0  ;;  %2336 = vmatprep.subr.bf16.mxu0 %v8704_v58  ;;  %2377 = vmatprep.subr.bf16.mxu1 %v8709_v50  ;;  %v8791_v0 = vld [vmem:[%s10240_s4 + $0x80] ss:$16 sps:$4 sm:$0xff]   ;;  %10360 = vst [vmem:[#allocation56_spill] sm:$0xff] %v8808_v39 }
 0x258   :  { %2366 = vmatprep.mubr.bf16.mxu0 %v10294_v31  ;;  %2407 = vmatprep.mubr.bf16.mxu1 %v10294_v31  ;;  %7355 = vrcp.f32 %v1808_v49  ;;  %v8835_v49 = vld [vmem:[%s10240_s4 + $0xcc] ss:$16 sps:$4 sm:$0xff]  }
 0x259   :  { %10364 = vst [vmem:[#allocation61_spill] sm:$0xff] %v8835_v49 }
 0x25a   :  { %2337 = vmatpush1.bf16.msra.mxu0 %v8716_v2  ;;  %2378 = vmatpush1.bf16.msra.mxu1 %v8721_v8 }
 0x25b   :  { %2338 = vmatprep.subr.bf16.mxu0 %v8728_v42  ;;  %2379 = vmatprep.subr.bf16.mxu1 %v8733_v9 }
 0x25e   :  { %2339 = vmatpush1.bf16.msra.mxu0 %v8742_v10  ;;  %2380 = vmatpush1.bf16.msra.mxu1 %v8747_v11 }
 0x25f   :  { %2340 = vmatprep.subr.bf16.mxu0 %v8754_v7  ;;  %2381 = vmatprep.subr.bf16.mxu1 %v8759_v12 }
 0x260   :  { %v7352_v16 = vpop.eup %7351 }
 0x261   :  { %v7354_v54 = vpop.eup %7353  ;;  %v1812_v36 = vmul.f32 %v7352_v16, %v7350_v57  ;;  %v8818_v16 = vld [vmem:[%s10240_s4 + $0xa0] ss:$16 sps:$4 sm:$0xff]  }
 0x262   :  { %v1811_v52 = vmul.f32 %v7354_v54, %v8448_v13  ;;  %2341 = vmatpush1.bf16.msra.mxu0 %v8766_v63  ;;  %2382 = vmatpush1.bf16.msra.mxu1 %v8771_v53  ;;  %v8803_v13 = vld [vmem:[%s10240_s4 + $0xa4] ss:$16 sps:$4 sm:$0xff]   ;;  %10361 = vst [vmem:[#allocation58_spill] sm:$0xff] %v8818_v16  ;;  %v8823_v54 = vld [vmem:[%s10240_s4 + $0xa8] ss:$16 sps:$4 sm:$0xff]  }
 0x263   :  { %2342 = vmatprep.subr.bf16.mxu0 %v8778_v14  ;;  %2383 = vmatprep.subr.bf16.mxu1 %v8783_v15  ;;  %10359 = vst [vmem:[#allocation7_spill] sm:$0xff] %v8803_v13  ;;  %10362 = vst [vmem:[#allocation57_spill] sm:$0xff] %v8823_v54 }
 0x264   :  { %v8810_v57 = vadd.f32 %v1812_v36, %v1811_v52  ;;  %v8830_v36 = vld [vmem:[%s10240_s4 + $0xc4] ss:$16 sps:$4 sm:$0xff]   ;;  %v8842_v52 = vld [vmem:[%s10240_s4 + $0xc0] ss:$16 sps:$4 sm:$0xff]  }
 0x265   :  { %10363 = vst [vmem:[#allocation59_spill] sm:$0xff] %v8830_v36 }
 0x266   :  { %7357 = vtanh.f32 %v8810_v57  ;;  %2343 = vmatpush1.bf16.msra.mxu0 %v8791_v0  ;;  %2384 = vmatpush1.bf16.msra.mxu1 %v8796_v17 }
 0x267   :  { %2344 = vmatprep.subr.bf16.mxu0 %v8803_v13  ;;  %2385 = vmatprep.subr.bf16.mxu1 %v8808_v39 }
 0x26a   :  { %2345 = vmatpush1.bf16.msra.mxu0 %v8818_v16  ;;  %2386 = vmatpush1.bf16.msra.mxu1 %v8823_v54  ;;  %v8859_v54 = vld [vmem:[%s10240_s4 + $0xec] ss:$16 sps:$4 sm:$0xff]   ;;  %v7356_v16 = vpop.eup %7355 }
 0x26b   :  { %2346 = vmatprep.subr.bf16.mxu0 %v8830_v36  ;;  %2387 = vmatprep.subr.bf16.mxu1 %v8835_v49  ;;  %v8866_v36 = vld [vmem:[%s10240_s4 + $0xe0] ss:$16 sps:$4 sm:$0xff]   ;;  %v8871_v49 = vld [vmem:[%s10240_s4 + $0xe8] ss:$16 sps:$4 sm:$0xff]  }
 0x26e   :  { %2347 = vmatpush1.bf16.msra.mxu0 %v8842_v52  ;;  %2388 = vmatpush1.bf16.msra.mxu1 %v8847_v18 }
 0x26f   :  { %2348 = vmatprep.subr.bf16.mxu0 %v8854_v48  ;;  %2389 = vmatprep.subr.bf16.mxu1 %v8859_v54 }
 0x270   :  { %v7358_v39 = vpop.eup %7357 }
 0x271   :  { %v8875_v13 = vmul.f32 %v7358_v39, %v7356_v16  ;;  %v10372_v39 = vld [vmem:[#allocation54_spill] sm:$0xff] }
 0x272   :  { %2349 = vmatpush1.bf16.msra.mxu0 %v8866_v36  ;;  %2390 = vmatpush1.bf16.msra.mxu1 %v8871_v49 }
 0x273   :  { %10366 = vst [vmem:[#allocation63_spill] sm:$0xff] %v8875_v13  ;;  %v2141_v18 = vpack.c.bf16 %v8875_v13, %v8875_v13  ;;  %2659 = vmatprep.subr.bf16.mxu0 %v8474_v19  ;;  %2700 = vmatprep.subr.bf16.mxu1 %v8479_v20  ;;  %v9295_v13 = vld [vmem:[%s10240_s4 + $0x80] ss:$16 sps:$4 sm:$0xff]  }
 0x275   :  { %2367 = vmatmul.mubr.bf16.vlgmr.msra.gmra.mrb[52].mxu0 %v2141_v18  ;;  %2408 = vmatmul.mubr.bf16.vlgmr.msra.gmra.mrb[52].mxu1 %v2141_v18 }
 0x276   :  { %2660 = vmatpush1.bf16.msra.mxu0 %v8484_v3  ;;  %2701 = vmatpush1.bf16.msra.mxu1 %v8489_v21  ;;  %v10367_v3 = vld [vmem:[#allocation8_spill] sm:$0xff] }
 0x277   :  { %2661 = vmatprep.subr.bf16.mxu0 %v8498_v22  ;;  %2702 = vmatprep.subr.bf16.mxu1 %v8503_v23  ;;  %v10368_v22 = vld [vmem:[#allocation10_spill] sm:$0xff] }
 0x278   :  { %2691 = vmatprep.mubr.bf16.mxu0 %v10294_v31  ;;  %2732 = vmatprep.mubr.bf16.mxu1 %v10294_v31 }
 0x27a   :  { %2662 = vmatpush1.bf16.msra.mxu0 %v8508_v24  ;;  %2703 = vmatpush1.bf16.msra.mxu1 %v8513_v25 }
 0x27b   :  { %2663 = vmatprep.subr.bf16.mxu0 %v8522_v26  ;;  %2704 = vmatprep.subr.bf16.mxu1 %v8527_v27  ;;  %v10369_v26 = vld [vmem:[#allocation9_spill] sm:$0xff] }
 0x27e   :  { %2664 = vmatpush1.bf16.msra.mxu0 %v8532_v28  ;;  %2705 = vmatpush1.bf16.msra.mxu1 %v8537_v29  ;;  %v10370_v28 = vld [vmem:[#allocation12_spill] sm:$0xff] }
 0x27f   :  { %2665 = vmatprep.subr.bf16.mxu0 %v8546_v30  ;;  %2706 = vmatprep.subr.bf16.mxu1 %v8551_v32 }
 0x282   :  { %2666 = vmatpush1.bf16.msra.mxu0 %v8556_v34  ;;  %2707 = vmatpush1.bf16.msra.mxu1 %v8561_v35 }
 0x283   :  { %2667 = vmatprep.subr.bf16.mxu0 %v8570_v37  ;;  %2708 = vmatprep.subr.bf16.mxu1 %v8575_v38 }
 0x286   :  { %2668 = vmatpush1.bf16.msra.mxu0 %v8580_v4  ;;  %2709 = vmatpush1.bf16.msra.mxu1 %v8585_v55 }
 0x287   :  { %2669 = vmatprep.subr.bf16.mxu0 %v8594_v61  ;;  %2710 = vmatprep.subr.bf16.mxu1 %v8599_v59 }
 0x28a   :  { %2670 = vmatpush1.bf16.msra.mxu0 %v8604_v43  ;;  %2711 = vmatpush1.bf16.msra.mxu1 %v8609_v6 }
 0x28b   :  { %2671 = vmatprep.subr.bf16.mxu0 %v8618_v62  ;;  %2712 = vmatprep.subr.bf16.mxu1 %v8623_v56 }
 0x28e   :  { %2672 = vmatpush1.bf16.msra.mxu0 %v8628_v33  ;;  %2713 = vmatpush1.bf16.msra.mxu1 %v8633_v40 }
 0x28f   :  { %2673 = vmatprep.subr.bf16.mxu0 %v8642_v5  ;;  %2714 = vmatprep.subr.bf16.mxu1 %v8647_v44 }
 0x292   :  { %2674 = vmatpush1.bf16.msra.mxu0 %v8652_v46  ;;  %2715 = vmatpush1.bf16.msra.mxu1 %v8657_v47 }
 0x293   :  { %2962 = vmatprep.subr.bf16.mxu0 %v8666_v41  ;;  %3003 = vmatprep.subr.bf16.mxu1 %v8671_v1  ;;  %v10371_v1 = vld [vmem:[#allocation51_spill] sm:$0xff] }
 0x328   :  { %v2065_v19 = vpop.f32.mrb[48].mxu0  ;;  %v2106_v20 = vpop.f32.mrb[48].mxu1 }
 0x329   :  { %v2113_v21 = vadd.f32 %v2065_v19, %v10367_v3  ;;  %v2115_v23 = vadd.f32 %v2106_v20, %v10368_v22  ;;  %v2067_v24 = vpop.f32.mrb[49].mxu0  ;;  %v2108_v25 = vpop.f32.mrb[49].mxu1  ;;  %v10373_v3 = vld [vmem:[#allocation53_spill] sm:$0xff]  ;;  %v10374_v22 = vld [vmem:[#allocation55_spill] sm:$0xff] }
 0x32a   :  { %v2114_v27 = vadd.f32 %v2067_v24, %v10369_v26  ;;  %v2116_v29 = vadd.f32 %v2108_v25, %v10370_v28  ;;  %v2069_v30 = vpop.f32.mrb[50].mxu0  ;;  %v2110_v32 = vpop.f32.mrb[50].mxu1 }
 0x32b   :  { %v6354_v34 = vmul.f32 -1.442695, %v2113_v21  ;;  %v2070_v35 = vpop.f32.mrb[51].mxu0  ;;  %v2111_v37 = vpop.f32.mrb[51].mxu1 }
 0x32c   :  { %v6355_v38 = vmul.f32 -1.442695, %v2114_v27  ;;  %v6356_v4 = vmul.f32 -1.442695, %v2116_v29 }
 0x32d   :  { %7359 = vpow2.f32 %v6354_v34 }
 0x32e   :  { %7361 = vpow2.f32 %v6355_v38 }
 0x32f   :  { %7363 = vpow2.f32 %v6356_v4 }
 0x330   :  { %7365 = vtanh.f32 %v2115_v23 }
 0x337   :  { %v7360_v55 = vpop.eup %7359 }
 0x338   :  { %v7362_v61 = vpop.eup %7361  ;;  %v2120_v59 = vadd.f32 1.0, %v7360_v55 }
 0x339   :  { %v2126_v43 = vadd.f32 1.0, %v7362_v61  ;;  %v7364_v6 = vpop.eup %7363 }
 0x33a   :  { %7367 = vrcp.f32 %v2120_v59  ;;  %v7366_v62 = vpop.eup %7365  ;;  %v2133_v5 = vadd.f32 1.0, %v7364_v6  ;;  %v9012_v59 = vld [vmem:[%s10239_s3 + $0x20] ss:$16 sps:$4 sm:$0xff]   ;;  %v9026_v6 = vld [vmem:[%s10239_s3 + $0x44] ss:$16 sps:$4 sm:$0xff]  }
 0x33b   :  { %7369 = vrcp.f32 %v2126_v43  ;;  %v9017_v43 = vld [vmem:[%s10239_s3 + $0x28] ss:$16 sps:$4 sm:$0xff]  }
 0x33c   :  { %7371 = vrcp.f32 %v2133_v5  ;;  %v9055_v5 = vld [vmem:[%s10239_s3 + $0x6c] ss:$16 sps:$4 sm:$0xff]  }
 0x344   :  { %v7368_v56 = vpop.eup %7367 }
 0x345   :  { %v7370_v33 = vpop.eup %7369  ;;  %v2137_v40 = vmul.f32 %v7368_v56, %v7366_v62  ;;  %v9031_v62 = vld [vmem:[%s10239_s3 + $0x4c] ss:$16 sps:$4 sm:$0xff]   ;;  %v9036_v56 = vld [vmem:[%s10239_s3 + $0x40] ss:$16 sps:$4 sm:$0xff]  }
 0x346   :  { %v2136_v44 = vmul.f32 %v7370_v33, %v8680_v45  ;;  %v7372_v29 = vpop.eup %7371  ;;  %v9041_v33 = vld [vmem:[%s10239_s3 + $0x48] ss:$16 sps:$4 sm:$0xff]  }
 0x348   :  { %v8922_v46 = vadd.f32 %v2137_v40, %v2136_v44  ;;  %v2368_v47 = vpop.f32.mrb[52].mxu0  ;;  %v2409_v41 = vpop.f32.mrb[52].mxu1  ;;  %v9050_v40 = vld [vmem:[%s10239_s3 + $0x64] ss:$16 sps:$4 sm:$0xff]   ;;  %v9060_v44 = vld [vmem:[%s10239_s3 + $0x60] ss:$16 sps:$4 sm:$0xff]  }
 0x349   :  { %v2416_v18 = vadd.f32 %v2368_v47, %v10371_v1  ;;  %v2418_v16 = vadd.f32 %v2409_v41, %v10372_v39  ;;  %v2370_v19 = vpop.f32.mrb[53].mxu0  ;;  %v2411_v20 = vpop.f32.mrb[53].mxu1  ;;  %v9065_v47 = vld [vmem:[%s10239_s3 + $0x68] ss:$16 sps:$4 sm:$0xff]   ;;  %v9074_v41 = vld [vmem:[%s10239_s3 + $0x84] ss:$16 sps:$4 sm:$0xff]  }
 0x34a   :  { %7373 = vtanh.f32 %v8922_v46  ;;  %v2417_v21 = vadd.f32 %v2370_v19, %v10373_v3  ;;  %v2419_v23 = vadd.f32 %v2411_v20, %v10374_v22  ;;  %v2372_v24 = vpop.f32.mrb[54].mxu0  ;;  %v2413_v25 = vpop.f32.mrb[54].mxu1  ;;  %v9079_v1 = vld [vmem:[%s10239_s3 + $0x8c] ss:$16 sps:$4 sm:$0xff]   ;;  %v9089_v39 = vld [vmem:[%s10239_s3 + $0x88] ss:$16 sps:$4 sm:$0xff]  }
 0x34b   :  { %v6389_v45 = vmul.f32 -1.442695, %v2416_v18  ;;  %v2373_v26 = vpop.f32.mrb[55].mxu0  ;;  %v2414_v27 = vpop.f32.mrb[55].mxu1  ;;  %v9084_v18 = vld [vmem:[%s10239_s3 + $0x80] ss:$16 sps:$4 sm:$0xff]  }
 0x34c   :  { %v6390_v28 = vmul.f32 -1.442695, %v2417_v21  ;;  %v6391_v32 = vmul.f32 -1.442695, %v2419_v23  ;;  %v9103_v19 = vld [vmem:[%s10239_s3 + $0xac] ss:$16 sps:$4 sm:$0xff]  }
 0x34d   :  { %7375 = vpow2.f32 %v6389_v45  ;;  %v9108_v20 = vld [vmem:[%s10239_s3 + $0xa0] ss:$16 sps:$4 sm:$0xff]   ;;  %v9113_v3 = vld [vmem:[%s10239_s3 + $0xa8] ss:$16 sps:$4 sm:$0xff]   ;;  %v9122_v21 = vld [vmem:[%s10239_s3 + $0xc4] ss:$16 sps:$4 sm:$0xff]  }
 0x34e   :  { %7377 = vpow2.f32 %v6390_v28  ;;  %v9127_v22 = vld [vmem:[%s10239_s3 + $0xcc] ss:$16 sps:$4 sm:$0xff]   ;;  %v9132_v23 = vld [vmem:[%s10239_s3 + $0xc0] ss:$16 sps:$4 sm:$0xff]   ;;  %v9137_v24 = vld [vmem:[%s10239_s3 + $0xc8] ss:$16 sps:$4 sm:$0xff]  }
 0x34f   :  { %7379 = vpow2.f32 %v6391_v32  ;;  %v9146_v25 = vld [vmem:[%s10239_s3 + $0xe4] ss:$16 sps:$4 sm:$0xff]   ;;  %v9151_v45 = vld [vmem:[%s10239_s3 + $0xec] ss:$16 sps:$4 sm:$0xff]   ;;  %v9156_v26 = vld [vmem:[%s10239_s3 + $0xe0] ss:$16 sps:$4 sm:$0xff]  }
 0x350   :  { %7381 = vtanh.f32 %v2418_v16  ;;  %v9098_v16 = vld [vmem:[%s10239_s3 + $0xa4] ss:$16 sps:$4 sm:$0xff]   ;;  %v9161_v27 = vld [vmem:[%s10239_s3 + $0xe8] ss:$16 sps:$4 sm:$0xff]  }
 0x351   :  { %v9170_v28 = vld [vmem:[%s10240_s4 + $0x4] ss:$16 sps:$4 sm:$0xff]  }
 0x354   :  { %v7374_v30 = vpop.eup %7373 }
 0x355   :  { %v8929_v34 = vmul.f32 %v7374_v30, %v7372_v29  ;;  %v9175_v29 = vld [vmem:[%s10240_s4 + $0xc] ss:$16 sps:$4 sm:$0xff]  }
 0x357   :  { %10375 = vst [vmem:[#allocation8_spill] sm:$0xff] %v8929_v34  ;;  %v7376_v35 = vpop.eup %7375  ;;  %v2466_v37 = vpack.c.bf16 %v8929_v34, %v8929_v34  ;;  %v9358_v34 = vld [vmem:[%s10240_s4 + $0xe4] ss:$16 sps:$4 sm:$0xff]  }
 0x358   :  { %v7378_v38 = vpop.eup %7377  ;;  %v2423_v4 = vadd.f32 1.0, %v7376_v35  ;;  %v10384_v35 = vld [vmem:[#allocation11_spill] sm:$0xff] }
 0x359   :  { %v2429_v55 = vadd.f32 1.0, %v7378_v38  ;;  %2692 = vmatmul.mubr.bf16.vlgmr.msra.gmra.mrb[56].mxu0 %v2466_v37  ;;  %2733 = vmatmul.mubr.bf16.vlgmr.msra.gmra.mrb[56].mxu1 %v2466_v37  ;;  %v10385_v38 = vld [vmem:[#allocation14_spill] sm:$0xff] }
 0x35a   :  { %7383 = vrcp.f32 %v2423_v4  ;;  %2963 = vmatpush1.bf16.msra.mxu0 %v8692_v60  ;;  %3004 = vmatpush1.bf16.msra.mxu1 %v8697_v51  ;;  %v7380_v60 = vpop.eup %7379 }
 0x35b   :  { %7385 = vrcp.f32 %v2429_v55  ;;  %2964 = vmatprep.subr.bf16.mxu0 %v8704_v58  ;;  %3005 = vmatprep.subr.bf16.mxu1 %v8709_v50  ;;  %v7382_v51 = vpop.eup %7381 }
 0x35c   :  { %2994 = vmatprep.mubr.bf16.mxu0 %v10294_v31  ;;  %3035 = vmatprep.mubr.bf16.mxu1 %v10294_v31 }
 0x35e   :  { %2965 = vmatpush1.bf16.msra.mxu0 %v8716_v2  ;;  %3006 = vmatpush1.bf16.msra.mxu1 %v8721_v8  ;;  %v2436_v2 = vadd.f32 1.0, %v7380_v60 }
 0x35f   :  { %2966 = vmatprep.subr.bf16.mxu0 %v8728_v42  ;;  %3007 = vmatprep.subr.bf16.mxu1 %v8733_v9  ;;  %v10376_v9 = vld [vmem:[#allocation7_spill] sm:$0xff] }
 0x360   :  { %7387 = vrcp.f32 %v2436_v2 }
 0x362   :  { %2967 = vmatpush1.bf16.msra.mxu0 %v8742_v10  ;;  %3008 = vmatpush1.bf16.msra.mxu1 %v8747_v11  ;;  %v10377_v10 = vld [vmem:[#allocation56_spill] sm:$0xff]  ;;  %v10378_v11 = vld [vmem:[#allocation58_spill] sm:$0xff] }
 0x363   :  { %2968 = vmatprep.subr.bf16.mxu0 %v8754_v7  ;;  %3009 = vmatprep.subr.bf16.mxu1 %v8759_v12  ;;  %v10379_v7 = vld [vmem:[#allocation57_spill] sm:$0xff]  ;;  %v10380_v12 = vld [vmem:[#allocation59_spill] sm:$0xff] }
 0x364   :  { %v7384_v58 = vpop.eup %7383 }
 0x365   :  { %v7386_v50 = vpop.eup %7385  ;;  %v2440_v61 = vmul.f32 %v7384_v58, %v7382_v51  ;;  %v10386_v51 = vld [vmem:[#allocation13_spill] sm:$0xff] }
 0x366   :  { %v2439_v8 = vmul.f32 %v7386_v50, %v8810_v57  ;;  %2969 = vmatpush1.bf16.msra.mxu0 %v8766_v63  ;;  %3010 = vmatpush1.bf16.msra.mxu1 %v8771_v53  ;;  %v10381_v63 = vld [vmem:[#allocation61_spill] sm:$0xff]  ;;  %v10382_v53 = vld [vmem:[#allocation62_spill] sm:$0xff]  ;;  %v10387_v50 = vld [vmem:[#allocation15_spill] sm:$0xff] }
 0x367   :  { %2970 = vmatprep.subr.bf16.mxu0 %v8778_v14  ;;  %3011 = vmatprep.subr.bf16.mxu1 %v8783_v15  ;;  %v8983_v57 = vld [vmem:[%s10239_s3 + $0xc] ss:$16 sps:$4 sm:$0xff]  }
 0x368   :  { %v8952_v42 = vadd.f32 %v2440_v61, %v2439_v8 }
 0x36a   :  { %7389 = vtanh.f32 %v8952_v42  ;;  %2971 = vmatpush1.bf16.msra.mxu0 %v8791_v0  ;;  %3012 = vmatpush1.bf16.msra.mxu1 %v8796_v17  ;;  %v7388_v14 = vpop.eup %7387 }
 0x36b   :  { %2972 = vmatprep.subr.bf16.mxu0 %v10376_v9  ;;  %3013 = vmatprep.subr.bf16.mxu1 %v10377_v10 }
 0x36e   :  { %2973 = vmatpush1.bf16.msra.mxu0 %v10378_v11  ;;  %3014 = vmatpush1.bf16.msra.mxu1 %v10379_v7 }
 0x36f   :  { %2974 = vmatprep.subr.bf16.mxu0 %v10380_v12  ;;  %3015 = vmatprep.subr.bf16.mxu1 %v10381_v63 }
 0x372   :  { %2975 = vmatpush1.bf16.msra.mxu0 %v8842_v52  ;;  %3016 = vmatpush1.bf16.msra.mxu1 %v10382_v53  ;;  %v9007_v52 = vld [vmem:[%s10239_s3 + $0x2c] ss:$16 sps:$4 sm:$0xff]  }
 0x373   :  { %2976 = vmatprep.subr.bf16.mxu0 %v8854_v48  ;;  %3017 = vmatprep.subr.bf16.mxu1 %v8859_v54  ;;  %v8978_v48 = vld [vmem:[%s10239_s3 + $0x4] ss:$16 sps:$4 sm:$0xff]   ;;  %v8988_v54 = vld [vmem:[%s10239_s3] ss:$16 sps:$4 sm:$0xff]  }
 0x374   :  { %v7390_v17 = vpop.eup %7389 }
 0x375   :  { %v8967_v15 = vmul.f32 %v7390_v17, %v7388_v14 }
 0x376   :  { %2977 = vmatpush1.bf16.msra.mxu0 %v8866_v36  ;;  %3018 = vmatpush1.bf16.msra.mxu1 %v8871_v49  ;;  %v8993_v36 = vld [vmem:[%s10239_s3 + $0x8] ss:$16 sps:$4 sm:$0xff]   ;;  %v9002_v49 = vld [vmem:[%s10239_s3 + $0x24] ss:$16 sps:$4 sm:$0xff]  }
 0x377   :  { %10383 = vst [vmem:[#allocation10_spill] sm:$0xff] %v8967_v15  ;;  %v2769_v0 = vpack.c.bf16 %v8967_v15, %v8967_v15  ;;  %3281 = vmatprep.subr.bf16.mxu0 %v8978_v48  ;;  %3322 = vmatprep.subr.bf16.mxu1 %v8983_v57  ;;  %v9300_v15 = vld [vmem:[%s10240_s4 + $0x88] ss:$16 sps:$4 sm:$0xff]  }
 0x379   :  { %2995 = vmatmul.mubr.bf16.vlgmr.msra.gmra.mrb[60].mxu0 %v2769_v0  ;;  %3036 = vmatmul.mubr.bf16.vlgmr.msra.gmra.mrb[60].mxu1 %v2769_v0 }
 0x37a   :  { %3313 = vmatprep.mubr.bf16.mxu0 %v10294_v31  ;;  %3354 = vmatprep.mubr.bf16.mxu1 %v10294_v31 }
 0x37b   :  { %3282 = vmatpush1.bf16.msra.mxu0 %v8988_v54  ;;  %3323 = vmatpush1.bf16.msra.mxu1 %v8993_v36 }
 0x37c   :  { %3283 = vmatprep.subr.bf16.mxu0 %v9002_v49  ;;  %3324 = vmatprep.subr.bf16.mxu1 %v9007_v52 }
 0x37f   :  { %3284 = vmatpush1.bf16.msra.mxu0 %v9012_v59  ;;  %3325 = vmatpush1.bf16.msra.mxu1 %v9017_v43 }
 0x380   :  { %3285 = vmatprep.subr.bf16.mxu0 %v9026_v6  ;;  %3326 = vmatprep.subr.bf16.mxu1 %v9031_v62 }
 0x383   :  { %3286 = vmatpush1.bf16.msra.mxu0 %v9036_v56  ;;  %3327 = vmatpush1.bf16.msra.mxu1 %v9041_v33 }
 0x384   :  { %3287 = vmatprep.subr.bf16.mxu0 %v9050_v40  ;;  %3328 = vmatprep.subr.bf16.mxu1 %v9055_v5 }
 0x387   :  { %3288 = vmatpush1.bf16.msra.mxu0 %v9060_v44  ;;  %3329 = vmatpush1.bf16.msra.mxu1 %v9065_v47 }
 0x388   :  { %3289 = vmatprep.subr.bf16.mxu0 %v9074_v41  ;;  %3330 = vmatprep.subr.bf16.mxu1 %v9079_v1 }
 0x38b   :  { %3290 = vmatpush1.bf16.msra.mxu0 %v9084_v18  ;;  %3331 = vmatpush1.bf16.msra.mxu1 %v9089_v39 }
 0x38c   :  { %3291 = vmatprep.subr.bf16.mxu0 %v9098_v16  ;;  %3332 = vmatprep.subr.bf16.mxu1 %v9103_v19 }
 0x38f   :  { %3292 = vmatpush1.bf16.msra.mxu0 %v9108_v20  ;;  %3333 = vmatpush1.bf16.msra.mxu1 %v9113_v3 }
 0x390   :  { %3293 = vmatprep.subr.bf16.mxu0 %v9122_v21  ;;  %3334 = vmatprep.subr.bf16.mxu1 %v9127_v22 }
 0x393   :  { %3294 = vmatpush1.bf16.msra.mxu0 %v9132_v23  ;;  %3335 = vmatpush1.bf16.msra.mxu1 %v9137_v24 }
 0x394   :  { %3295 = vmatprep.subr.bf16.mxu0 %v9146_v25  ;;  %3336 = vmatprep.subr.bf16.mxu1 %v9151_v45 }
 0x397   :  { %3296 = vmatpush1.bf16.msra.mxu0 %v9156_v26  ;;  %3337 = vmatpush1.bf16.msra.mxu1 %v9161_v27 }
 0x398   :  { %3584 = vmatprep.subr.bf16.mxu0 %v9170_v28  ;;  %3625 = vmatprep.subr.bf16.mxu1 %v9175_v29 }
 0x42c   :  { %v2693_v30 = vpop.f32.mrb[56].mxu0  ;;  %v2734_v32 = vpop.f32.mrb[56].mxu1 }
 0x42d   :  { %v2741_v37 = vadd.f32 %v2693_v30, %v10384_v35  ;;  %v2743_v4 = vadd.f32 %v2734_v32, %v10385_v38  ;;  %v2695_v55 = vpop.f32.mrb[57].mxu0  ;;  %v2736_v60 = vpop.f32.mrb[57].mxu1 }
 0x42e   :  { %v2742_v58 = vadd.f32 %v2695_v55, %v10386_v51  ;;  %v2744_v61 = vadd.f32 %v2736_v60, %v10387_v50  ;;  %v2697_v2 = vpop.f32.mrb[58].mxu0  ;;  %v2738_v8 = vpop.f32.mrb[58].mxu1  ;;  %v10388_v50 = vld [vmem:[#allocation48_spill] sm:$0xff] }
 0x42f   :  { %v6424_v9 = vmul.f32 -1.442695, %v2741_v37  ;;  %v2698_v10 = vpop.f32.mrb[59].mxu0  ;;  %v2739_v11 = vpop.f32.mrb[59].mxu1  ;;  %v10389_v2 = vld [vmem:[#allocation50_spill] sm:$0xff] }
 0x430   :  { %v6425_v7 = vmul.f32 -1.442695, %v2742_v58  ;;  %v6426_v12 = vmul.f32 -1.442695, %v2744_v61  ;;  %v10390_v10 = vld [vmem:[#allocation49_spill] sm:$0xff] }
 0x431   :  { %7391 = vpow2.f32 %v6424_v9 }
 0x432   :  { %7393 = vpow2.f32 %v6425_v7  ;;  %v10391_v7 = vld [vmem:[#allocation52_spill] sm:$0xff] }
 0x433   :  { %7395 = vpow2.f32 %v6426_v12 }
 0x434   :  { %7397 = vtanh.f32 %v2743_v4 }
 0x43b   :  { %v7392_v63 = vpop.eup %7391 }
 0x43c   :  { %v7394_v53 = vpop.eup %7393  ;;  %v2748_v14 = vadd.f32 1.0, %v7392_v63 }
 0x43d   :  { %v2754_v17 = vadd.f32 1.0, %v7394_v53  ;;  %v7396_v0 = vpop.eup %7395 }
 0x43e   :  { %7399 = vrcp.f32 %v2748_v14  ;;  %v7398_v30 = vpop.eup %7397  ;;  %v2761_v37 = vadd.f32 1.0, %v7396_v0 }
 0x43f   :  { %7401 = vrcp.f32 %v2754_v17 }
 0x440   :  { %7403 = vrcp.f32 %v2761_v37  ;;  %v9196_v37 = vld [vmem:[%s10240_s4] ss:$16 sps:$4 sm:$0xff]  }
 0x448   :  { %v7400_v32 = vpop.eup %7399 }
 0x449   :  { %v7402_v35 = vpop.eup %7401  ;;  %v2765_v38 = vmul.f32 %v7400_v32, %v7398_v30 }
 0x44a   :  { %v2764_v55 = vmul.f32 %v7402_v35, %v8922_v46  ;;  %v7404_v30 = vpop.eup %7403 }
 0x44c   :  { %v9184_v60 = vadd.f32 %v2765_v38, %v2764_v55  ;;  %v2996_v51 = vpop.f32.mrb[60].mxu0  ;;  %v3037_v58 = vpop.f32.mrb[60].mxu1  ;;  %v9201_v55 = vld [vmem:[%s10240_s4 + $0x8] ss:$16 sps:$4 sm:$0xff]  }
 0x44d   :  { %v3044_v61 = vadd.f32 %v2996_v51, %v10388_v50  ;;  %v3046_v4 = vadd.f32 %v3037_v58, %v10389_v2  ;;  %v2998_v8 = vpop.f32.mrb[61].mxu0  ;;  %v3039_v9 = vpop.f32.mrb[61].mxu1  ;;  %v9208_v50 = vld [vmem:[%s10240_s4 + $0x24] ss:$16 sps:$4 sm:$0xff]  }
 0x44e   :  { %7405 = vtanh.f32 %v9184_v60  ;;  %v3045_v11 = vadd.f32 %v2998_v8, %v10390_v10  ;;  %v3047_v12 = vadd.f32 %v3039_v9, %v10391_v7  ;;  %v3000_v63 = vpop.f32.mrb[62].mxu0  ;;  %v3041_v53 = vpop.f32.mrb[62].mxu1  ;;  %v9220_v10 = vld [vmem:[%s10240_s4 + $0x20] ss:$16 sps:$4 sm:$0xff]   ;;  %v9237_v7 = vld [vmem:[%s10240_s4 + $0x4c] ss:$16 sps:$4 sm:$0xff]  }
 0x44f   :  { %v6459_v46 = vmul.f32 -1.442695, %v3044_v61  ;;  %v3001_v14 = vpop.f32.mrb[63].mxu0  ;;  %v3042_v17 = vpop.f32.mrb[63].mxu1  ;;  %v9213_v61 = vld [vmem:[%s10240_s4 + $0x2c] ss:$16 sps:$4 sm:$0xff]  }
 0x450   :  { %v6460_v0 = vmul.f32 -1.442695, %v3045_v11  ;;  %v6461_v35 = vmul.f32 -1.442695, %v3047_v12  ;;  %v9225_v11 = vld [vmem:[%s10240_s4 + $0x28] ss:$16 sps:$4 sm:$0xff]  }
 0x451   :  { %7407 = vpow2.f32 %v6459_v46  ;;  %v9246_v12 = vld [vmem:[%s10240_s4 + $0x40] ss:$16 sps:$4 sm:$0xff]   ;;  %v9251_v63 = vld [vmem:[%s10240_s4 + $0x48] ss:$16 sps:$4 sm:$0xff]   ;;  %v9258_v53 = vld [vmem:[%s10240_s4 + $0x64] ss:$16 sps:$4 sm:$0xff]  }
 0x452   :  { %7409 = vpow2.f32 %v6460_v0  ;;  %v9263_v46 = vld [vmem:[%s10240_s4 + $0x6c] ss:$16 sps:$4 sm:$0xff]   ;;  %v9270_v17 = vld [vmem:[%s10240_s4 + $0x60] ss:$16 sps:$4 sm:$0xff]   ;;  %v9275_v0 = vld [vmem:[%s10240_s4 + $0x68] ss:$16 sps:$4 sm:$0xff]  }
 0x453   :  { %7411 = vpow2.f32 %v6461_v35  ;;  %v9287_v35 = vld [vmem:[%s10240_s4 + $0x8c] ss:$16 sps:$4 sm:$0xff]  }
 0x454   :  { %7413 = vtanh.f32 %v3046_v4  ;;  %v9232_v4 = vld [vmem:[%s10240_s4 + $0x44] ss:$16 sps:$4 sm:$0xff]  }
 0x458   :  { %v7406_v32 = vpop.eup %7405 }
 0x459   :  { %v9191_v38 = vmul.f32 %v7406_v32, %v7404_v30  ;;  %v9282_v32 = vld [vmem:[%s10240_s4 + $0x84] ss:$16 sps:$4 sm:$0xff]  }
 0x45b   :  { %10392 = vst [vmem:[#allocation9_spill] sm:$0xff] %v9191_v38  ;;  %v7408_v51 = vpop.eup %7407  ;;  %v3088_v58 = vpack.c.bf16 %v9191_v38, %v9191_v38  ;;  %v9351_v38 = vld [vmem:[%s10240_s4 + $0xc8] ss:$16 sps:$4 sm:$0xff]  }
 0x45c   :  { %v7410_v2 = vpop.eup %7409  ;;  %v3051_v8 = vadd.f32 1.0, %v7408_v51  ;;  %10399 = vst [vmem:[#allocation56_spill] sm:$0xff] %v9351_v38 }
 0x45d   :  { %v3057_v9 = vadd.f32 1.0, %v7410_v2  ;;  %3314 = vmatmul.mubr.bf16.vlgmr.msra.gmra.mrb[64].mxu0 %v3088_v58  ;;  %3355 = vmatmul.mubr.bf16.vlgmr.msra.gmra.mrb[64].mxu1 %v3088_v58  ;;  %v7412_v14 = vpop.eup %7411 }
 0x45e   :  { %7415 = vrcp.f32 %v3051_v8  ;;  %3585 = vmatpush1.bf16.msra.mxu0 %v9196_v37  ;;  %3626 = vmatpush1.bf16.msra.mxu1 %v9201_v55  ;;  %v7414_v30 = vpop.eup %7413  ;;  %v3064_v8 = vadd.f32 1.0, %v7412_v14  ;;  %v9312_v14 = vld [vmem:[%s10240_s4 + $0xac] ss:$16 sps:$4 sm:$0xff]  }
 0x45f   :  { %7417 = vrcp.f32 %v3057_v9  ;;  %3586 = vmatprep.subr.bf16.mxu0 %v9208_v50  ;;  %3627 = vmatprep.subr.bf16.mxu1 %v9213_v61  ;;  %10394 = vst [vmem:[#allocation51_spill] sm:$0xff] %v9312_v14 }
 0x460   :  { %3616 = vmatprep.mubr.bf16.mxu0 %v10294_v31  ;;  %3657 = vmatprep.mubr.bf16.mxu1 %v10294_v31  ;;  %7419 = vrcp.f32 %v3064_v8  ;;  %v9339_v8 = vld [vmem:[%s10240_s4 + $0xcc] ss:$16 sps:$4 sm:$0xff]  }
 0x461   :  { %10398 = vst [vmem:[#allocation7_spill] sm:$0xff] %v9339_v8 }
 0x462   :  { %3587 = vmatpush1.bf16.msra.mxu0 %v9220_v10  ;;  %3628 = vmatpush1.bf16.msra.mxu1 %v9225_v11 }
 0x463   :  { %3588 = vmatprep.subr.bf16.mxu0 %v9232_v4  ;;  %3629 = vmatprep.subr.bf16.mxu1 %v9237_v7 }
 0x466   :  { %3589 = vmatpush1.bf16.msra.mxu0 %v9246_v12  ;;  %3630 = vmatpush1.bf16.msra.mxu1 %v9251_v63 }
 0x467   :  { %3590 = vmatprep.subr.bf16.mxu0 %v9258_v53  ;;  %3631 = vmatprep.subr.bf16.mxu1 %v9263_v46 }
 0x468   :  { %v7416_v51 = vpop.eup %7415 }
 0x469   :  { %v7418_v58 = vpop.eup %7417  ;;  %v3068_v2 = vmul.f32 %v7416_v51, %v7414_v30  ;;  %v9322_v51 = vld [vmem:[%s10240_s4 + $0xa0] ss:$16 sps:$4 sm:$0xff]  }
 0x46a   :  { %v3067_v9 = vmul.f32 %v7418_v58, %v8952_v42  ;;  %3591 = vmatpush1.bf16.msra.mxu0 %v9270_v17  ;;  %3632 = vmatpush1.bf16.msra.mxu1 %v9275_v0  ;;  %v9307_v42 = vld [vmem:[%s10240_s4 + $0xa4] ss:$16 sps:$4 sm:$0xff]   ;;  %10395 = vst [vmem:[#allocation54_spill] sm:$0xff] %v9322_v51  ;;  %v9327_v58 = vld [vmem:[%s10240_s4 + $0xa8] ss:$16 sps:$4 sm:$0xff]  }
 0x46b   :  { %3592 = vmatprep.subr.bf16.mxu0 %v9282_v32  ;;  %3633 = vmatprep.subr.bf16.mxu1 %v9287_v35  ;;  %10393 = vst [vmem:[#allocation12_spill] sm:$0xff] %v9307_v42  ;;  %10396 = vst [vmem:[#allocation53_spill] sm:$0xff] %v9327_v58 }
 0x46c   :  { %v9314_v30 = vadd.f32 %v3068_v2, %v3067_v9  ;;  %v9334_v2 = vld [vmem:[%s10240_s4 + $0xc4] ss:$16 sps:$4 sm:$0xff]   ;;  %v9346_v9 = vld [vmem:[%s10240_s4 + $0xc0] ss:$16 sps:$4 sm:$0xff]  }
 0x46d   :  { %10397 = vst [vmem:[#allocation55_spill] sm:$0xff] %v9334_v2 }
 0x46e   :  { %7421 = vtanh.f32 %v9314_v30  ;;  %3593 = vmatpush1.bf16.msra.mxu0 %v9295_v13  ;;  %3634 = vmatpush1.bf16.msra.mxu1 %v9300_v15 }
 0x46f   :  { %3594 = vmatprep.subr.bf16.mxu0 %v9307_v42  ;;  %3635 = vmatprep.subr.bf16.mxu1 %v9312_v14 }
 0x472   :  { %3595 = vmatpush1.bf16.msra.mxu0 %v9322_v51  ;;  %3636 = vmatpush1.bf16.msra.mxu1 %v9327_v58  ;;  %v9363_v58 = vld [vmem:[%s10240_s4 + $0xec] ss:$16 sps:$4 sm:$0xff]   ;;  %v7420_v51 = vpop.eup %7419 }
 0x473   :  { %3596 = vmatprep.subr.bf16.mxu0 %v9334_v2  ;;  %3637 = vmatprep.subr.bf16.mxu1 %v9339_v8  ;;  %v9370_v2 = vld [vmem:[%s10240_s4 + $0xe0] ss:$16 sps:$4 sm:$0xff]   ;;  %v9375_v8 = vld [vmem:[%s10240_s4 + $0xe8] ss:$16 sps:$4 sm:$0xff]  }
 0x476   :  { %3597 = vmatpush1.bf16.msra.mxu0 %v9346_v9  ;;  %3638 = vmatpush1.bf16.msra.mxu1 %v9351_v38 }
 0x477   :  { %3598 = vmatprep.subr.bf16.mxu0 %v9358_v34  ;;  %3639 = vmatprep.subr.bf16.mxu1 %v9363_v58 }
 0x478   :  { %v7422_v14 = vpop.eup %7421 }
 0x479   :  { %v9379_v42 = vmul.f32 %v7422_v14, %v7420_v51  ;;  %v10406_v14 = vld [vmem:[#allocation46_spill] sm:$0xff] }
 0x47a   :  { %3599 = vmatpush1.bf16.msra.mxu0 %v9370_v2  ;;  %3640 = vmatpush1.bf16.msra.mxu1 %v9375_v8 }
 0x47b   :  { %10400 = vst [vmem:[#allocation58_spill] sm:$0xff] %v9379_v42  ;;  %v3391_v38 = vpack.c.bf16 %v9379_v42, %v9379_v42  ;;  %3897 = vmatprep.subr.bf16.mxu0 %v8978_v48  ;;  %3938 = vmatprep.subr.bf16.mxu1 %v8983_v57  ;;  %v9855_v42 = vld [vmem:[%s10240_s4 + $0xc8] ss:$16 sps:$4 sm:$0xff]  }
 0x47c   :  { %10433 = vst [vmem:[#allocation50_spill] sm:$0xff] %v9855_v42 }
 0x47d   :  { %3617 = vmatmul.mubr.bf16.vlgmr.msra.gmra.mrb[68].mxu0 %v3391_v38  ;;  %3658 = vmatmul.mubr.bf16.vlgmr.msra.gmra.mrb[68].mxu1 %v3391_v38 }
 0x47e   :  { %3898 = vmatpush1.bf16.msra.mxu0 %v8988_v54  ;;  %3939 = vmatpush1.bf16.msra.mxu1 %v8993_v36  ;;  %v10401_v54 = vld [vmem:[#allocation16_spill] sm:$0xff] }
 0x47f   :  { %3899 = vmatprep.subr.bf16.mxu0 %v9002_v49  ;;  %3940 = vmatprep.subr.bf16.mxu1 %v9007_v52  ;;  %v10402_v49 = vld [vmem:[#allocation18_spill] sm:$0xff] }
 0x480   :  { %3929 = vmatprep.mubr.bf16.mxu0 %v10294_v31  ;;  %3970 = vmatprep.mubr.bf16.mxu1 %v10294_v31 }
 0x482   :  { %3900 = vmatpush1.bf16.msra.mxu0 %v9012_v59  ;;  %3941 = vmatpush1.bf16.msra.mxu1 %v9017_v43 }
 0x483   :  { %3901 = vmatprep.subr.bf16.mxu0 %v9026_v6  ;;  %3942 = vmatprep.subr.bf16.mxu1 %v9031_v62  ;;  %v10403_v6 = vld [vmem:[#allocation17_spill] sm:$0xff] }
 0x486   :  { %3902 = vmatpush1.bf16.msra.mxu0 %v9036_v56  ;;  %3943 = vmatpush1.bf16.msra.mxu1 %v9041_v33  ;;  %v10404_v56 = vld [vmem:[#allocation20_spill] sm:$0xff] }
 0x487   :  { %3903 = vmatprep.subr.bf16.mxu0 %v9050_v40  ;;  %3944 = vmatprep.subr.bf16.mxu1 %v9055_v5 }
 0x48a   :  { %3904 = vmatpush1.bf16.msra.mxu0 %v9060_v44  ;;  %3945 = vmatpush1.bf16.msra.mxu1 %v9065_v47 }
 0x48b   :  { %3905 = vmatprep.subr.bf16.mxu0 %v9074_v41  ;;  %3946 = vmatprep.subr.bf16.mxu1 %v9079_v1 }
 0x48e   :  { %3906 = vmatpush1.bf16.msra.mxu0 %v9084_v18  ;;  %3947 = vmatpush1.bf16.msra.mxu1 %v9089_v39 }
 0x48f   :  { %3907 = vmatprep.subr.bf16.mxu0 %v9098_v16  ;;  %3948 = vmatprep.subr.bf16.mxu1 %v9103_v19 }
 0x492   :  { %3908 = vmatpush1.bf16.msra.mxu0 %v9108_v20  ;;  %3949 = vmatpush1.bf16.msra.mxu1 %v9113_v3 }
 0x493   :  { %3909 = vmatprep.subr.bf16.mxu0 %v9122_v21  ;;  %3950 = vmatprep.subr.bf16.mxu1 %v9127_v22 }
 0x496   :  { %3910 = vmatpush1.bf16.msra.mxu0 %v9132_v23  ;;  %3951 = vmatpush1.bf16.msra.mxu1 %v9137_v24 }
 0x497   :  { %3911 = vmatprep.subr.bf16.mxu0 %v9146_v25  ;;  %3952 = vmatprep.subr.bf16.mxu1 %v9151_v45 }
 0x49a   :  { %3912 = vmatpush1.bf16.msra.mxu0 %v9156_v26  ;;  %3953 = vmatpush1.bf16.msra.mxu1 %v9161_v27 }
 0x49b   :  { %4200 = vmatprep.subr.bf16.mxu0 %v9170_v28  ;;  %4241 = vmatprep.subr.bf16.mxu1 %v9175_v29  ;;  %v10405_v29 = vld [vmem:[#allocation43_spill] sm:$0xff] }
 0x530   :  { %v3315_v48 = vpop.f32.mrb[64].mxu0  ;;  %v3356_v57 = vpop.f32.mrb[64].mxu1 }
 0x531   :  { %v3363_v36 = vadd.f32 %v3315_v48, %v10401_v54  ;;  %v3365_v52 = vadd.f32 %v3356_v57, %v10402_v49  ;;  %v3317_v59 = vpop.f32.mrb[65].mxu0  ;;  %v3358_v43 = vpop.f32.mrb[65].mxu1  ;;  %v10407_v54 = vld [vmem:[#allocation45_spill] sm:$0xff]  ;;  %v10408_v49 = vld [vmem:[#allocation47_spill] sm:$0xff] }
 0x532   :  { %v3364_v62 = vadd.f32 %v3317_v59, %v10403_v6  ;;  %v3366_v33 = vadd.f32 %v3358_v43, %v10404_v56  ;;  %v3319_v40 = vpop.f32.mrb[66].mxu0  ;;  %v3360_v5 = vpop.f32.mrb[66].mxu1 }
 0x533   :  { %v6494_v44 = vmul.f32 -1.442695, %v3363_v36  ;;  %v3320_v47 = vpop.f32.mrb[67].mxu0  ;;  %v3361_v41 = vpop.f32.mrb[67].mxu1 }
 0x534   :  { %v6495_v1 = vmul.f32 -1.442695, %v3364_v62  ;;  %v6496_v18 = vmul.f32 -1.442695, %v3366_v33 }
 0x535   :  { %7423 = vpow2.f32 %v6494_v44 }
 0x536   :  { %7425 = vpow2.f32 %v6495_v1 }
 0x537   :  { %7427 = vpow2.f32 %v6496_v18 }
 0x538   :  { %7429 = vtanh.f32 %v3365_v52 }
 0x53f   :  { %v7424_v39 = vpop.eup %7423 }
 0x540   :  { %v7426_v16 = vpop.eup %7425  ;;  %v3370_v19 = vadd.f32 1.0, %v7424_v39 }
 0x541   :  { %v3376_v20 = vadd.f32 1.0, %v7426_v16  ;;  %v7428_v3 = vpop.eup %7427 }
 0x542   :  { %7431 = vrcp.f32 %v3370_v19  ;;  %v7430_v21 = vpop.eup %7429  ;;  %v3383_v25 = vadd.f32 1.0, %v7428_v3  ;;  %v9516_v19 = vld [vmem:[%s10239_s3 + $0x20] ss:$16 sps:$4 sm:$0xff]   ;;  %v9530_v3 = vld [vmem:[%s10239_s3 + $0x44] ss:$16 sps:$4 sm:$0xff]  }
 0x543   :  { %7433 = vrcp.f32 %v3376_v20  ;;  %v9521_v20 = vld [vmem:[%s10239_s3 + $0x28] ss:$16 sps:$4 sm:$0xff]  }
 0x544   :  { %7435 = vrcp.f32 %v3383_v25  ;;  %v9559_v25 = vld [vmem:[%s10239_s3 + $0x6c] ss:$16 sps:$4 sm:$0xff]  }
 0x54c   :  { %v7432_v22 = vpop.eup %7431 }
 0x54d   :  { %v7434_v23 = vpop.eup %7433  ;;  %v3387_v24 = vmul.f32 %v7432_v22, %v7430_v21  ;;  %v9535_v21 = vld [vmem:[%s10239_s3 + $0x4c] ss:$16 sps:$4 sm:$0xff]   ;;  %v9540_v22 = vld [vmem:[%s10239_s3 + $0x40] ss:$16 sps:$4 sm:$0xff]  }
 0x54e   :  { %v3386_v45 = vmul.f32 %v7434_v23, %v9184_v60  ;;  %v7436_v33 = vpop.eup %7435  ;;  %v9545_v23 = vld [vmem:[%s10239_s3 + $0x48] ss:$16 sps:$4 sm:$0xff]  }
 0x550   :  { %v9426_v26 = vadd.f32 %v3387_v24, %v3386_v45  ;;  %v3618_v27 = vpop.f32.mrb[68].mxu0  ;;  %v3659_v28 = vpop.f32.mrb[68].mxu1  ;;  %v9554_v24 = vld [vmem:[%s10239_s3 + $0x64] ss:$16 sps:$4 sm:$0xff]   ;;  %v9564_v45 = vld [vmem:[%s10239_s3 + $0x60] ss:$16 sps:$4 sm:$0xff]  }
 0x551   :  { %v3666_v38 = vadd.f32 %v3618_v27, %v10405_v29  ;;  %v3668_v51 = vadd.f32 %v3659_v28, %v10406_v14  ;;  %v3620_v48 = vpop.f32.mrb[69].mxu0  ;;  %v3661_v57 = vpop.f32.mrb[69].mxu1  ;;  %v9569_v27 = vld [vmem:[%s10239_s3 + $0x68] ss:$16 sps:$4 sm:$0xff]   ;;  %v9578_v28 = vld [vmem:[%s10239_s3 + $0x84] ss:$16 sps:$4 sm:$0xff]  }
 0x552   :  { %7437 = vtanh.f32 %v9426_v26  ;;  %v3667_v36 = vadd.f32 %v3620_v48, %v10407_v54  ;;  %v3669_v52 = vadd.f32 %v3661_v57, %v10408_v49  ;;  %v3622_v59 = vpop.f32.mrb[70].mxu0  ;;  %v3663_v43 = vpop.f32.mrb[70].mxu1  ;;  %v9583_v29 = vld [vmem:[%s10239_s3 + $0x8c] ss:$16 sps:$4 sm:$0xff]   ;;  %v9593_v14 = vld [vmem:[%s10239_s3 + $0x88] ss:$16 sps:$4 sm:$0xff]  }
 0x553   :  { %v6529_v60 = vmul.f32 -1.442695, %v3666_v38  ;;  %v3623_v6 = vpop.f32.mrb[71].mxu0  ;;  %v3664_v62 = vpop.f32.mrb[71].mxu1  ;;  %v9588_v38 = vld [vmem:[%s10239_s3 + $0x80] ss:$16 sps:$4 sm:$0xff]  }
 0x554   :  { %v6530_v56 = vmul.f32 -1.442695, %v3667_v36  ;;  %v6531_v5 = vmul.f32 -1.442695, %v3669_v52  ;;  %v9607_v48 = vld [vmem:[%s10239_s3 + $0xac] ss:$16 sps:$4 sm:$0xff]  }
 0x555   :  { %7439 = vpow2.f32 %v6529_v60  ;;  %v9612_v57 = vld [vmem:[%s10239_s3 + $0xa0] ss:$16 sps:$4 sm:$0xff]   ;;  %v9617_v54 = vld [vmem:[%s10239_s3 + $0xa8] ss:$16 sps:$4 sm:$0xff]   ;;  %v9626_v36 = vld [vmem:[%s10239_s3 + $0xc4] ss:$16 sps:$4 sm:$0xff]  }
 0x556   :  { %7441 = vpow2.f32 %v6530_v56  ;;  %v9631_v49 = vld [vmem:[%s10239_s3 + $0xcc] ss:$16 sps:$4 sm:$0xff]   ;;  %v9636_v52 = vld [vmem:[%s10239_s3 + $0xc0] ss:$16 sps:$4 sm:$0xff]   ;;  %v9641_v59 = vld [vmem:[%s10239_s3 + $0xc8] ss:$16 sps:$4 sm:$0xff]  }
 0x557   :  { %7443 = vpow2.f32 %v6531_v5  ;;  %v9650_v43 = vld [vmem:[%s10239_s3 + $0xe4] ss:$16 sps:$4 sm:$0xff]   ;;  %v9655_v60 = vld [vmem:[%s10239_s3 + $0xec] ss:$16 sps:$4 sm:$0xff]   ;;  %v9660_v6 = vld [vmem:[%s10239_s3 + $0xe0] ss:$16 sps:$4 sm:$0xff]  }
 0x558   :  { %7445 = vtanh.f32 %v3668_v51  ;;  %v9602_v51 = vld [vmem:[%s10239_s3 + $0xa4] ss:$16 sps:$4 sm:$0xff]   ;;  %v9665_v62 = vld [vmem:[%s10239_s3 + $0xe8] ss:$16 sps:$4 sm:$0xff]  }
 0x559   :  { %v9674_v56 = vld [vmem:[%s10240_s4 + $0x4] ss:$16 sps:$4 sm:$0xff]  }
 0x55c   :  { %v7438_v40 = vpop.eup %7437 }
 0x55d   :  { %v9433_v44 = vmul.f32 %v7438_v40, %v7436_v33  ;;  %v9679_v33 = vld [vmem:[%s10240_s4 + $0xc] ss:$16 sps:$4 sm:$0xff]  }
 0x55f   :  { %10409 = vst [vmem:[#allocation57_spill] sm:$0xff] %v9433_v44  ;;  %v7440_v47 = vpop.eup %7439  ;;  %v3704_v41 = vpack.c.bf16 %v9433_v44, %v9433_v44  ;;  %v9804_v44 = vld [vmem:[%s10240_s4 + $0x88] ss:$16 sps:$4 sm:$0xff]  }
 0x560   :  { %v7442_v1 = vpop.eup %7441  ;;  %v3673_v18 = vadd.f32 1.0, %v7440_v47  ;;  %v10418_v47 = vld [vmem:[#allocation19_spill] sm:$0xff] }
 0x561   :  { %v3679_v39 = vadd.f32 1.0, %v7442_v1  ;;  %3930 = vmatmul.mubr.bf16.vlgmr.msra.gmra.mrb[72].mxu0 %v3704_v41  ;;  %3971 = vmatmul.mubr.bf16.vlgmr.msra.gmra.mrb[72].mxu1 %v3704_v41  ;;  %v10419_v1 = vld [vmem:[#allocation22_spill] sm:$0xff] }
 0x562   :  { %7447 = vrcp.f32 %v3673_v18  ;;  %4201 = vmatpush1.bf16.msra.mxu0 %v9196_v37  ;;  %4242 = vmatpush1.bf16.msra.mxu1 %v9201_v55  ;;  %v7444_v37 = vpop.eup %7443 }
 0x563   :  { %7449 = vrcp.f32 %v3679_v39  ;;  %4202 = vmatprep.subr.bf16.mxu0 %v9208_v50  ;;  %4243 = vmatprep.subr.bf16.mxu1 %v9213_v61  ;;  %v7446_v55 = vpop.eup %7445 }
 0x564   :  { %4232 = vmatprep.mubr.bf16.mxu0 %v10294_v31  ;;  %4273 = vmatprep.mubr.bf16.mxu1 %v10294_v31 }
 0x566   :  { %4203 = vmatpush1.bf16.msra.mxu0 %v9220_v10  ;;  %4244 = vmatpush1.bf16.msra.mxu1 %v9225_v11  ;;  %v3686_v10 = vadd.f32 1.0, %v7444_v37 }
 0x567   :  { %4204 = vmatprep.subr.bf16.mxu0 %v9232_v4  ;;  %4245 = vmatprep.subr.bf16.mxu1 %v9237_v7  ;;  %v10410_v7 = vld [vmem:[#allocation12_spill] sm:$0xff] }
 0x568   :  { %7451 = vrcp.f32 %v3686_v10 }
 0x56a   :  { %4205 = vmatpush1.bf16.msra.mxu0 %v9246_v12  ;;  %4246 = vmatpush1.bf16.msra.mxu1 %v9251_v63  ;;  %v10411_v12 = vld [vmem:[#allocation51_spill] sm:$0xff]  ;;  %v10412_v63 = vld [vmem:[#allocation54_spill] sm:$0xff] }
 0x56b   :  { %4206 = vmatprep.subr.bf16.mxu0 %v9258_v53  ;;  %4247 = vmatprep.subr.bf16.mxu1 %v9263_v46  ;;  %v10413_v53 = vld [vmem:[#allocation53_spill] sm:$0xff]  ;;  %v10414_v46 = vld [vmem:[#allocation55_spill] sm:$0xff] }
 0x56c   :  { %v7448_v50 = vpop.eup %7447 }
 0x56d   :  { %v7450_v61 = vpop.eup %7449  ;;  %v3690_v16 = vmul.f32 %v7448_v50, %v7446_v55  ;;  %v10420_v55 = vld [vmem:[#allocation21_spill] sm:$0xff] }
 0x56e   :  { %v3689_v11 = vmul.f32 %v7450_v61, %v9314_v30  ;;  %4207 = vmatpush1.bf16.msra.mxu0 %v9270_v17  ;;  %4248 = vmatpush1.bf16.msra.mxu1 %v9275_v0  ;;  %v10415_v17 = vld [vmem:[#allocation7_spill] sm:$0xff]  ;;  %v10416_v0 = vld [vmem:[#allocation56_spill] sm:$0xff] }
 0x56f   :  { %4208 = vmatprep.subr.bf16.mxu0 %v9282_v32  ;;  %4249 = vmatprep.subr.bf16.mxu1 %v9287_v35  ;;  %v9487_v30 = vld [vmem:[%s10239_s3 + $0xc] ss:$16 sps:$4 sm:$0xff]   ;;  %v10421_v61 = vld [vmem:[#allocation23_spill] sm:$0xff] }
 0x570   :  { %v9456_v4 = vadd.f32 %v3690_v16, %v3689_v11 }
 0x572   :  { %7453 = vtanh.f32 %v9456_v4  ;;  %4209 = vmatpush1.bf16.msra.mxu0 %v9295_v13  ;;  %4250 = vmatpush1.bf16.msra.mxu1 %v9300_v15  ;;  %v7452_v32 = vpop.eup %7451 }
 0x573   :  { %4210 = vmatprep.subr.bf16.mxu0 %v10410_v7  ;;  %4251 = vmatprep.subr.bf16.mxu1 %v10411_v12 }
 0x576   :  { %4211 = vmatpush1.bf16.msra.mxu0 %v10412_v63  ;;  %4252 = vmatpush1.bf16.msra.mxu1 %v10413_v53 }
 0x577   :  { %4212 = vmatprep.subr.bf16.mxu0 %v10414_v46  ;;  %4253 = vmatprep.subr.bf16.mxu1 %v10415_v17 }
 0x57a   :  { %4213 = vmatpush1.bf16.msra.mxu0 %v9346_v9  ;;  %4254 = vmatpush1.bf16.msra.mxu1 %v10416_v0  ;;  %v9511_v9 = vld [vmem:[%s10239_s3 + $0x2c] ss:$16 sps:$4 sm:$0xff]  }
 0x57b   :  { %4214 = vmatprep.subr.bf16.mxu0 %v9358_v34  ;;  %4255 = vmatprep.subr.bf16.mxu1 %v9363_v58  ;;  %v9482_v34 = vld [vmem:[%s10239_s3 + $0x4] ss:$16 sps:$4 sm:$0xff]   ;;  %v9492_v58 = vld [vmem:[%s10239_s3] ss:$16 sps:$4 sm:$0xff]  }
 0x57c   :  { %v7454_v13 = vpop.eup %7453 }
 0x57d   :  { %v9471_v15 = vmul.f32 %v7454_v13, %v7452_v32 }
 0x57e   :  { %4215 = vmatpush1.bf16.msra.mxu0 %v9370_v2  ;;  %4256 = vmatpush1.bf16.msra.mxu1 %v9375_v8  ;;  %v9497_v2 = vld [vmem:[%s10239_s3 + $0x8] ss:$16 sps:$4 sm:$0xff]   ;;  %v9506_v8 = vld [vmem:[%s10239_s3 + $0x24] ss:$16 sps:$4 sm:$0xff]  }
 0x57f   :  { %10417 = vst [vmem:[#allocation59_spill] sm:$0xff] %v9471_v15  ;;  %v4007_v35 = vpack.c.bf16 %v9471_v15, %v9471_v15  ;;  %4513 = vmatprep.subr.bf16.mxu0 %v9482_v34  ;;  %4554 = vmatprep.subr.bf16.mxu1 %v9487_v30  ;;  %v9862_v15 = vld [vmem:[%s10240_s4 + $0xe4] ss:$16 sps:$4 sm:$0xff]  }
 0x581   :  { %4233 = vmatmul.mubr.bf16.vlgmr.msra.gmra.mrb[76].mxu0 %v4007_v35  ;;  %4274 = vmatmul.mubr.bf16.vlgmr.msra.gmra.mrb[76].mxu1 %v4007_v35 }
 0x582   :  { %4545 = vmatprep.mubr.bf16.mxu0 %v10294_v31  ;;  %4586 = vmatprep.mubr.bf16.mxu1 %v10294_v31 }
 0x583   :  { %4514 = vmatpush1.bf16.msra.mxu0 %v9492_v58  ;;  %4555 = vmatpush1.bf16.msra.mxu1 %v9497_v2 }
 0x584   :  { %4515 = vmatprep.subr.bf16.mxu0 %v9506_v8  ;;  %4556 = vmatprep.subr.bf16.mxu1 %v9511_v9 }
 0x587   :  { %4516 = vmatpush1.bf16.msra.mxu0 %v9516_v19  ;;  %4557 = vmatpush1.bf16.msra.mxu1 %v9521_v20 }
 0x588   :  { %4517 = vmatprep.subr.bf16.mxu0 %v9530_v3  ;;  %4558 = vmatprep.subr.bf16.mxu1 %v9535_v21 }
 0x58b   :  { %4518 = vmatpush1.bf16.msra.mxu0 %v9540_v22  ;;  %4559 = vmatpush1.bf16.msra.mxu1 %v9545_v23 }
 0x58c   :  { %4519 = vmatprep.subr.bf16.mxu0 %v9554_v24  ;;  %4560 = vmatprep.subr.bf16.mxu1 %v9559_v25 }
 0x58f   :  { %4520 = vmatpush1.bf16.msra.mxu0 %v9564_v45  ;;  %4561 = vmatpush1.bf16.msra.mxu1 %v9569_v27 }
 0x590   :  { %4521 = vmatprep.subr.bf16.mxu0 %v9578_v28  ;;  %4562 = vmatprep.subr.bf16.mxu1 %v9583_v29 }
 0x593   :  { %4522 = vmatpush1.bf16.msra.mxu0 %v9588_v38  ;;  %4563 = vmatpush1.bf16.msra.mxu1 %v9593_v14 }
 0x594   :  { %4523 = vmatprep.subr.bf16.mxu0 %v9602_v51  ;;  %4564 = vmatprep.subr.bf16.mxu1 %v9607_v48 }
 0x597   :  { %4524 = vmatpush1.bf16.msra.mxu0 %v9612_v57  ;;  %4565 = vmatpush1.bf16.msra.mxu1 %v9617_v54 }
 0x598   :  { %4525 = vmatprep.subr.bf16.mxu0 %v9626_v36  ;;  %4566 = vmatprep.subr.bf16.mxu1 %v9631_v49 }
 0x59b   :  { %4526 = vmatpush1.bf16.msra.mxu0 %v9636_v52  ;;  %4567 = vmatpush1.bf16.msra.mxu1 %v9641_v59 }
 0x59c   :  { %4527 = vmatprep.subr.bf16.mxu0 %v9650_v43  ;;  %4568 = vmatprep.subr.bf16.mxu1 %v9655_v60 }
 0x59f   :  { %4528 = vmatpush1.bf16.msra.mxu0 %v9660_v6  ;;  %4569 = vmatpush1.bf16.msra.mxu1 %v9665_v62 }
 0x5a0   :  { %4816 = vmatprep.subr.bf16.mxu0 %v9674_v56  ;;  %4857 = vmatprep.subr.bf16.mxu1 %v9679_v33 }
 0x634   :  { %v3931_v40 = vpop.f32.mrb[72].mxu0  ;;  %v3972_v5 = vpop.f32.mrb[72].mxu1 }
 0x635   :  { %v3979_v41 = vadd.f32 %v3931_v40, %v10418_v47  ;;  %v3981_v18 = vadd.f32 %v3972_v5, %v10419_v1  ;;  %v3933_v39 = vpop.f32.mrb[73].mxu0  ;;  %v3974_v37 = vpop.f32.mrb[73].mxu1 }
 0x636   :  { %v3980_v50 = vadd.f32 %v3933_v39, %v10420_v55  ;;  %v3982_v16 = vadd.f32 %v3974_v37, %v10421_v61  ;;  %v3935_v10 = vpop.f32.mrb[74].mxu0  ;;  %v3976_v11 = vpop.f32.mrb[74].mxu1  ;;  %v10422_v61 = vld [vmem:[#allocation40_spill] sm:$0xff] }
 0x637   :  { %v6564_v7 = vmul.f32 -1.442695, %v3979_v41  ;;  %v3936_v12 = vpop.f32.mrb[75].mxu0  ;;  %v3977_v63 = vpop.f32.mrb[75].mxu1  ;;  %v10423_v10 = vld [vmem:[#allocation42_spill] sm:$0xff] }
 0x638   :  { %v6565_v53 = vmul.f32 -1.442695, %v3980_v50  ;;  %v6566_v46 = vmul.f32 -1.442695, %v3982_v16  ;;  %v10424_v12 = vld [vmem:[#allocation41_spill] sm:$0xff] }
 0x639   :  { %7455 = vpow2.f32 %v6564_v7 }
 0x63a   :  { %7457 = vpow2.f32 %v6565_v53  ;;  %v10425_v53 = vld [vmem:[#allocation44_spill] sm:$0xff] }
 0x63b   :  { %7459 = vpow2.f32 %v6566_v46 }
 0x63c   :  { %7461 = vtanh.f32 %v3981_v18 }
 0x643   :  { %v7456_v17 = vpop.eup %7455 }
 0x644   :  { %v7458_v0 = vpop.eup %7457  ;;  %v3986_v32 = vadd.f32 1.0, %v7456_v17 }
 0x645   :  { %v3992_v13 = vadd.f32 1.0, %v7458_v0  ;;  %v7460_v35 = vpop.eup %7459 }
 0x646   :  { %7463 = vrcp.f32 %v3986_v32  ;;  %v7462_v40 = vpop.eup %7461  ;;  %v3999_v41 = vadd.f32 1.0, %v7460_v35 }
 0x647   :  { %7465 = vrcp.f32 %v3992_v13 }
 0x648   :  { %7467 = vrcp.f32 %v3999_v41  ;;  %v9700_v41 = vld [vmem:[%s10240_s4] ss:$16 sps:$4 sm:$0xff]  }
 0x650   :  { %v7464_v5 = vpop.eup %7463 }
 0x651   :  { %v7466_v47 = vpop.eup %7465  ;;  %v4003_v1 = vmul.f32 %v7464_v5, %v7462_v40 }
 0x652   :  { %v4002_v39 = vmul.f32 %v7466_v47, %v9426_v26  ;;  %v7468_v40 = vpop.eup %7467 }
 0x654   :  { %v9688_v37 = vadd.f32 %v4003_v1, %v4002_v39  ;;  %v4234_v55 = vpop.f32.mrb[76].mxu0  ;;  %v4275_v50 = vpop.f32.mrb[76].mxu1  ;;  %v9705_v39 = vld [vmem:[%s10240_s4 + $0x8] ss:$16 sps:$4 sm:$0xff]  }
 0x655   :  { %v4282_v16 = vadd.f32 %v4234_v55, %v10422_v61  ;;  %v4284_v18 = vadd.f32 %v4275_v50, %v10423_v10  ;;  %v4236_v11 = vpop.f32.mrb[77].mxu0  ;;  %v4277_v7 = vpop.f32.mrb[77].mxu1  ;;  %v9712_v61 = vld [vmem:[%s10240_s4 + $0x24] ss:$16 sps:$4 sm:$0xff]  }
 0x656   :  { %7469 = vtanh.f32 %v9688_v37  ;;  %v4283_v63 = vadd.f32 %v4236_v11, %v10424_v12  ;;  %v4285_v46 = vadd.f32 %v4277_v7, %v10425_v53  ;;  %v4238_v17 = vpop.f32.mrb[78].mxu0  ;;  %v4279_v0 = vpop.f32.mrb[78].mxu1  ;;  %v9724_v12 = vld [vmem:[%s10240_s4 + $0x20] ss:$16 sps:$4 sm:$0xff]   ;;  %v9741_v53 = vld [vmem:[%s10240_s4 + $0x4c] ss:$16 sps:$4 sm:$0xff]  }
 0x657   :  { %v6599_v26 = vmul.f32 -1.442695, %v4282_v16  ;;  %v4239_v32 = vpop.f32.mrb[79].mxu0  ;;  %v4280_v13 = vpop.f32.mrb[79].mxu1  ;;  %v9717_v16 = vld [vmem:[%s10240_s4 + $0x2c] ss:$16 sps:$4 sm:$0xff]  }
 0x658   :  { %v6600_v35 = vmul.f32 -1.442695, %v4283_v63  ;;  %v6601_v47 = vmul.f32 -1.442695, %v4285_v46  ;;  %v9729_v63 = vld [vmem:[%s10240_s4 + $0x28] ss:$16 sps:$4 sm:$0xff]  }
 0x659   :  { %7471 = vpow2.f32 %v6599_v26  ;;  %v9750_v46 = vld [vmem:[%s10240_s4 + $0x40] ss:$16 sps:$4 sm:$0xff]   ;;  %v9755_v17 = vld [vmem:[%s10240_s4 + $0x48] ss:$16 sps:$4 sm:$0xff]   ;;  %v9762_v0 = vld [vmem:[%s10240_s4 + $0x64] ss:$16 sps:$4 sm:$0xff]  }
 0x65a   :  { %7473 = vpow2.f32 %v6600_v35  ;;  %v9767_v26 = vld [vmem:[%s10240_s4 + $0x6c] ss:$16 sps:$4 sm:$0xff]   ;;  %v9774_v13 = vld [vmem:[%s10240_s4 + $0x60] ss:$16 sps:$4 sm:$0xff]   ;;  %v9779_v35 = vld [vmem:[%s10240_s4 + $0x68] ss:$16 sps:$4 sm:$0xff]  }
 0x65b   :  { %7475 = vpow2.f32 %v6601_v47  ;;  %v9791_v47 = vld [vmem:[%s10240_s4 + $0x8c] ss:$16 sps:$4 sm:$0xff]  }
 0x65c   :  { %7477 = vtanh.f32 %v4284_v18  ;;  %v9736_v18 = vld [vmem:[%s10240_s4 + $0x44] ss:$16 sps:$4 sm:$0xff]  }
 0x660   :  { %v7470_v5 = vpop.eup %7469 }
 0x661   :  { %v9695_v1 = vmul.f32 %v7470_v5, %v7468_v40  ;;  %v9786_v5 = vld [vmem:[%s10240_s4 + $0x84] ss:$16 sps:$4 sm:$0xff]  }
 0x663   :  { %10426 = vst [vmem:[#allocation61_spill] sm:$0xff] %v9695_v1  ;;  %v7472_v55 = vpop.eup %7471  ;;  %v4320_v50 = vpack.c.bf16 %v9695_v1, %v9695_v1  ;;  %v9799_v1 = vld [vmem:[%s10240_s4 + $0x80] ss:$16 sps:$4 sm:$0xff]  }
 0x664   :  { %v7474_v10 = vpop.eup %7473  ;;  %v4289_v11 = vadd.f32 1.0, %v7472_v55 }
 0x665   :  { %v4295_v7 = vadd.f32 1.0, %v7474_v10  ;;  %4546 = vmatmul.mubr.bf16.vlgmr.msra.gmra.mrb[80].mxu0 %v4320_v50  ;;  %4587 = vmatmul.mubr.bf16.vlgmr.msra.gmra.mrb[80].mxu1 %v4320_v50  ;;  %v7476_v32 = vpop.eup %7475 }
 0x666   :  { %7479 = vrcp.f32 %v4289_v11  ;;  %4817 = vmatpush1.bf16.msra.mxu0 %v9700_v41  ;;  %4858 = vmatpush1.bf16.msra.mxu1 %v9705_v39  ;;  %v7478_v40 = vpop.eup %7477  ;;  %v4302_v11 = vadd.f32 1.0, %v7476_v32  ;;  %v9816_v32 = vld [vmem:[%s10240_s4 + $0xac] ss:$16 sps:$4 sm:$0xff]  }
 0x667   :  { %7481 = vrcp.f32 %v4295_v7  ;;  %4818 = vmatprep.subr.bf16.mxu0 %v9712_v61  ;;  %4859 = vmatprep.subr.bf16.mxu1 %v9717_v16  ;;  %10428 = vst [vmem:[#allocation11_spill] sm:$0xff] %v9816_v32 }
 0x668   :  { %4848 = vmatprep.mubr.bf16.mxu0 %v10294_v31  ;;  %4889 = vmatprep.mubr.bf16.mxu1 %v10294_v31  ;;  %7483 = vrcp.f32 %v4302_v11  ;;  %v9843_v11 = vld [vmem:[%s10240_s4 + $0xcc] ss:$16 sps:$4 sm:$0xff]  }
 0x669   :  { %10432 = vst [vmem:[#allocation48_spill] sm:$0xff] %v9843_v11 }
 0x66a   :  { %4819 = vmatpush1.bf16.msra.mxu0 %v9724_v12  ;;  %4860 = vmatpush1.bf16.msra.mxu1 %v9729_v63 }
 0x66b   :  { %4820 = vmatprep.subr.bf16.mxu0 %v9736_v18  ;;  %4861 = vmatprep.subr.bf16.mxu1 %v9741_v53 }
 0x66e   :  { %4821 = vmatpush1.bf16.msra.mxu0 %v9750_v46  ;;  %4862 = vmatpush1.bf16.msra.mxu1 %v9755_v17 }
 0x66f   :  { %4822 = vmatprep.subr.bf16.mxu0 %v9762_v0  ;;  %4863 = vmatprep.subr.bf16.mxu1 %v9767_v26 }
 0x670   :  { %v7480_v55 = vpop.eup %7479 }
 0x671   :  { %v7482_v50 = vpop.eup %7481  ;;  %v4306_v10 = vmul.f32 %v7480_v55, %v7478_v40  ;;  %v9826_v55 = vld [vmem:[%s10240_s4 + $0xa0] ss:$16 sps:$4 sm:$0xff]  }
 0x672   :  { %v4305_v7 = vmul.f32 %v7482_v50, %v9456_v4  ;;  %4823 = vmatpush1.bf16.msra.mxu0 %v9774_v13  ;;  %4864 = vmatpush1.bf16.msra.mxu1 %v9779_v35  ;;  %v9811_v4 = vld [vmem:[%s10240_s4 + $0xa4] ss:$16 sps:$4 sm:$0xff]   ;;  %10429 = vst [vmem:[#allocation14_spill] sm:$0xff] %v9826_v55  ;;  %v9831_v50 = vld [vmem:[%s10240_s4 + $0xa8] ss:$16 sps:$4 sm:$0xff]  }
 0x673   :  { %4824 = vmatprep.subr.bf16.mxu0 %v9786_v5  ;;  %4865 = vmatprep.subr.bf16.mxu1 %v9791_v47  ;;  %10427 = vst [vmem:[#allocation62_spill] sm:$0xff] %v9811_v4  ;;  %10430 = vst [vmem:[#allocation13_spill] sm:$0xff] %v9831_v50 }
 0x674   :  { %v9818_v40 = vadd.f32 %v4306_v10, %v4305_v7  ;;  %v9838_v10 = vld [vmem:[%s10240_s4 + $0xc4] ss:$16 sps:$4 sm:$0xff]   ;;  %v9850_v7 = vld [vmem:[%s10240_s4 + $0xc0] ss:$16 sps:$4 sm:$0xff]  }
 0x675   :  { %10431 = vst [vmem:[#allocation15_spill] sm:$0xff] %v9838_v10 }
 0x676   :  { %7485 = vtanh.f32 %v9818_v40  ;;  %4825 = vmatpush1.bf16.msra.mxu0 %v9799_v1  ;;  %4866 = vmatpush1.bf16.msra.mxu1 %v9804_v44 }
 0x677   :  { %4826 = vmatprep.subr.bf16.mxu0 %v9811_v4  ;;  %4867 = vmatprep.subr.bf16.mxu1 %v9816_v32 }
 0x67a   :  { %4827 = vmatpush1.bf16.msra.mxu0 %v9826_v55  ;;  %4868 = vmatpush1.bf16.msra.mxu1 %v9831_v50  ;;  %v9867_v50 = vld [vmem:[%s10240_s4 + $0xec] ss:$16 sps:$4 sm:$0xff]   ;;  %v7484_v55 = vpop.eup %7483 }
 0x67b   :  { %4828 = vmatprep.subr.bf16.mxu0 %v9838_v10  ;;  %4869 = vmatprep.subr.bf16.mxu1 %v9843_v11  ;;  %v9874_v10 = vld [vmem:[%s10240_s4 + $0xe0] ss:$16 sps:$4 sm:$0xff]   ;;  %v9879_v11 = vld [vmem:[%s10240_s4 + $0xe8] ss:$16 sps:$4 sm:$0xff]  }
 0x67e   :  { %4829 = vmatpush1.bf16.msra.mxu0 %v9850_v7  ;;  %4870 = vmatpush1.bf16.msra.mxu1 %v9855_v42 }
 0x67f   :  { %4830 = vmatprep.subr.bf16.mxu0 %v9862_v15  ;;  %4871 = vmatprep.subr.bf16.mxu1 %v9867_v50 }
 0x680   :  { %v7486_v32 = vpop.eup %7485 }
 0x681   :  { %v9883_v4 = vmul.f32 %v7486_v32, %v7484_v55  ;;  %v10439_v32 = vld [vmem:[#allocation38_spill] sm:$0xff] }
 0x682   :  { %4831 = vmatpush1.bf16.msra.mxu0 %v9874_v10  ;;  %4872 = vmatpush1.bf16.msra.mxu1 %v9879_v11 }
 0x683   :  { %v4623_v42 = vpack.c.bf16 %v9883_v4, %v9883_v4  ;;  %5129 = vmatprep.subr.bf16.mxu0 %v9482_v34  ;;  %5170 = vmatprep.subr.bf16.mxu1 %v9487_v30  ;;  %v10434_v30 = vld [vmem:[#allocation24_spill] sm:$0xff] }
 0x685   :  { %4849 = vmatmul.mubr.bf16.vlgmr.msra.gmra.mrb[84].mxu0 %v4623_v42  ;;  %4890 = vmatmul.mubr.bf16.vlgmr.msra.gmra.mrb[84].mxu1 %v4623_v42 }
 0x686   :  { %5130 = vmatpush1.bf16.msra.mxu0 %v9492_v58  ;;  %5171 = vmatpush1.bf16.msra.mxu1 %v9497_v2  ;;  %v10435_v2 = vld [vmem:[#allocation26_spill] sm:$0xff] }
 0x687   :  { %5131 = vmatprep.subr.bf16.mxu0 %v9506_v8  ;;  %5172 = vmatprep.subr.bf16.mxu1 %v9511_v9 }
 0x688   :  { %5161 = vmatprep.mubr.bf16.mxu0 %v10294_v31  ;;  %5202 = vmatprep.mubr.bf16.mxu1 %v10294_v31 }
 0x68a   :  { %5132 = vmatpush1.bf16.msra.mxu0 %v9516_v19  ;;  %5173 = vmatpush1.bf16.msra.mxu1 %v9521_v20  ;;  %v10436_v20 = vld [vmem:[#allocation25_spill] sm:$0xff] }
 0x68b   :  { %5133 = vmatprep.subr.bf16.mxu0 %v9530_v3  ;;  %5174 = vmatprep.subr.bf16.mxu1 %v9535_v21  ;;  %v10437_v21 = vld [vmem:[#allocation28_spill] sm:$0xff] }
 0x68e   :  { %5134 = vmatpush1.bf16.msra.mxu0 %v9540_v22  ;;  %5175 = vmatpush1.bf16.msra.mxu1 %v9545_v23 }
 0x68f   :  { %5135 = vmatprep.subr.bf16.mxu0 %v9554_v24  ;;  %5176 = vmatprep.subr.bf16.mxu1 %v9559_v25 }
 0x692   :  { %5136 = vmatpush1.bf16.msra.mxu0 %v9564_v45  ;;  %5177 = vmatpush1.bf16.msra.mxu1 %v9569_v27 }
 0x693   :  { %5137 = vmatprep.subr.bf16.mxu0 %v9578_v28  ;;  %5178 = vmatprep.subr.bf16.mxu1 %v9583_v29 }
 0x696   :  { %5138 = vmatpush1.bf16.msra.mxu0 %v9588_v38  ;;  %5179 = vmatpush1.bf16.msra.mxu1 %v9593_v14 }
 0x697   :  { %5139 = vmatprep.subr.bf16.mxu0 %v9602_v51  ;;  %5180 = vmatprep.subr.bf16.mxu1 %v9607_v48 }
 0x69a   :  { %5140 = vmatpush1.bf16.msra.mxu0 %v9612_v57  ;;  %5181 = vmatpush1.bf16.msra.mxu1 %v9617_v54 }
 0x69b   :  { %5141 = vmatprep.subr.bf16.mxu0 %v9626_v36  ;;  %5182 = vmatprep.subr.bf16.mxu1 %v9631_v49 }
 0x69e   :  { %5142 = vmatpush1.bf16.msra.mxu0 %v9636_v52  ;;  %5183 = vmatpush1.bf16.msra.mxu1 %v9641_v59 }
 0x69f   :  { %5143 = vmatprep.subr.bf16.mxu0 %v9650_v43  ;;  %5184 = vmatprep.subr.bf16.mxu1 %v9655_v60 }
 0x6a2   :  { %5144 = vmatpush1.bf16.msra.mxu0 %v9660_v6  ;;  %5185 = vmatpush1.bf16.msra.mxu1 %v9665_v62 }
 0x6a3   :  { %5432 = vmatprep.subr.bf16.mxu0 %v9674_v56  ;;  %5473 = vmatprep.subr.bf16.mxu1 %v9679_v33  ;;  %v10438_v56 = vld [vmem:[#allocation35_spill] sm:$0xff] }
 0x738   :  { %v4547_v42 = vpop.f32.mrb[80].mxu0  ;;  %v4588_v34 = vpop.f32.mrb[80].mxu1 }
 0x739   :  { %v4595_v58 = vadd.f32 %v4547_v42, %v10434_v30  ;;  %v4597_v8 = vadd.f32 %v4588_v34, %v10435_v2  ;;  %v4549_v9 = vpop.f32.mrb[81].mxu0  ;;  %v4590_v19 = vpop.f32.mrb[81].mxu1  ;;  %v10440_v30 = vld [vmem:[#allocation37_spill] sm:$0xff]  ;;  %v10441_v2 = vld [vmem:[#allocation39_spill] sm:$0xff] }
 0x73a   :  { %v4596_v3 = vadd.f32 %v4549_v9, %v10436_v20  ;;  %v4598_v22 = vadd.f32 %v4590_v19, %v10437_v21  ;;  %v4551_v23 = vpop.f32.mrb[82].mxu0  ;;  %v4592_v24 = vpop.f32.mrb[82].mxu1 }
 0x73b   :  { %v6634_v25 = vmul.f32 -1.442695, %v4595_v58  ;;  %v4552_v45 = vpop.f32.mrb[83].mxu0  ;;  %v4593_v27 = vpop.f32.mrb[83].mxu1 }
 0x73c   :  { %v6635_v28 = vmul.f32 -1.442695, %v4596_v3  ;;  %v6636_v29 = vmul.f32 -1.442695, %v4598_v22 }
 0x73d   :  { %7487 = vpow2.f32 %v6634_v25 }
 0x73e   :  { %7489 = vpow2.f32 %v6635_v28 }
 0x73f   :  { %7491 = vpow2.f32 %v6636_v29 }
 0x740   :  { %7493 = vtanh.f32 %v4597_v8 }
 0x747   :  { %v7488_v38 = vpop.eup %7487 }
 0x748   :  { %v7490_v14 = vpop.eup %7489  ;;  %v4602_v51 = vadd.f32 1.0, %v7488_v38 }
 0x749   :  { %v4608_v48 = vadd.f32 1.0, %v7490_v14  ;;  %v7492_v57 = vpop.eup %7491  ;;  %v5578_v14 = vld [vmem:[%s10242_s5 + $0x90] sm:$0xff] }
 0x74a   :  { %7495 = vrcp.f32 %v4602_v51  ;;  %v7494_v54 = vpop.eup %7493  ;;  %v4615_v59 = vadd.f32 1.0, %v7492_v57  ;;  %v5579_v51 = vld [vmem:[%s10242_s5 + $0x98] sm:$0xff]  ;;  %v5562_v57 = vld [vmem:[%s10242_s5 + $0x10] sm:$0xff] }
 0x74b   :  { %7497 = vrcp.f32 %v4608_v48  ;;  %v6860_v48 = vpack.c.bf16 %v5579_v51, %v5578_v14 }
 0x74c   :  { %7499 = vrcp.f32 %v4615_v59 }
 0x754   :  { %v7496_v36 = vpop.eup %7495 }
 0x755   :  { %v7498_v49 = vpop.eup %7497  ;;  %v4619_v52 = vmul.f32 %v7496_v36, %v7494_v54  ;;  %v5563_v54 = vld [vmem:[%s10242_s5 + $0x18] sm:$0xff] }
 0x756   :  { %v4618_v43 = vmul.f32 %v7498_v49, %v9688_v37  ;;  %v7500_v22 = vpop.eup %7499  ;;  %v6862_v36 = vpack.c.bf16 %v5563_v54, %v5562_v57  ;;  %v5580_v49 = vld [vmem:[%s10242_s5 + $0xa0] sm:$0xff] }
 0x758   :  { %v9930_v60 = vadd.f32 %v4619_v52, %v4618_v43  ;;  %v4850_v6 = vpop.f32.mrb[84].mxu0  ;;  %v4891_v62 = vpop.f32.mrb[84].mxu1  ;;  %v5581_v52 = vld [vmem:[%s10242_s5 + $0xa8] sm:$0xff]  ;;  %v5564_v43 = vld [vmem:[%s10242_s5 + $0x20] sm:$0xff] }
 0x759   :  { %v4898_v33 = vadd.f32 %v4850_v6, %v10438_v56  ;;  %v4900_v55 = vadd.f32 %v4891_v62, %v10439_v32  ;;  %v4852_v42 = vpop.f32.mrb[85].mxu0  ;;  %v4893_v34 = vpop.f32.mrb[85].mxu1  ;;  %v6864_v59 = vpack.c.bf16 %v5581_v52, %v5580_v49  ;;  %v5565_v6 = vld [vmem:[%s10242_s5 + $0x28] sm:$0xff]  ;;  %v5582_v56 = vld [vmem:[%s10242_s5 + $0xb0] sm:$0xff] }
 0x75a   :  { %7501 = vtanh.f32 %v9930_v60  ;;  %v4899_v58 = vadd.f32 %v4852_v42, %v10440_v30  ;;  %v4901_v8 = vadd.f32 %v4893_v34, %v10441_v2  ;;  %v4854_v9 = vpop.f32.mrb[86].mxu0  ;;  %v4895_v19 = vpop.f32.mrb[86].mxu1  ;;  %v6866_v62 = vpack.c.bf16 %v5565_v6, %v5564_v43  ;;  %v5567_v42 = vld [vmem:[%s10242_s5 + $0x38] sm:$0xff]  ;;  %v5584_v30 = vld [vmem:[%s10242_s5 + $0xc0] sm:$0xff] }
 0x75b   :  { %v6669_v37 = vmul.f32 -1.442695, %v4898_v33  ;;  %v4855_v20 = vpop.f32.mrb[87].mxu0  ;;  %v4896_v3 = vpop.f32.mrb[87].mxu1  ;;  %v5583_v33 = vld [vmem:[%s10242_s5 + $0xb8] sm:$0xff]  ;;  %v5568_v2 = vld [vmem:[%s10242_s5 + $0x40] sm:$0xff] }
 0x75c   :  { %v6670_v21 = vmul.f32 -1.442695, %v4899_v58  ;;  %v6671_v24 = vmul.f32 -1.442695, %v4901_v8  ;;  %v6868_v32 = vpack.c.bf16 %v5583_v33, %v5582_v56  ;;  %v5585_v58 = vld [vmem:[%s10242_s5 + $0xc8] sm:$0xff]  ;;  %v5586_v19 = vld [vmem:[%s10242_s5 + $0xd0] sm:$0xff] }
 0x75d   :  { %7503 = vpow2.f32 %v6669_v37  ;;  %v6872_v8 = vpack.c.bf16 %v5585_v58, %v5584_v30  ;;  %v5569_v9 = vld [vmem:[%s10242_s5 + $0x48] sm:$0xff]  ;;  %v5587_v37 = vld [vmem:[%s10242_s5 + $0xd8] sm:$0xff] }
 0x75e   :  { %7505 = vpow2.f32 %v6670_v21  ;;  %v6874_v20 = vpack.c.bf16 %v5569_v9, %v5568_v2  ;;  %v6876_v3 = vpack.c.bf16 %v5587_v37, %v5586_v19  ;;  %v5570_v21 = vld [vmem:[%s10242_s5 + $0x50] sm:$0xff]  ;;  %v10455_v9 = vld [vmem:[#allocation33_spill] sm:$0xff]  ;;  %v10456_v37 = vld [vmem:[#allocation36_spill] sm:$0xff] }
 0x75f   :  { %7507 = vpow2.f32 %v6671_v24  ;;  %v5589_v24 = vld [vmem:[%s10242_s5 + $0xe8] sm:$0xff] }
 0x760   :  { %7509 = vtanh.f32 %v4900_v55  ;;  %v5566_v55 = vld [vmem:[%s10242_s5 + $0x30] sm:$0xff] }
 0x761   :  { %v6870_v34 = vpack.c.bf16 %v5567_v42, %v5566_v55  ;;  %v10453_v42 = vld [vmem:[#allocation32_spill] sm:$0xff]  ;;  %v10454_v30 = vld [vmem:[#allocation34_spill] sm:$0xff] }
 0x764   :  { %v7502_v23 = vpop.eup %7501 }
 0x765   :  { %v9937_v25 = vmul.f32 %v7502_v23, %v7500_v22  ;;  %v5571_v22 = vld [vmem:[%s10242_s5 + $0x58] sm:$0xff]  ;;  %v5588_v23 = vld [vmem:[%s10242_s5 + $0xe0] sm:$0xff] }
 0x767   :  { %v7504_v45 = vpop.eup %7503  ;;  %v4936_v27 = vpack.c.bf16 %v9937_v25, %v9937_v25 }
 0x768   :  { %v7506_v28 = vpop.eup %7505  ;;  %v4905_v29 = vadd.f32 1.0, %v7504_v45  ;;  %v6878_v45 = vpack.c.bf16 %v5571_v22, %v5570_v21 }
 0x769   :  { %v4911_v38 = vadd.f32 1.0, %v7506_v28  ;;  %5162 = vmatmul.mubr.bf16.vlgmr.msra.gmra.mrb[88].mxu0 %v4936_v27  ;;  %5203 = vmatmul.mubr.bf16.vlgmr.msra.gmra.mrb[88].mxu1 %v4936_v27  ;;  %v6880_v27 = vpack.c.bf16 %v5589_v24, %v5588_v23  ;;  %v5572_v28 = vld [vmem:[%s10242_s5 + $0x60] sm:$0xff] }
 0x76a   :  { %7511 = vrcp.f32 %v4905_v29  ;;  %5433 = vmatpush1.bf16.msra.mxu0 %v9700_v41  ;;  %5474 = vmatpush1.bf16.msra.mxu1 %v9705_v39  ;;  %v7508_v41 = vpop.eup %7507  ;;  %v5573_v29 = vld [vmem:[%s10242_s5 + $0x68] sm:$0xff] }
 0x76b   :  { %7513 = vrcp.f32 %v4911_v38  ;;  %5434 = vmatprep.subr.bf16.mxu0 %v9712_v61  ;;  %5475 = vmatprep.subr.bf16.mxu1 %v9717_v16  ;;  %v7510_v39 = vpop.eup %7509  ;;  %v5590_v38 = vld [vmem:[%s10242_s5 + $0xf0] sm:$0xff] }
 0x76c   :  { %5464 = vmatprep.mubr.bf16.mxu0 %v10294_v31  ;;  %5505 = vmatprep.mubr.bf16.mxu1 %v10294_v31 }
 0x76e   :  { %5435 = vmatpush1.bf16.msra.mxu0 %v9724_v12  ;;  %5476 = vmatpush1.bf16.msra.mxu1 %v9729_v63  ;;  %v4918_v12 = vadd.f32 1.0, %v7508_v41  ;;  %v5591_v41 = vld [vmem:[%s10242_s5 + $0xf8] sm:$0xff] }
 0x76f   :  { %5436 = vmatprep.subr.bf16.mxu0 %v9736_v18  ;;  %5477 = vmatprep.subr.bf16.mxu1 %v9741_v53  ;;  %v10442_v53 = vld [vmem:[#allocation62_spill] sm:$0xff] }
 0x770   :  { %7515 = vrcp.f32 %v4918_v12 }
 0x772   :  { %5437 = vmatpush1.bf16.msra.mxu0 %v9750_v46  ;;  %5478 = vmatpush1.bf16.msra.mxu1 %v9755_v17  ;;  %v10443_v46 = vld [vmem:[#allocation11_spill] sm:$0xff]  ;;  %v10444_v17 = vld [vmem:[#allocation14_spill] sm:$0xff] }
 0x773   :  { %5438 = vmatprep.subr.bf16.mxu0 %v9762_v0  ;;  %5479 = vmatprep.subr.bf16.mxu1 %v9767_v26  ;;  %v10445_v0 = vld [vmem:[#allocation13_spill] sm:$0xff]  ;;  %v10446_v26 = vld [vmem:[#allocation15_spill] sm:$0xff] }
 0x774   :  { %v7512_v61 = vpop.eup %7511 }
 0x775   :  { %v7514_v31 = vpop.eup %7513  ;;  %v4922_v16 = vmul.f32 %v7512_v61, %v7510_v39  ;;  %v6882_v39 = vpack.c.bf16 %v5573_v29, %v5572_v28  ;;  %v6884_v61 = vpack.c.bf16 %v5591_v41, %v5590_v38 }
 0x776   :  { %v4921_v63 = vmul.f32 %v7514_v31, %v9818_v40  ;;  %5439 = vmatpush1.bf16.msra.mxu0 %v9774_v13  ;;  %5480 = vmatpush1.bf16.msra.mxu1 %v9779_v35  ;;  %v10447_v13 = vld [vmem:[#allocation48_spill] sm:$0xff]  ;;  %v10448_v35 = vld [vmem:[#allocation50_spill] sm:$0xff] }
 0x777   :  { %5440 = vmatprep.subr.bf16.mxu0 %v9786_v5  ;;  %5481 = vmatprep.subr.bf16.mxu1 %v9791_v47  ;;  %v5576_v40 = vld [vmem:[%s10242_s5 + $0x80] sm:$0xff]  ;;  %v5574_v31 = vld [vmem:[%s10242_s5 + $0x70] sm:$0xff] }
 0x778   :  { %v9960_v18 = vadd.f32 %v4922_v16, %v4921_v63  ;;  %v5575_v16 = vld [vmem:[%s10242_s5 + $0x78] sm:$0xff] }
 0x779   :  { %v6886_v12 = vpack.c.bf16 %v5575_v16, %v5574_v31 }
 0x77a   :  { %7517 = vtanh.f32 %v9960_v18  ;;  %5441 = vmatpush1.bf16.msra.mxu0 %v9799_v1  ;;  %5482 = vmatpush1.bf16.msra.mxu1 %v9804_v44  ;;  %v7516_v5 = vpop.eup %7515 }
 0x77b   :  { %5442 = vmatprep.subr.bf16.mxu0 %v10442_v53  ;;  %5483 = vmatprep.subr.bf16.mxu1 %v10443_v46  ;;  %v10449_v46 = vld [vmem:[#allocation27_spill] sm:$0xff] }
 0x77e   :  { %5443 = vmatpush1.bf16.msra.mxu0 %v10444_v17  ;;  %5484 = vmatpush1.bf16.msra.mxu1 %v10445_v0  ;;  %v10450_v0 = vld [vmem:[#allocation30_spill] sm:$0xff] }
 0x77f   :  { %5444 = vmatprep.subr.bf16.mxu0 %v10446_v26  ;;  %5485 = vmatprep.subr.bf16.mxu1 %v10447_v13 }
 0x782   :  { %5445 = vmatpush1.bf16.msra.mxu0 %v9850_v7  ;;  %5486 = vmatpush1.bf16.msra.mxu1 %v10448_v35 }
 0x783   :  { %5446 = vmatprep.subr.bf16.mxu0 %v9862_v15  ;;  %5487 = vmatprep.subr.bf16.mxu1 %v9867_v50  ;;  %v5577_v15 = vld [vmem:[%s10242_s5 + $0x88] sm:$0xff] }
 0x784   :  { %v7518_v44 = vpop.eup %7517  ;;  %v6856_v50 = vpack.c.bf16 %v5577_v15, %v5576_v40 }
 0x785   :  { %v9975_v1 = vmul.f32 %v7518_v44, %v7516_v5  ;;  %v10451_v5 = vld [vmem:[#allocation29_spill] sm:$0xff] }
 0x786   :  { %5447 = vmatpush1.bf16.msra.mxu0 %v9874_v10  ;;  %5488 = vmatpush1.bf16.msra.mxu1 %v9879_v11  ;;  %v5560_v10 = vld [vmem:[%s10242_s5] sm:$0xff]  ;;  %v5561_v11 = vld [vmem:[%s10242_s5 + $0x8] sm:$0xff] }
 0x787   :  { %v5239_v47 = vpack.c.bf16 %v9975_v1, %v9975_v1  ;;  %v6858_v7 = vpack.c.bf16 %v5561_v11, %v5560_v10  ;;  %6857 = vmatprep.subr.bf16.mxu0 %v6856_v50 }
 0x789   :  { %5465 = vmatmul.mubr.bf16.vlgmr.msra.gmra.mrb[92].mxu0 %v5239_v47  ;;  %5506 = vmatmul.mubr.bf16.vlgmr.msra.gmra.mrb[92].mxu1 %v5239_v47  ;;  %v10452_v47 = vld [vmem:[#allocation31_spill] sm:$0xff] }
 0x78a   :  { %6859 = vmatpush3.bf16.msra.mxu0 %v6858_v7 }
 0x78b   :  { %6861 = vmatprep.subr.bf16.mxu0 %v6860_v48 }
 0x78e   :  { %6863 = vmatpush3.bf16.msra.mxu0 %v6862_v36 }
 0x78f   :  { %6865 = vmatprep.subr.bf16.mxu0 %v6864_v59 }
 0x792   :  { %6867 = vmatpush3.bf16.msra.mxu0 %v6866_v62 }
 0x793   :  { %6869 = vmatprep.subr.bf16.mxu0 %v6868_v32 }
 0x796   :  { %6871 = vmatpush3.bf16.msra.mxu0 %v6870_v34 }
 0x797   :  { %6873 = vmatprep.subr.bf16.mxu0 %v6872_v8 }
 0x79a   :  { %6875 = vmatpush3.bf16.msra.mxu0 %v6874_v20 }
 0x79b   :  { %6877 = vmatprep.subr.bf16.mxu0 %v6876_v3 }
 0x79e   :  { %6879 = vmatpush3.bf16.msra.mxu0 %v6878_v45 }
 0x79f   :  { %6881 = vmatprep.subr.bf16.mxu0 %v6880_v27 }
 0x7a2   :  { %6883 = vmatpush3.bf16.msra.mxu0 %v6882_v39 }
 0x7a3   :  { %6885 = vmatprep.subr.bf16.mxu0 %v6884_v61 }
 0x7a6   :  { %6887 = vmatpush3.bf16.msra.mxu0 %v6886_v12 }
 0x83c   :  { %v5163_v63 = vpop.f32.mrb[88].mxu0  ;;  %v5204_v53 = vpop.f32.mrb[88].mxu1 }
 0x83d   :  { %v5211_v17 = vadd.f32 %v5163_v63, %v10449_v46  ;;  %v5213_v26 = vadd.f32 %v5204_v53, %v10450_v0  ;;  %v5165_v13 = vpop.f32.mrb[89].mxu0  ;;  %v5206_v35 = vpop.f32.mrb[89].mxu1 }
 0x83e   :  { %v5212_v44 = vadd.f32 %v5165_v13, %v10451_v5  ;;  %v5214_v40 = vadd.f32 %v5206_v35, %v10452_v47  ;;  %v5167_v15 = vpop.f32.mrb[90].mxu0  ;;  %v5208_v50 = vpop.f32.mrb[90].mxu1  ;;  %v10457_v5 = vld [vmem:[#allocation60_spill] sm:$0xff] }
 0x83f   :  { %v6704_v10 = vmul.f32 -1.442695, %v5211_v17  ;;  %v5168_v11 = vpop.f32.mrb[91].mxu0  ;;  %v5209_v7 = vpop.f32.mrb[91].mxu1  ;;  %v10459_v47 = vld [vmem:[#allocation8_spill] sm:$0xff]  ;;  %v10462_v15 = vld [vmem:[#allocation58_spill] sm:$0xff] }
 0x840   :  { %v6705_v14 = vmul.f32 -1.442695, %v5212_v44  ;;  %v6706_v51 = vmul.f32 -1.442695, %v5214_v40  ;;  %v10458_v44 = vld [vmem:[#allocation6_spill] sm:$0xff]  ;;  %v10461_v40 = vld [vmem:[#allocation9_spill] sm:$0xff] }
 0x841   :  { %7519 = vpow2.f32 %v6704_v10  ;;  %v10463_v50 = vld [vmem:[#allocation57_spill] sm:$0xff]  ;;  %v10464_v10 = vld [vmem:[#allocation10_spill] sm:$0xff]  ;;  %v10466_v7 = vld [vmem:[#allocation63_spill] sm:$0xff] }
 0x842   :  { %7521 = vpow2.f32 %v6705_v14  ;;  %v10465_v11 = vld [vmem:[#allocation61_spill] sm:$0xff] }
 0x843   :  { %7523 = vpow2.f32 %v6706_v51  ;;  %v10467_v14 = vld [vmem:[#allocation5_spill] sm:$0xff]  ;;  %v14_v51 = vstv %s10243_s6 }
 0x844   :  { %7525 = vtanh.f32 %v5213_v26  ;;  %15 = vst [vmem:[#allocation4] sm:$0x1] %v14_v51 }
 0x84b   :  { %v7520_v48 = vpop.eup %7519 }
 0x84c   :  { %v7522_v57 = vpop.eup %7521  ;;  %v5218_v54 = vadd.f32 1.0, %v7520_v48  ;;  %v7279_v48 = vld [vmem:[%s10244_s7 + $0x40] sm:$0xff]  }
 0x84d   :  { %v5224_v36 = vadd.f32 1.0, %v7522_v57  ;;  %v7524_v49 = vpop.eup %7523  ;;  %v7280_v57 = vld [vmem:[%s10244_s7] sm:$0xff]   ;;  %6816 = vmatprep.subr.bf16.mxu1 %v7279_v48 }
 0x84e   :  { %7527 = vrcp.f32 %v5218_v54  ;;  %v7526_v52 = vpop.eup %7525  ;;  %v5231_v62 = vadd.f32 1.0, %v7524_v49  ;;  %v7281_v54 = vld [vmem:[%s10244_s7 + $0x48] sm:$0xff]   ;;  %6817 = vmatpush3.bf16.msra.mxu1 %v7280_v57  ;;  %v7283_v49 = vld [vmem:[%s10244_s7 + $0x50] sm:$0xff]  }
 0x84f   :  { %7529 = vrcp.f32 %v5224_v36  ;;  %v7282_v36 = vld [vmem:[%s10244_s7 + $0x8] sm:$0xff]   ;;  %6818 = vmatprep.subr.bf16.mxu1 %v7281_v54 }
 0x850   :  { %7531 = vrcp.f32 %v5231_v62  ;;  %v7288_v62 = vld [vmem:[%s10244_s7 + $0x20] sm:$0xff]  }
 0x852   :  { %6819 = vmatpush3.bf16.msra.mxu1 %v7282_v36 }
 0x853   :  { %6820 = vmatprep.subr.bf16.mxu1 %v7283_v49 }
 0x858   :  { %v7528_v59 = vpop.eup %7527 }
 0x859   :  { %v7530_v43 = vpop.eup %7529  ;;  %v5235_v6 = vmul.f32 %v7528_v59, %v7526_v52  ;;  %v7284_v52 = vld [vmem:[%s10244_s7 + $0x10] sm:$0xff]   ;;  %v7285_v59 = vld [vmem:[%s10244_s7 + $0x58] sm:$0xff]  }
 0x85a   :  { %v5234_v56 = vmul.f32 %v7530_v43, %v9930_v60  ;;  %v7532_v45 = vpop.eup %7531  ;;  %v7286_v43 = vld [vmem:[%s10244_s7 + $0x18] sm:$0xff]   ;;  %6821 = vmatpush3.bf16.msra.mxu1 %v7284_v52 }
 0x85b   :  { %6822 = vmatprep.subr.bf16.mxu1 %v7285_v59 }
 0x85c   :  { %v5466_v33 = vpop.f32.mrb[92].mxu0  ;;  %v5507_v32 = vpop.f32.mrb[92].mxu1  ;;  %v5236_v55 = vadd.f32 %v5235_v6, %v5234_v56  ;;  %v7287_v6 = vld [vmem:[%s10244_s7 + $0x60] sm:$0xff]   ;;  %v7289_v56 = vld [vmem:[%s10244_s7 + $0x68] sm:$0xff]  }
 0x85d   :  { %v5514_v34 = vadd.f32 %v5466_v33, %v10453_v42  ;;  %v5516_v58 = vadd.f32 %v5507_v32, %v10454_v30  ;;  %v5468_v2 = vpop.f32.mrb[93].mxu0  ;;  %v5509_v8 = vpop.f32.mrb[93].mxu1 }
 0x85e   :  { %v5515_v19 = vadd.f32 %v5468_v2, %v10455_v9  ;;  %v5517_v20 = vadd.f32 %v5509_v8, %v10456_v37  ;;  %v5470_v3 = vpop.f32.mrb[94].mxu0  ;;  %v5511_v21 = vpop.f32.mrb[94].mxu1  ;;  %7533 = vtanh.f32 %v5236_v55  ;;  %6823 = vmatpush3.bf16.msra.mxu1 %v7286_v43  ;;  %v7290_v55 = vld [vmem:[%s10244_s7 + $0x28] sm:$0xff]   ;;  %v6742_v37 = vld [vmem:[#allocation4] ss:$0 sm:$0xff] }
 0x85f   :  { %v6739_v22 = vmul.f32 -1.442695, %v5514_v34  ;;  %v5471_v23 = vpop.f32.mrb[95].mxu0  ;;  %v5512_v60 = vpop.f32.mrb[95].mxu1  ;;  %6824 = vmatprep.subr.bf16.mxu1 %v7287_v6 }
 0x860   :  { %v6740_v24 = vmul.f32 -1.442695, %v5515_v19  ;;  %v6741_v28 = vmul.f32 -1.442695, %v5517_v20 }
 0x861   :  { %7535 = vpow2.f32 %v6739_v22 }
 0x862   :  { %7537 = vpow2.f32 %v6740_v24  ;;  %6825 = vmatpush3.bf16.msra.mxu1 %v7288_v62 }
 0x863   :  { %7539 = vpow2.f32 %v6741_v28  ;;  %6826 = vmatprep.subr.bf16.mxu1 %v7289_v56 }
 0x864   :  { %7541 = vtanh.f32 %v5516_v58 }
 0x866   :  { %6827 = vmatpush3.bf16.msra.mxu1 %v7290_v55 }
 0x868   :  { %v7534_v27 = vpop.eup %7533 }
 0x869   :  { %v10086_v29 = vmul.f32 %v7534_v27, %v7532_v45 }
 0x86b   :  { %v7536_v38 = vpop.eup %7535 }
 0x86c   :  { %v7538_v41 = vpop.eup %7537  ;;  %v5521_v39 = vadd.f32 1.0, %v7536_v38 }
 0x86d   :  { %v5527_v61 = vadd.f32 1.0, %v7538_v41  ;;  %v7540_v31 = vpop.eup %7539 }
 0x86e   :  { %7543 = vrcp.f32 %v5521_v39  ;;  %v7542_v16 = vpop.eup %7541  ;;  %v5534_v46 = vadd.f32 1.0, %v7540_v31 }
 0x86f   :  { %7545 = vrcp.f32 %v5527_v61 }
 0x870   :  { %7547 = vrcp.f32 %v5534_v46 }
 0x878   :  { %v7544_v12 = vpop.eup %7543 }
 0x879   :  { %v7546_v63 = vpop.eup %7545  ;;  %v5538_v53 = vmul.f32 %v7544_v12, %v7542_v16 }
 0x87a   :  { %v5537_v17 = vmul.f32 %v7546_v63, %v9960_v18  ;;  %v7548_v26 = vpop.eup %7547  ;;  %v10460_v18 = vld [vmem:[#allocation59_spill] sm:$0xff] }
 0x87c   :  { %v5539_v0 = vadd.f32 %v5538_v53, %v5537_v17 }
 0x87e   :  { %7549 = vtanh.f32 %v5539_v0 }
 0x888   :  { %v7550_v13 = vpop.eup %7549 }
 0x889   :  { %v10089_v35 = vmul.f32 %v7550_v13, %v7548_v26 }
 0x88b   :  { %5663 = vmatprep.mubr.f32.mxu0 %v10089_v35 }
 0x88c   :  { %5664 = vmatmul.mubr.f32.vlgmr.msra.gmra.mrb[96].mxu0 %v10457_v5 }
 0x88d   :  { %5668 = vmatprep.mubr.f32.mxu0 %v9975_v1 }
 0x890   :  { %5669 = vmatmul.mubr.f32.gmra.mrb[98].mxu0 %v10458_v44 }
 0x891   :  { %5673 = vmatprep.mubr.f32.mxu0 %v9883_v4 }
 0x894   :  { %5674 = vmatmul.mubr.f32.gmra.mrb[100].mxu0 %v10459_v47 }
 0x895   :  { %5678 = vmatprep.mubr.f32.mxu0 %v10460_v18 }
 0x898   :  { %5679 = vmatmul.mubr.f32.gmra.mrb[102].mxu0 %v10461_v40 }
 0x899   :  { %5683 = vmatprep.mubr.f32.mxu0 %v10462_v15 }
 0x89c   :  { %5684 = vmatmul.mubr.f32.gmra.mrb[104].mxu0 %v10463_v50 }
 0x89d   :  { %5688 = vmatprep.mubr.f32.mxu0 %v10464_v10 }
 0x8a0   :  { %5689 = vmatmul.mubr.f32.gmra.mrb[106].mxu0 %v10465_v11 }
 0x8a1   :  { %5693 = vmatprep.mubr.f32.mxu0 %v10466_v7 }
 0x8a4   :  { %5694 = vmatmul.mubr.f32.gmra.mrb[108].mxu0 %v9937_v25 }
 0x8a5   :  { %5698 = vmatprep.mubr.f32.mxu0 %v10467_v14 }
 0x8a8   :  { %5699 = vmatmul.mubr.f32.gmra.mrb[110].mxu0 %v10086_v29 }
 0x95f   :  { %v6792_v33 = vpop.f32.mrb[96].mxu0 }
 0x960   :  { %v6793_v32 = vpop.f32.mrb[97].mxu0 }
 0x961   :  { %v6794_v42 = vadd.f32 %v6793_v32, %v6792_v33 }
 0x963   :  { %v6795_v34 = vpop.f32.mrb[98].mxu0  ;;  %v5666_v21 = vadd.f32 %v6794_v42, %v6742_v37 }
 0x964   :  { %v6796_v30 = vpop.f32.mrb[99].mxu0 }
 0x965   :  { %v6797_v58 = vadd.f32 %v6796_v30, %v6795_v34  ;;  %7551 = vtanh.f32 %v5666_v21 }
 0x967   :  { %v6798_v2 = vpop.f32.mrb[100].mxu0  ;;  %v5671_v24 = vadd.f32 %v6797_v58, %v6742_v37 }
 0x968   :  { %v6799_v8 = vpop.f32.mrb[101].mxu0 }
 0x969   :  { %v6800_v9 = vadd.f32 %v6799_v8, %v6798_v2 }
 0x96b   :  { %v6801_v19 = vpop.f32.mrb[102].mxu0  ;;  %v5676_v41 = vadd.f32 %v6800_v9, %v6742_v37 }
 0x96c   :  { %v6802_v20 = vpop.f32.mrb[103].mxu0 }
 0x96d   :  { %v6803_v3 = vadd.f32 %v6802_v20, %v6801_v19 }
 0x96f   :  { %v6804_v22 = vpop.f32.mrb[104].mxu0  ;;  %v5681_v12 = vadd.f32 %v6803_v3, %v6742_v37  ;;  %v7552_v17 = vpop.eup %7551 }
 0x970   :  { %v6805_v23 = vpop.f32.mrb[105].mxu0  ;;  %v5713_v51 = vsel %vm5712_vm1, %v7552_v17, -inf }
 0x971   :  { %v6806_v60 = vadd.f32 %v6805_v23, %v6804_v22 }
 0x973   :  { %v5686_v45 = vadd.f32 %v6806_v60, %v6742_v37  ;;  %v6807_v27 = vpop.f32.mrb[106].mxu0 }
 0x974   :  { %v6808_v28 = vpop.f32.mrb[107].mxu0 }
 0x975   :  { %7553 = vtanh.f32 %v5686_v45  ;;  %v6809_v38 = vadd.f32 %v6808_v28, %v6807_v27 }
 0x976   :  { %7555 = vtanh.f32 %v5671_v24 }
 0x977   :  { %v5691_v39 = vadd.f32 %v6809_v38, %v6742_v37  ;;  %v6810_v61 = vpop.f32.mrb[108].mxu0 }
 0x978   :  { %v6811_v31 = vpop.f32.mrb[109].mxu0 }
 0x979   :  { %7557 = vtanh.f32 %v5691_v39  ;;  %v6812_v16 = vadd.f32 %v6811_v31, %v6810_v61 }
 0x97a   :  { %7559 = vtanh.f32 %v5676_v41 }
 0x97b   :  { %v5696_v63 = vadd.f32 %v6812_v16, %v6742_v37  ;;  %v6813_v53 = vpop.f32.mrb[110].mxu0 }
 0x97c   :  { %v6814_v46 = vpop.f32.mrb[111].mxu0 }
 0x97d   :  { %7561 = vtanh.f32 %v5696_v63  ;;  %v6815_v0 = vadd.f32 %v6814_v46, %v6813_v53 }
 0x97e   :  { %7563 = vtanh.f32 %v5681_v12 }
 0x97f   :  { %v7554_v26 = vpop.eup %7553  ;;  %v5701_v13 = vadd.f32 %v6815_v0, %v6742_v37 }
 0x980   :  { %v5717_v48 = vsel %vm5712_vm1, %v7554_v26, -inf  ;;  %v7556_v57 = vpop.eup %7555 }
 0x981   :  { %v5718_v54 = vmax.f32 %v5713_v51, %v5717_v48  ;;  %7565 = vtanh.f32 %v5701_v13  ;;  %v5714_v49 = vsel %vm5712_vm1, %v7556_v57, -inf }
 0x983   :  { %v7558_v36 = vpop.eup %7557 }
 0x984   :  { %v5719_v52 = vsel %vm5712_vm1, %v7558_v36, -inf  ;;  %v7560_v59 = vpop.eup %7559 }
 0x985   :  { %v5720_v43 = vmax.f32 %v5714_v49, %v5719_v52  ;;  %v5715_v56 = vsel %vm5712_vm1, %v7560_v59, -inf }
 0x987   :  { %v7562_v6 = vpop.eup %7561  ;;  %v5725_v62 = vmax.f32 %v5718_v54, %v5720_v43 }
 0x988   :  { %v5721_v33 = vsel %vm5712_vm1, %v7562_v6, -inf  ;;  %v7564_v32 = vpop.eup %7563 }
 0x989   :  { %v5722_v55 = vmax.f32 %v5715_v56, %v5721_v33  ;;  %v5716_v34 = vsel %vm5712_vm1, %v7564_v32, -inf }
 0x98b   :  { %v7566_v42 = vpop.eup %7565 }
 0x98c   :  { %v5723_v30 = vsel %vm5712_vm1, %v7566_v42, -inf }
 0x98d   :  { %v5724_v58 = vmax.f32 %v5716_v34, %v5723_v30 }
 0x98f   :  { %v5726_v2 = vmax.f32 %v5722_v55, %v5724_v58 }
 0x991   :  { %v5727_v8 = vmax.f32 %v5725_v62, %v5726_v2 }
 0x993   :  { %v5735_v9 = vsub.f32 %v7566_v42, %v5727_v8  ;;  %v5728_v19 = vsub.f32 %v7552_v17, %v5727_v8  ;;  %v5729_v37 = vsub.f32 %v7556_v57, %v5727_v8  ;;  %v5730_v20 = vsub.f32 %v7560_v59, %v5727_v8 }
 0x994   :  { %v5731_v3 = vsub.f32 %v7564_v32, %v5727_v8  ;;  %v5732_v21 = vsub.f32 %v7554_v26, %v5727_v8  ;;  %v5733_v22 = vsub.f32 %v7558_v36, %v5727_v8  ;;  %v5734_v23 = vsub.f32 %v7562_v6, %v5727_v8 }
 0x995   :  { %v5736_v60 = vmul.f32 1.442695, %v5728_v19  ;;  %v5738_v24 = vmul.f32 1.442695, %v5729_v37  ;;  %v5740_v45 = vmul.f32 1.442695, %v5730_v20 }
 0x996   :  { %v5742_v27 = vmul.f32 1.442695, %v5731_v3  ;;  %v5744_v28 = vmul.f32 1.442695, %v5732_v21  ;;  %v5746_v38 = vmul.f32 1.442695, %v5733_v22 }
 0x997   :  { %7567 = vpow2.f32 %v5736_v60  ;;  %v5748_v41 = vmul.f32 1.442695, %v5734_v23  ;;  %v5750_v39 = vmul.f32 1.442695, %v5735_v9  ;;  %v7291_v9 = vld [vmem:[%s10244_s7 + $0x70] sm:$0xff]   ;;  %v7293_v37 = vld [vmem:[%s10244_s7 + $0x78] sm:$0xff]  }
 0x998   :  { %7569 = vpow2.f32 %v5738_v24  ;;  %v7292_v19 = vld [vmem:[%s10244_s7 + $0x30] sm:$0xff]   ;;  %6828 = vmatprep.subr.bf16.mxu1 %v7291_v9  ;;  %v7294_v20 = vld [vmem:[%s10244_s7 + $0x38] sm:$0xff]  }
 0x999   :  { %7571 = vpow2.f32 %v5740_v45  ;;  %6829 = vmatpush3.bf16.msra.mxu1 %v7292_v19 }
 0x99a   :  { %7573 = vpow2.f32 %v5742_v27  ;;  %6830 = vmatprep.subr.bf16.mxu1 %v7293_v37 }
 0x99b   :  { %7575 = vpow2.f32 %v5744_v28 }
 0x99c   :  { %7577 = vpow2.f32 %v5746_v38 }
 0x99d   :  { %7579 = vpow2.f32 %v5748_v41  ;;  %6831 = vmatpush3.bf16.msra.mxu1 %v7294_v20 }
 0x99e   :  { %7581 = vpow2.f32 %v5750_v39 }
 0x9a1   :  { %v7568_v61 = vpop.eup %7567 }
 0x9a2   :  { %v7570_v31 = vpop.eup %7569  ;;  %v5752_v16 = vsel %vm5712_vm1, %v7568_v61, 0.0 }
 0x9a3   :  { %v7572_v12 = vpop.eup %7571  ;;  %v5753_v63 = vsel %vm5712_vm1, %v7570_v31, 0.0 }
 0x9a4   :  { %v7574_v53 = vpop.eup %7573  ;;  %v5754_v46 = vadd.f32 %v5753_v63, %v5752_v16  ;;  %v5755_v17 = vsel %vm5712_vm1, %v7572_v12, 0.0 }
 0x9a5   :  { %v7576_v0 = vpop.eup %7575  ;;  %v5757_v13 = vsel %vm5712_vm1, %v7574_v53, 0.0 }
 0x9a6   :  { %v5756_v26 = vadd.f32 %v5755_v17, %v5754_v46  ;;  %v7578_v51 = vpop.eup %7577  ;;  %v5759_v57 = vsel %vm5712_vm1, %v7576_v0, 0.0 }
 0x9a7   :  { %v7580_v54 = vpop.eup %7579  ;;  %v5761_v49 = vsel %vm5712_vm1, %v7578_v51, 0.0 }
 0x9a8   :  { %v5758_v48 = vadd.f32 %v5757_v13, %v5756_v26  ;;  %v7582_v52 = vpop.eup %7581  ;;  %v5763_v43 = vsel %vm5712_vm1, %v7580_v54, 0.0 }
 0x9a9   :  { %v5765_v62 = vsel %vm5712_vm1, %v7582_v52, 0.0 }
 0x9aa   :  { %v5760_v36 = vadd.f32 %v5759_v57, %v5758_v48 }
 0x9ac   :  { %v5762_v59 = vadd.f32 %v5761_v49, %v5760_v36 }
 0x9ae   :  { %v5764_v6 = vadd.f32 %v5763_v43, %v5762_v59 }
 0x9b0   :  { %v5766_v56 = vadd.f32 %v5765_v62, %v5764_v6 }
 0x9b2   :  { %7583 = vrcp.f32 %v5766_v56 }
 0x9bc   :  { %v7584_v33 = vpop.eup %7583 }
 0x9bd   :  { %v5770_v32 = vmul.f32 %v7584_v33, %v7572_v12  ;;  %v5768_v55 = vmul.f32 %v7584_v33, %v7568_v61  ;;  %v5771_v42 = vmul.f32 %v7584_v33, %v7574_v53  ;;  %v5769_v34 = vmul.f32 %v7584_v33, %v7570_v31 }
 0x9be   :  { %v5773_v30 = vmul.f32 %v7584_v33, %v7578_v51  ;;  %v5772_v58 = vmul.f32 %v7584_v33, %v7576_v0  ;;  %v5775_v2 = vmul.f32 %v7584_v33, %v7582_v52  ;;  %v5774_v8 = vmul.f32 %v7584_v33, %v7580_v54 }
 0x9bf   :  { %5788 = vperm.xlu1 %6890, %v5770_v32   ;;  %5778 = vperm.xlu0 %6889, %v5768_v55  }
 0x9c3   :  { %5793 = vperm.xlu1 %6890, %v5771_v42   ;;  %5783 = vperm.xlu0 %6889, %v5769_v34  }
 0x9c7   :  { %5803 = vperm.xlu1 %6890, %v5773_v30   ;;  %5798 = vperm.xlu0 %6889, %v5772_v58  }
 0x9cb   :  { %5813 = vperm.xlu1 %6890, %v5775_v2   ;;  %5808 = vperm.xlu0 %6889, %v5774_v8  }
 0xa3e   :  { %v5789_v3 = vpop.permute.xlu1 %5788  ;;  %v5779_v21 = vpop.permute.xlu0 %5778 }
 0xa3f   :  { %v5816_v22 = vmul.f32 %v5779_v21, %v10457_v5  ;;  %v5817_v24 = vmul.f32 %v5779_v21, %v10089_v35  ;;  %v5821_v38 = vmul.f32 %v5789_v3, %v9883_v4 }
 0xa42   :  { %v5794_v23 = vpop.permute.xlu1 %5793  ;;  %v5784_v60 = vpop.permute.xlu0 %5783 }
 0xa43   :  { %v5823_v45 = vmul.f32 %v5794_v23, %v10460_v18  ;;  %v5818_v27 = vmul.f32 %v5784_v60, %v10458_v44  ;;  %v5819_v28 = vmul.f32 %v5784_v60, %v9975_v1  ;;  %v5822_v5 = vmul.f32 %v5794_v23, %v10461_v40 }
 0xa44   :  { %v5820_v44 = vmul.f32 %v5789_v3, %v10459_v47 }
 0xa45   :  { %v5832_v41 = vpack.c.bf16 %v5818_v27, %v5816_v22  ;;  %v5833_v39 = vpack.c.bf16 %v5819_v28, %v5817_v24  ;;  %v5835_v61 = vpack.c.bf16 %v5823_v45, %v5821_v38 }
 0xa46   :  { %v5804_v31 = vpop.permute.xlu1 %5803  ;;  %v5799_v16 = vpop.permute.xlu0 %5798  ;;  %v5834_v12 = vpack.c.bf16 %v5822_v5, %v5820_v44 }
 0xa47   :  { %6007 = vmatprep.mubr.bf16.mxu1 %v5833_v39  ;;  %v5827_v35 = vmul.f32 %v5804_v31, %v10464_v10  ;;  %v5825_v18 = vmul.f32 %v5799_v16, %v10462_v15  ;;  %v5826_v53 = vmul.f32 %v5804_v31, %v10465_v11  ;;  %v5824_v46 = vmul.f32 %v5799_v16, %v10463_v50  ;;  %v6743_v50 = vld [vmem:[%s10245_s8] ss:$0 sm:$0xff] }
 0xa48   :  { %6008 = vmatmul.mubr.bf16.vlgmr.msra.gmra.mrb[96].mxu1 %v5832_v41 }
 0xa49   :  { %6015 = vmatprep.mubr.bf16.mxu1 %v5835_v61  ;;  %v5837_v1 = vpack.c.bf16 %v5827_v35, %v5825_v18  ;;  %v5836_v0 = vpack.c.bf16 %v5826_v53, %v5824_v46 }
 0xa4a   :  { %v5814_v63 = vpop.permute.xlu1 %5813  ;;  %v5809_v4 = vpop.permute.xlu0 %5808 }
 0xa4b   :  { %v5831_v17 = vmul.f32 %v5814_v63, %v10467_v14  ;;  %v5829_v40 = vmul.f32 %v5809_v4, %v10466_v7  ;;  %v5830_v47 = vmul.f32 %v5814_v63, %v10086_v29  ;;  %v5828_v15 = vmul.f32 %v5809_v4, %v9937_v25 }
 0xa4d   :  { %v5839_v10 = vpack.c.bf16 %v5831_v17, %v5829_v40  ;;  %v5838_v26 = vpack.c.bf16 %v5830_v47, %v5828_v15 }
 0xa50   :  { %6016 = vmatmul.mubr.bf16.gmra.mrb[100].mxu1 %v5834_v12 }
 0xa51   :  { %6023 = vmatprep.mubr.bf16.mxu1 %v5837_v1 }
 0xa58   :  { %6024 = vmatmul.mubr.bf16.gmra.mrb[104].mxu1 %v5836_v0 }
 0xa59   :  { %6031 = vmatprep.mubr.bf16.mxu1 %v5839_v10 }
 0xa60   :  { %6032 = vmatmul.mubr.bf16.gmra.mrb[108].mxu1 %v5838_v26 }
 0xb1b   :  { %v6832_v13 = vpop.f32.mrb[96].mxu1 }
 0xb1c   :  { %v6833_v51 = vpop.f32.mrb[97].mxu1 }
 0xb1d   :  { %v6834_v11 = vadd.f32 %v6833_v51, %v6832_v13  ;;  %v6835_v14 = vpop.f32.mrb[98].mxu1 }
 0xb1e   :  { %v6836_v48 = vpop.f32.mrb[99].mxu1 }
 0xb1f   :  { %v6837_v7 = vadd.f32 %v6836_v48, %v6835_v14  ;;  %v6010_v57 = vadd.f32 %v6834_v11, %v6743_v50 }
 0xb21   :  { %6040 = vmax.xlane.f32.xlu0 %v6010_v57  ;;  %v6013_v54 = vadd.f32 %v6837_v7, %v6743_v50 }
 0xb23   :  { %v6838_v36 = vpop.f32.mrb[100].mxu1  ;;  %6042 = vmax.xlane.f32.xlu1 %v6013_v54 }
 0xb24   :  { %v6839_v29 = vpop.f32.mrb[101].mxu1 }
 0xb25   :  { %v6840_v49 = vadd.f32 %v6839_v29, %v6838_v36  ;;  %v6841_v25 = vpop.f32.mrb[102].mxu1 }
 0xb26   :  { %v6842_v52 = vpop.f32.mrb[103].mxu1 }
 0xb27   :  { %v6843_v59 = vadd.f32 %v6842_v52, %v6841_v25  ;;  %v6018_v43 = vadd.f32 %v6840_v49, %v6743_v50 }
 0xb29   :  { %6044 = vmax.xlane.f32.xlu0 %v6018_v43  ;;  %v6021_v62 = vadd.f32 %v6843_v59, %v6743_v50 }
 0xb2b   :  { %v6844_v6 = vpop.f32.mrb[104].mxu1 }
 0xb2c   :  { %v6845_v56 = vpop.f32.mrb[105].mxu1 }
 0xb2d   :  { %v6846_v33 = vadd.f32 %v6845_v56, %v6844_v6  ;;  %6046 = vmax.xlane.f32.xlu0 %v6021_v62  ;;  %v6847_v32 = vpop.f32.mrb[106].mxu1 }
 0xb2e   :  { %v6848_v55 = vpop.f32.mrb[107].mxu1 }
 0xb2f   :  { %v6849_v42 = vadd.f32 %v6848_v55, %v6847_v32  ;;  %v6026_v34 = vadd.f32 %v6846_v33, %v6743_v50 }
 0xb31   :  { %6048 = vmax.xlane.f32.xlu1 %v6026_v34  ;;  %v6029_v30 = vadd.f32 %v6849_v42, %v6743_v50 }
 0xb33   :  { %6050 = vmax.xlane.f32.xlu0 %v6029_v30  ;;  %v6850_v58 = vpop.f32.mrb[108].mxu1 }
 0xb34   :  { %v6851_v2 = vpop.f32.mrb[109].mxu1 }
 0xb35   :  { %v6852_v8 = vadd.f32 %v6851_v2, %v6850_v58  ;;  %v6853_v9 = vpop.f32.mrb[110].mxu1 }
 0xb36   :  { %v6854_v19 = vpop.f32.mrb[111].mxu1 }
 0xb37   :  { %v6855_v37 = vadd.f32 %v6854_v19, %v6853_v9  ;;  %v6034_v20 = vadd.f32 %v6852_v8, %v6743_v50 }
 0xb39   :  { %6052 = vmax.xlane.f32.xlu1 %v6034_v20  ;;  %v6037_v3 = vadd.f32 %v6855_v37, %v6743_v50 }
 0xb3b   :  { %6054 = vmax.xlane.f32.xlu0 %v6037_v3 }
 0xbae   :  { %v6041_v21 = vpop.xlane.xlu0 %6040 }
 0xbaf   :  { %v6056_v22 = vsub.f32 %v6010_v57, %v6041_v21 }
 0xbb0   :  { %v6043_v23 = vpop.xlane.xlu1 %6042 }
 0xbb1   :  { %v6064_v60 = vmul.f32 1.442695, %v6056_v22  ;;  %v6057_v24 = vsub.f32 %v6013_v54, %v6043_v23 }
 0xbb3   :  { %7585 = vpow2.f32 %v6064_v60  ;;  %v6066_v45 = vmul.f32 1.442695, %v6057_v24 }
 0xbb5   :  { %7587 = vpow2.f32 %v6066_v45 }
 0xbb6   :  { %v6045_v27 = vpop.xlane.xlu0 %6044 }
 0xbb7   :  { %v10193_v28 = vsub.f32 %v6018_v43, %v6045_v27 }
 0xbb9   :  { %v6068_v38 = vmul.f32 1.442695, %v10193_v28 }
 0xbba   :  { %v6047_v41 = vpop.xlane.xlu0 %6046 }
 0xbbb   :  { %7589 = vpow2.f32 %v6068_v38  ;;  %v10196_v39 = vsub.f32 %v6021_v62, %v6047_v41 }
 0xbbd   :  { %v7586_v61 = vpop.eup %7585  ;;  %v6070_v31 = vmul.f32 1.442695, %v10196_v39 }
 0xbbe   :  { %v6049_v16 = vpop.xlane.xlu1 %6048  ;;  %6080 = vadd.xlane.f32.xlu1 %v7586_v61 }
 0xbbf   :  { %v7588_v5 = vpop.eup %7587  ;;  %7591 = vpow2.f32 %v6070_v31  ;;  %v10199_v35 = vsub.f32 %v6026_v34, %v6049_v16 }
 0xbc0   :  { %6082 = vadd.xlane.f32.xlu0 %v7588_v5  ;;  %v6051_v18 = vpop.xlane.xlu0 %6050 }
 0xbc1   :  { %v6072_v44 = vmul.f32 1.442695, %v10199_v35  ;;  %v10202_v12 = vsub.f32 %v6029_v30, %v6051_v18 }
 0xbc3   :  { %7593 = vpow2.f32 %v6072_v44  ;;  %v6074_v1 = vmul.f32 1.442695, %v10202_v12 }
 0xbc5   :  { %v7590_v63 = vpop.eup %7589  ;;  %7595 = vpow2.f32 %v6074_v1 }
 0xbc6   :  { %v6053_v4 = vpop.xlane.xlu1 %6052  ;;  %6084 = vadd.xlane.f32.xlu1 %v7590_v63 }
 0xbc7   :  { %v10205_v53 = vsub.f32 %v6034_v20, %v6053_v4 }
 0xbc8   :  { %v6055_v46 = vpop.xlane.xlu0 %6054 }
 0xbc9   :  { %v7592_v17 = vpop.eup %7591  ;;  %v6076_v40 = vmul.f32 1.442695, %v10205_v53  ;;  %v6063_v0 = vsub.f32 %v6037_v3, %v6055_v46 }
 0xbca   :  { %6086 = vadd.xlane.f32.xlu0 %v7592_v17 }
 0xbcb   :  { %7597 = vpow2.f32 %v6076_v40  ;;  %v6078_v10 = vmul.f32 1.442695, %v6063_v0 }
 0xbcd   :  { %v7594_v47 = vpop.eup %7593  ;;  %7599 = vpow2.f32 %v6078_v10 }
 0xbce   :  { %6088 = vadd.xlane.f32.xlu1 %v7594_v47 }
 0xbcf   :  { %v7596_v15 = vpop.eup %7595 }
 0xbd0   :  { %6090 = vadd.xlane.f32.xlu0 %v7596_v15 }
 0xbd5   :  { %v7598_v26 = vpop.eup %7597 }
 0xbd6   :  { %6092 = vadd.xlane.f32.xlu1 %v7598_v26 }
 0xbd7   :  { %v7600_v13 = vpop.eup %7599 }
 0xbd8   :  { %6094 = vadd.xlane.f32.xlu0 %v7600_v13 }
 0xc4b   :  { %v6081_v51 = vpop.xlane.xlu1 %6080 }
 0xc4c   :  { %7601 = vlog2.f32 %v6081_v51 }
 0xc4d   :  { %v6083_v50 = vpop.xlane.xlu0 %6082 }
 0xc4e   :  { %7603 = vlog2.f32 %v6083_v50 }
 0xc53   :  { %v6085_v11 = vpop.xlane.xlu1 %6084 }
 0xc54   :  { %7605 = vlog2.f32 %v6085_v11 }
 0xc56   :  { %v7602_v14 = vpop.eup %7601 }
 0xc57   :  { %v6097_v48 = vmul.f32 0.6931472, %v7602_v14  ;;  %v6087_v7 = vpop.xlane.xlu0 %6086 }
 0xc58   :  { %v7604_v57 = vpop.eup %7603  ;;  %7607 = vlog2.f32 %v6087_v7 }
 0xc59   :  { %v6112_v54 = vsub.f32 %v6056_v22, %v6097_v48  ;;  %v6099_v36 = vmul.f32 0.6931472, %v7604_v57 }
 0xc5b   :  { %6120 = vst [vmem:[%s10246_s9] sm:$0xff] %v6112_v54  ;;  %v6113_v29 = vsub.f32 %v6057_v24, %v6099_v36  ;;  %v6089_v49 = vpop.xlane.xlu1 %6088 }
 0xc5c   :  { %7609 = vlog2.f32 %v6089_v49 }
 0xc5d   :  { %6121 = vst [vmem:[%s10246_s9 + $0x8] sm:$0xff] %v6113_v29  ;;  %v6091_v25 = vpop.xlane.xlu0 %6090 }
 0xc5e   :  { %v7606_v52 = vpop.eup %7605  ;;  %7611 = vlog2.f32 %v6091_v25 }
 0xc5f   :  { %v6101_v59 = vmul.f32 0.6931472, %v7606_v52 }
 0xc61   :  { %v6114_v43 = vsub.f32 %v10193_v28, %v6101_v59 }
 0xc62   :  { %v7608_v6 = vpop.eup %7607 }
 0xc63   :  { %6122 = vst [vmem:[%s10246_s9 + $0x10] sm:$0xff] %v6114_v43  ;;  %v6103_v62 = vmul.f32 0.6931472, %v7608_v6  ;;  %v6093_v56 = vpop.xlane.xlu1 %6092 }
 0xc64   :  { %7613 = vlog2.f32 %v6093_v56 }
 0xc65   :  { %v6115_v33 = vsub.f32 %v10196_v39, %v6103_v62  ;;  %v6095_v32 = vpop.xlane.xlu0 %6094 }
 0xc66   :  { %v7610_v55 = vpop.eup %7609  ;;  %7615 = vlog2.f32 %v6095_v32 }
 0xc67   :  { %6123 = vst [vmem:[%s10246_s9 + $0x18] sm:$0xff] %v6115_v33  ;;  %v6105_v42 = vmul.f32 0.6931472, %v7610_v55 }
 0xc68   :  { %v7612_v34 = vpop.eup %7611 }
 0xc69   :  { %v6116_v30 = vsub.f32 %v10199_v35, %v6105_v42  ;;  %v6107_v58 = vmul.f32 0.6931472, %v7612_v34 }
 0xc6b   :  { %6124 = vst [vmem:[%s10246_s9 + $0x20] sm:$0xff] %v6116_v30  ;;  %v6117_v2 = vsub.f32 %v10202_v12, %v6107_v58 }
 0xc6d   :  { %6125 = vst [vmem:[%s10246_s9 + $0x28] sm:$0xff] %v6117_v2 }
 0xc6e   :  { %v7614_v8 = vpop.eup %7613 }
 0xc6f   :  { %v6109_v9 = vmul.f32 0.6931472, %v7614_v8 }
 0xc70   :  { %v7616_v19 = vpop.eup %7615 }
 0xc71   :  { %v6118_v37 = vsub.f32 %v10205_v53, %v6109_v9  ;;  %v6111_v20 = vmul.f32 0.6931472, %v7616_v19 }
 0xc73   :  { %6126 = vst [vmem:[%s10246_s9 + $0x30] sm:$0xff] %v6118_v37  ;;  %v6119_v3 = vsub.f32 %v6063_v0, %v6111_v20 }
 0xc75   :  { %6127 = vst [vmem:[%s10246_s9 + $0x38] sm:$0xff] %v6119_v3 }

</bundles_post_ra>
